<compile_context>
chip_gen: v7x
topology: tpu7x:2x2x1
jax: 0.10.0
libtpu: 0.0.40
codegen_flags: <defaults>
</compile_context>

<pallas_src>
import functools

import jax
import jax.numpy as jnp
from jax import lax
from jax.experimental import pallas as pl
from jax.experimental.pallas import tpu as pltpu


# ---------------------------------------------------------------------------
# Hardware-aware knobs
# ---------------------------------------------------------------------------
def _device_kind() -> str:
    try:
        return jax.devices()[0].device_kind.lower()
    except Exception:
        return ""


def _tile_target() -> int:
    # v5e MXU is 4x128^2 -> 128-row tiles; v6e/v7x MXU is 2x256^2 -> 256-row tiles.
    return 128 if "v5" in _device_kind() else 256


def _vmem_limit_bytes() -> int:
    # v5e/v6e: 128 MiB physical VMEM -> use ~100 MiB; v7x: 64 MiB -> use ~48 MiB.
    try:
        cap = int(pltpu.get_tpu_info().vmem_capacity_bytes)
    except Exception:
        cap = 64 * 1024 * 1024
    return int(min(max(cap - 16 * 1024 * 1024, 32 * 1024 * 1024), 100 * 1024 * 1024))


def _pick_q_tile(s: int, target: int) -> int:
    """Query-row tile: whole S if small, else largest bf16-friendly divisor <= target."""
    if s <= target:
        return s
    for t in range(target, 15, -16):      # multiple of 16 (bf16 sublane packing)
        if s % t == 0:
            return t
    for t in range(target, 7, -8):
        if s % t == 0:
            return t
    return s


# ---------------------------------------------------------------------------
# Fused kernel: value MLP + dot-product attention + Linear P + softmax
# ---------------------------------------------------------------------------
def _tt_fused_kernel(x_ref, w1_ref, b1_ref, w2_ref, b2_ref, wp_ref, bp_ref,
                     probs_ref, attn_ref, value_vmem, colsum_acc,
                     *, tq: int, nq: int):
    qi = pl.program_id(1)

    # --- per-batch setup: value = Linear2(ReLU(Linear1(x_f))), kept bf16 in VMEM ---
    @pl.when(qi == 0)
    def _():
        x = x_ref[...]                                                   # (S, H) bf16
        h = jnp.dot(x, w1_ref[...], preferred_element_type=jnp.float32)  # (S, Dm) f32
        h = jnp.maximum(h + b1_ref[...], 0.0)
        v = jnp.dot(h.astype(w2_ref.dtype), w2_ref[...],
                    preferred_element_type=jnp.float32)                  # (S, H) f32
        v = v + b2_ref[...]
        value_vmem[...] = v.astype(value_vmem.dtype)                     # bf16, resident
        colsum_acc[...] = jnp.zeros_like(colsum_acc)

    # --- query tile (query == x_f), sliced from the resident (S, H) block ---
    if nq == 1:
        q = x_ref[...]                                                   # (S, H) bf16
    else:
        q = x_ref[pl.ds(pl.multiple_of(qi * tq, tq), tq), :]             # (tq, H) bf16

    v_all = value_vmem[...]                                              # (S, H) bf16

    # score = q @ value^T : contract over H (no materialized transpose), f32 acc.
    score = lax.dot_general(q, v_all, (((1,), (1,)), ((), ())),
                            preferred_element_type=jnp.float32)          # (tq, S) f32

    # Numerically stable row softmax, kept in f32 (v5e-safe).
    m = jnp.max(score, axis=-1, keepdims=True)
    e = jnp.exp(score - m)
    attn = e * pl.reciprocal(jnp.sum(e, axis=-1, keepdims=True), approx=False)

    attn_ref[...] = attn.astype(attn_ref.dtype)

    # ctx = (sum_q attn) @ value : only accumulate the (1, S) column-sum per step,
    # defer the single badly-shaped (1,S)@(S,H) MXU pass to the final q-step.
    colsum_acc[...] += jnp.sum(attn, axis=0, keepdims=True)

    @pl.when(qi == nq - 1)
    def _():
        ctx = jnp.dot(colsum_acc[...].astype(v_all.dtype), v_all,
                      preferred_element_type=jnp.float32)                # (1, H) f32
        logits = jnp.dot(ctx.astype(wp_ref.dtype), wp_ref[...],
                         preferred_element_type=jnp.float32) + bp_ref[...]
        lm = jnp.max(logits, axis=-1, keepdims=True)
        le = jnp.exp(logits - lm)
        probs = le * pl.reciprocal(jnp.sum(le, axis=-1, keepdims=True), approx=False)
        probs_ref[...] = probs.astype(probs_ref.dtype)


def _build_call(B, S, H, Dm, out_f, out_dtype, tq, nq, single_buffer_consts):
    def const_spec(shape):
        # Grid-constant operands: single-buffer them (default double buffer is waste).
        if single_buffer_consts:
            return pl.BlockSpec(shape, lambda b, qi: (0, 0),
                                pipeline_mode=pl.Buffered(1))
        return pl.BlockSpec(shape, lambda b, qi: (0, 0))

    kernel = functools.partial(_tt_fused_kernel, tq=tq, nq=nq)

    return pl.pallas_call(
        kernel,
        out_shape=(
            jax.ShapeDtypeStruct((B, 1, out_f), out_dtype),
            jax.ShapeDtypeStruct((B, S, S), out_dtype),
        ),
        grid_spec=pltpu.PrefetchScalarGridSpec(
            num_scalar_prefetch=0,
            grid=(B, nq),
            in_specs=[
                pl.BlockSpec((pl.Squeezed(), S, H), lambda b, qi: (b, 0, 0)),  # x_f
                const_spec((H, Dm)),        # w1 (bf16)
                const_spec((1, Dm)),        # b1 (f32)
                const_spec((Dm, H)),        # w2 (bf16)
                const_spec((1, H)),         # b2 (f32)
                const_spec((H, out_f)),     # wp (bf16)
                const_spec((1, out_f)),     # bp (f32)
            ],
            out_specs=[
                pl.BlockSpec((pl.Squeezed(), 1, out_f), lambda b, qi: (b, 0, 0)),
                pl.BlockSpec((pl.Squeezed(), tq, S), lambda b, qi: (b, qi, 0)),
            ],
            scratch_shapes=[
                pltpu.VMEM((S, H), jnp.bfloat16),   # value, VMEM-resident per batch
                pltpu.VMEM((1, S), jnp.float32),    # accumulated column-sum of attn
            ],
        ),
        compiler_params=pltpu.CompilerParams(
            dimension_semantics=("parallel", "arbitrary"),
            vmem_limit_bytes=_vmem_limit_bytes(),
        ),
    )


def tt_prediction(x_f, w1, b1, w2, b2, wp, bp):
    """TTPrediction.forward: returns (probs (B, out), attn (B, S, S))."""
    B, S, H = x_f.shape
    Dm = w1.shape[1]
    out_f = wp.shape[1]
    out_dtype = x_f.dtype

    # bf16 MXU operands (cast once on the host -> half the weight/x HBM reads);
    # all accumulation and softmax math stays in f32 inside the kernel.
    bf = jnp.bfloat16
    x_bf = x_f.astype(bf)
    w1_bf, w2_bf, wp_bf = w1.astype(bf), w2.astype(bf), wp.astype(bf)
    b1_f = b1.reshape(1, Dm).astype(jnp.float32)
    b2_f = b2.reshape(1, H).astype(jnp.float32)
    bp_f = bp.reshape(1, out_f).astype(jnp.float32)

    tq = _pick_q_tile(S, _tile_target())
    nq = max(S // tq, 1)
    args = (x_bf, w1_bf, b1_f, w2_bf, b2_f, wp_bf, bp_f)

    try:
        probs3, attn = _build_call(B, S, H, Dm, out_f, out_dtype, tq, nq, True)(*args)
        jax.block_until_ready((probs3, attn))
    except Exception:
        # Fallback for JAX versions without BlockSpec(pipeline_mode=pl.Buffered(1)).
        probs3, attn = _build_call(B, S, H, Dm, out_f, out_dtype, tq, nq, False)(*args)

    return probs3.reshape(B, out_f), attn


# ---------------------------------------------------------------------------
# Pure-JAX references
# ---------------------------------------------------------------------------
def _reference_f32(x_f, w1, b1, w2, b2, wp, bp):
    hp = lax.Precision.HIGHEST
    h = jnp.maximum(jnp.dot(x_f, w1, precision=hp) + b1[0], 0.0)
    value = jnp.dot(h, w2, precision=hp) + b2[0]
    score = jnp.einsum("bqh,bsh->bqs", x_f, value, precision=hp)
    attn = jax.nn.softmax(score, axis=-1)
    ctx = jnp.sum(jnp.einsum("bqs,bsh->bqh", attn, value, precision=hp), axis=1)
    logits = jnp.dot(ctx, wp, precision=hp) + bp[0]
    probs = jax.nn.softmax(logits, axis=-1)
    return probs, attn


def _reference_bf16(x_f, w1, b1, w2, b2, wp, bp):
    """Mirrors the kernel's precision policy: bf16 MXU operands, f32 accumulation."""
    bf, f32 = jnp.bfloat16, jnp.float32
    x = x_f.astype(bf)
    h = jnp.dot(x, w1.astype(bf), preferred_element_type=f32) + b1[0]
    h = jnp.maximum(h, 0.0)
    v = jnp.dot(h.astype(bf), w2.astype(bf), preferred_element_type=f32) + b2[0]
    vb = v.astype(bf)
    score = jnp.einsum("bqh,bsh->bqs", x, vb, preferred_element_type=f32)
    attn = jax.nn.softmax(score, axis=-1)
    colsum = jnp.sum(attn, axis=1)                                   # (B, S) f32
    ctx = jnp.einsum("bs,bsh->bh", colsum.astype(bf), vb, preferred_element_type=f32)
    logits = jnp.dot(ctx.astype(bf), wp.astype(bf), preferred_element_type=f32) + bp[0]
    probs = jax.nn.softmax(logits, axis=-1)
    return probs, attn


if __name__ == "__main__":
    key = jax.random.PRNGKey(0)
    kx, k1, k1b, k2, k2b, kp, kpb = jax.random.split(key, 7)

    B, S = 2, 8                         # small test shapes
    D_IN, D_MID, D_OUT = 1536, 256, 2   # fixed by the module definition

    def uinit(k, shape, fan_in):
        bound = 1.0 / (fan_in ** 0.5)
        return jax.random.uniform(k, shape, jnp.float32, -bound, bound)

    x_f = jax.random.normal(kx, (B, S, D_IN), dtype=jnp.float32)
    w1 = uinit(k1, (D_IN, D_MID), D_IN)
    b1 = uinit(k1b, (1, D_MID), D_IN)
    w2 = uinit(k2, (D_MID, D_IN), D_MID)
    b2 = uinit(k2b, (1, D_IN), D_MID)
    wp = uinit(kp, (D_IN, D_OUT), D_IN)
    bp = uinit(kpb, (1, D_OUT), D_IN)

    probs, attn = tt_prediction(x_f, w1, b1, w2, b2, wp, bp)
    jax.block_until_ready((probs, attn))

    assert probs.shape == (B, D_OUT) and attn.shape == (B, S, S)
    assert bool(jnp.all(jnp.isfinite(probs))) and bool(jnp.all(jnp.isfinite(attn)))
    assert jnp.allclose(jnp.sum(attn, axis=-1), 1.0, atol=1e-3)
    assert jnp.allclose(jnp.sum(probs, axis=-1), 1.0, atol=1e-3)

    # Tight check vs a reference that mirrors the kernel's bf16-MXU / f32-acc math.
    rb_probs, rb_attn = _reference_bf16(x_f, w1, b1, w2, b2, wp, bp)
    assert jnp.allclose(attn, rb_attn, atol=5e-3, rtol=5e-2), (
        "attn mismatch vs bf16 reference", float(jnp.max(jnp.abs(attn - rb_attn))))
    assert jnp.allclose(probs, rb_probs, atol=5e-3, rtol=5e-2), (
        "probs mismatch vs bf16 reference", float(jnp.max(jnp.abs(probs - rb_probs))))

    # Loose sanity check vs the full-f32 module reference (bf16 operands shift the
    # softmax logits slightly, so the tolerance is intentionally wide).
    rf_probs, _ = _reference_f32(x_f, w1, b1, w2, b2, wp, bp)
    assert jnp.allclose(probs, rf_probs, atol=5e-2), (
        "probs mismatch vs f32 reference", float(jnp.max(jnp.abs(probs - rf_probs))))

    print("KERNEL_OK")
</pallas_src>

<mosaic_0001>
module attributes {stable_mosaic.version = 11 : i64} {
  func.func @_tt_fused_kernel(%arg0: i32, %arg1: i32, %arg2: memref<1x8x1536xbf16, #tpu.memory_space<vmem>>, %arg3: memref<1536x256xbf16, #tpu.memory_space<vmem>>, %arg4: memref<1x256xf32, #tpu.memory_space<vmem>>, %arg5: memref<256x1536xbf16, #tpu.memory_space<vmem>>, %arg6: memref<1x1536xf32, #tpu.memory_space<vmem>>, %arg7: memref<1536x2xbf16, #tpu.memory_space<vmem>>, %arg8: memref<1x2xf32, #tpu.memory_space<vmem>>, %arg9: memref<1x1x2xf32, #tpu.memory_space<vmem>>, %arg10: memref<1x8x8xf32, #tpu.memory_space<vmem>>, %arg11: memref<8x1536xbf16, #tpu.memory_space<vmem>>, %arg12: memref<1x8xf32, #tpu.memory_space<vmem>>) attributes {dimension_semantics = [#tpu.dimension_semantics<parallel>, #tpu.dimension_semantics<arbitrary>], iteration_bounds = array<i64: 2, 1>, scalar_prefetch = 0 : i64, scratch_operands = 2 : i64, tpu.core_type = #tpu.core_type<tc>, window_params = [{transform_indices = @transform_0, window_bounds = array<i64: 1, 8, 1536>}, {pipeline_mode = #tpu.pipeline_mode<synchronous>, transform_indices = @transform_1, window_bounds = array<i64: 1536, 256>}, {pipeline_mode = #tpu.pipeline_mode<synchronous>, transform_indices = @transform_2, window_bounds = array<i64: 1, 256>}, {pipeline_mode = #tpu.pipeline_mode<synchronous>, transform_indices = @transform_3, window_bounds = array<i64: 256, 1536>}, {pipeline_mode = #tpu.pipeline_mode<synchronous>, transform_indices = @transform_4, window_bounds = array<i64: 1, 1536>}, {pipeline_mode = #tpu.pipeline_mode<synchronous>, transform_indices = @transform_5, window_bounds = array<i64: 1536, 2>}, {pipeline_mode = #tpu.pipeline_mode<synchronous>, transform_indices = @transform_6, window_bounds = array<i64: 1, 2>}, {transform_indices = @transform_7, window_bounds = array<i64: 1, 1, 2>}, {transform_indices = @transform_8, window_bounds = array<i64: 1, 8, 8>}]} {
    %c0_i32 = arith.constant 0 : i32
    %0 = arith.cmpi eq, %arg1, %c0_i32 : i32
    %1 = arith.extui %0 : i1 to i32
    %c0_i32_0 = arith.constant 0 : i32
    %2 = arith.cmpi ne, %1, %c0_i32_0 : i32
    scf.if %2 {
      %c0_17 = arith.constant 0 : index
      %c0_18 = arith.constant 0 : index
      %c0_19 = arith.constant 0 : index
      %28 = vector.load %arg2[%c0_17, %c0_18, %c0_19] : memref<1x8x1536xbf16, #tpu.memory_space<vmem>>, vector<1x8x1536xbf16>
      %29 = vector.shape_cast %28 : vector<1x8x1536xbf16> to vector<8x1536xbf16>
      %c0_20 = arith.constant 0 : index
      %c0_21 = arith.constant 0 : index
      %30 = vector.load %arg3[%c0_20, %c0_21] : memref<1536x256xbf16, #tpu.memory_space<vmem>>, vector<1536x256xbf16>
      %cst_22 = arith.constant dense<0.000000e+00> : vector<8x256xf32>
      %31 = tpu.matmul %29, %30, %cst_22 {dimension_numbers = #tpu.dot_dimension_numbers<[1], [0], [0], [1], [0, 0, 1, 1], [], []>} : vector<8x1536xbf16>, vector<1536x256xbf16>, vector<8x256xf32> -> vector<8x256xf32>
      %c0_23 = arith.constant 0 : index
      %c0_24 = arith.constant 0 : index
      %32 = vector.load %arg4[%c0_23, %c0_24] : memref<1x256xf32, #tpu.memory_space<vmem>>, vector<1x256xf32>
      %33 = vector.broadcast %32 : vector<1x256xf32> to vector<8x256xf32>
      %34 = arith.addf %31, %33 : vector<8x256xf32>
      %cst_25 = arith.constant 0.000000e+00 : f32
      %35 = vector.broadcast %cst_25 : f32 to vector<8x256xf32>
      %36 = arith.maximumf %34, %35 : vector<8x256xf32>
      %37 = arith.truncf %36 : vector<8x256xf32> to vector<8x256xbf16>
      %c0_26 = arith.constant 0 : index
      %c0_27 = arith.constant 0 : index
      %38 = vector.load %arg5[%c0_26, %c0_27] : memref<256x1536xbf16, #tpu.memory_space<vmem>>, vector<256x1536xbf16>
      %cst_28 = arith.constant dense<0.000000e+00> : vector<8x1536xf32>
      %39 = tpu.matmul %37, %38, %cst_28 {dimension_numbers = #tpu.dot_dimension_numbers<[1], [0], [0], [1], [0, 0, 1, 1], [], []>} : vector<8x256xbf16>, vector<256x1536xbf16>, vector<8x1536xf32> -> vector<8x1536xf32>
      %c0_29 = arith.constant 0 : index
      %c0_30 = arith.constant 0 : index
      %40 = vector.load %arg6[%c0_29, %c0_30] : memref<1x1536xf32, #tpu.memory_space<vmem>>, vector<1x1536xf32>
      %41 = vector.broadcast %40 : vector<1x1536xf32> to vector<8x1536xf32>
      %42 = arith.addf %39, %41 : vector<8x1536xf32>
      %43 = arith.truncf %42 : vector<8x1536xf32> to vector<8x1536xbf16>
      %c0_31 = arith.constant 0 : index
      %c0_32 = arith.constant 0 : index
      %44 = vector.load %arg11[%c0_31, %c0_32] : memref<8x1536xbf16, #tpu.memory_space<vmem>>, vector<8x1536xbf16>
      tpu.vector_store %arg11[%c0_31, %c0_32], %43 {strides = array<i32>} : memref<8x1536xbf16, #tpu.memory_space<vmem>>, vector<8x1536xbf16>,
      %cst_33 = arith.constant 0.000000e+00 : f32
      %45 = vector.broadcast %cst_33 : f32 to vector<1x8xf32>
      %c0_34 = arith.constant 0 : index
      %c0_35 = arith.constant 0 : index
      %46 = vector.load %arg12[%c0_34, %c0_35] : memref<1x8xf32, #tpu.memory_space<vmem>>, vector<1x8xf32>
      tpu.vector_store %arg12[%c0_34, %c0_35], %45 {strides = array<i32>} : memref<1x8xf32, #tpu.memory_space<vmem>>, vector<1x8xf32>,
    } else {
    }
    %c0 = arith.constant 0 : index
    %c0_1 = arith.constant 0 : index
    %c0_2 = arith.constant 0 : index
    %3 = vector.load %arg2[%c0, %c0_1, %c0_2] : memref<1x8x1536xbf16, #tpu.memory_space<vmem>>, vector<1x8x1536xbf16>
    %4 = vector.shape_cast %3 : vector<1x8x1536xbf16> to vector<8x1536xbf16>
    %c0_3 = arith.constant 0 : index
    %c0_4 = arith.constant 0 : index
    %5 = vector.load %arg11[%c0_3, %c0_4] : memref<8x1536xbf16, #tpu.memory_space<vmem>>, vector<8x1536xbf16>
    %cst = arith.constant dense<0.000000e+00> : vector<8x8xf32>
    %6 = tpu.matmul %4, %5, %cst {dimension_numbers = #tpu.dot_dimension_numbers<[1], [1], [0], [0], [0, 0, 1, 0], [], []>} : vector<8x1536xbf16>, vector<8x1536xbf16>, vector<8x8xf32> -> vector<8x8xf32>
    %cst_5 = arith.constant dense<0xFF800000> : vector<8xf32>
    %7 = vector.multi_reduction <maximumf>, %6, %cst_5 [1] : vector<8x8xf32> to vector<8xf32>
    %8 = vector.shape_cast %7 : vector<8xf32> to vector<8x1xf32>
    %9 = vector.broadcast %8 : vector<8x1xf32> to vector<8x8xf32>
    %10 = arith.subf %6, %9 : vector<8x8xf32>
    %11 = math.exp %10 : vector<8x8xf32>
    %cst_6 = arith.constant dense<0.000000e+00> : vector<8xf32>
    %12 = vector.multi_reduction <add>, %11, %cst_6 [1] : vector<8x8xf32> to vector<8xf32>
    %13 = vector.shape_cast %12 : vector<8xf32> to vector<8x1xf32>
    %14 = tpu.reciprocal %13 : vector<8x1xf32> -> vector<8x1xf32>
    %15 = vector.broadcast %14 : vector<8x1xf32> to vector<8x8xf32>
    %16 = arith.mulf %11, %15 : vector<8x8xf32>
    %c0_7 = arith.constant 0 : index
    %c0_8 = arith.constant 0 : index
    %c0_9 = arith.constant 0 : index
    %17 = vector.load %arg10[%c0_7, %c0_8, %c0_9] : memref<1x8x8xf32, #tpu.memory_space<vmem>>, vector<1x8x8xf32>
    %18 = vector.shape_cast %17 : vector<1x8x8xf32> to vector<8x8xf32>
    %19 = vector.shape_cast %16 : vector<8x8xf32> to vector<1x8x8xf32>
    tpu.vector_store %arg10[%c0_7, %c0_8, %c0_9], %19 {strides = array<i32>} : memref<1x8x8xf32, #tpu.memory_space<vmem>>, vector<1x8x8xf32>,
    %c0_10 = arith.constant 0 : index
    %c0_11 = arith.constant 0 : index
    %20 = vector.load %arg12[%c0_10, %c0_11] : memref<1x8xf32, #tpu.memory_space<vmem>>, vector<1x8xf32>
    %cst_12 = arith.constant dense<0.000000e+00> : vector<8xf32>
    %21 = vector.multi_reduction <add>, %16, %cst_12 [0] : vector<8x8xf32> to vector<8xf32>
    %22 = vector.shape_cast %21 : vector<8xf32> to vector<1x8xf32>
    %23 = arith.addf %20, %22 : vector<1x8xf32>
    %c0_13 = arith.constant 0 : index
    %c0_14 = arith.constant 0 : index
    %24 = vector.load %arg12[%c0_13, %c0_14] : memref<1x8xf32, #tpu.memory_space<vmem>>, vector<1x8xf32>
    tpu.vector_store %arg12[%c0_13, %c0_14], %23 {strides = array<i32>} : memref<1x8xf32, #tpu.memory_space<vmem>>, vector<1x8xf32>,
    %c0_i32_15 = arith.constant 0 : i32
    %25 = arith.cmpi eq, %arg1, %c0_i32_15 : i32
    %26 = arith.extui %25 : i1 to i32
    %c0_i32_16 = arith.constant 0 : i32
    %27 = arith.cmpi ne, %26, %c0_i32_16 : i32
    scf.if %27 {
      %c0_17 = arith.constant 0 : index
      %c0_18 = arith.constant 0 : index
      %28 = vector.load %arg12[%c0_17, %c0_18] : memref<1x8xf32, #tpu.memory_space<vmem>>, vector<1x8xf32>
      %29 = arith.truncf %28 : vector<1x8xf32> to vector<1x8xbf16>
      %cst_19 = arith.constant dense<0.000000e+00> : vector<1x1536xf32>
      %30 = tpu.matmul %29, %5, %cst_19 {dimension_numbers = #tpu.dot_dimension_numbers<[1], [0], [0], [1], [0, 0, 1, 1], [], []>} : vector<1x8xbf16>, vector<8x1536xbf16>, vector<1x1536xf32> -> vector<1x1536xf32>
      %31 = arith.truncf %30 : vector<1x1536xf32> to vector<1x1536xbf16>
      %c0_20 = arith.constant 0 : index
      %c0_21 = arith.constant 0 : index
      %32 = vector.load %arg7[%c0_20, %c0_21] : memref<1536x2xbf16, #tpu.memory_space<vmem>>, vector<1536x2xbf16>
      %cst_22 = arith.constant dense<0.000000e+00> : vector<1x2xf32>
      %33 = tpu.matmul %31, %32, %cst_22 {dimension_numbers = #tpu.dot_dimension_numbers<[1], [0], [0], [1], [0, 0, 1, 1], [], []>} : vector<1x1536xbf16>, vector<1536x2xbf16>, vector<1x2xf32> -> vector<1x2xf32>
      %c0_23 = arith.constant 0 : index
      %c0_24 = arith.constant 0 : index
      %34 = vector.load %arg8[%c0_23, %c0_24] : memref<1x2xf32, #tpu.memory_space<vmem>>, vector<1x2xf32>
      %35 = arith.addf %33, %34 : vector<1x2xf32>
      %cst_25 = arith.constant dense<0xFF800000> : vector<1xf32>
      %36 = vector.multi_reduction <maximumf>, %35, %cst_25 [1] : vector<1x2xf32> to vector<1xf32>
      %37 = vector.shape_cast %36 : vector<1xf32> to vector<1x1xf32>
      %38 = vector.broadcast %37 : vector<1x1xf32> to vector<1x2xf32>
      %39 = arith.subf %35, %38 : vector<1x2xf32>
      %40 = math.exp %39 : vector<1x2xf32>
      %cst_26 = arith.constant dense<0.000000e+00> : vector<1xf32>
      %41 = vector.multi_reduction <add>, %40, %cst_26 [1] : vector<1x2xf32> to vector<1xf32>
      %42 = vector.shape_cast %41 : vector<1xf32> to vector<1x1xf32>
      %43 = tpu.reciprocal %42 : vector<1x1xf32> -> vector<1x1xf32>
      %44 = vector.broadcast %43 : vector<1x1xf32> to vector<1x2xf32>
      %45 = arith.mulf %40, %44 : vector<1x2xf32>
      %c0_27 = arith.constant 0 : index
      %c0_28 = arith.constant 0 : index
      %c0_29 = arith.constant 0 : index
      %46 = vector.load %arg9[%c0_27, %c0_28, %c0_29] : memref<1x1x2xf32, #tpu.memory_space<vmem>>, vector<1x1x2xf32>
      %47 = vector.shape_cast %46 : vector<1x1x2xf32> to vector<1x2xf32>
      %48 = vector.shape_cast %45 : vector<1x2xf32> to vector<1x1x2xf32>
      tpu.vector_store %arg9[%c0_27, %c0_28, %c0_29], %48 {strides = array<i32>} : memref<1x1x2xf32, #tpu.memory_space<vmem>>, vector<1x1x2xf32>,
    } else {
    }
    return
  }
  func.func @transform_0(%arg0: i32, %arg1: i32) -> (i32, i32, i32) {
    %c0_i32 = arith.constant 0 : i32
    %c0_i32_0 = arith.constant 0 : i32
    %c0_i32_1 = arith.constant 0 : i32
    return %arg0, %c0_i32, %c0_i32_0 : i32, i32, i32
  }
  func.func @transform_1(%arg0: i32, %arg1: i32) -> (i32, i32) {
    %c0_i32 = arith.constant 0 : i32
    %c0_i32_0 = arith.constant 0 : i32
    %c0_i32_1 = arith.constant 0 : i32
    return %c0_i32, %c0_i32_0 : i32, i32
  }
  func.func @transform_2(%arg0: i32, %arg1: i32) -> (i32, i32) {
    %c0_i32 = arith.constant 0 : i32
    %c0_i32_0 = arith.constant 0 : i32
    %c0_i32_1 = arith.constant 0 : i32
    return %c0_i32, %c0_i32_0 : i32, i32
  }
  func.func @transform_3(%arg0: i32, %arg1: i32) -> (i32, i32) {
    %c0_i32 = arith.constant 0 : i32
    %c0_i32_0 = arith.constant 0 : i32
    %c0_i32_1 = arith.constant 0 : i32
    return %c0_i32, %c0_i32_0 : i32, i32
  }
  func.func @transform_4(%arg0: i32, %arg1: i32) -> (i32, i32) {
    %c0_i32 = arith.constant 0 : i32
    %c0_i32_0 = arith.constant 0 : i32
    %c0_i32_1 = arith.constant 0 : i32
    return %c0_i32, %c0_i32_0 : i32, i32
  }
  func.func @transform_5(%arg0: i32, %arg1: i32) -> (i32, i32) {
    %c0_i32 = arith.constant 0 : i32
    %c0_i32_0 = arith.constant 0 : i32
    %c0_i32_1 = arith.constant 0 : i32
    return %c0_i32, %c0_i32_0 : i32, i32
  }
  func.func @transform_6(%arg0: i32, %arg1: i32) -> (i32, i32) {
    %c0_i32 = arith.constant 0 : i32
    %c0_i32_0 = arith.constant 0 : i32
    %c0_i32_1 = arith.constant 0 : i32
    return %c0_i32, %c0_i32_0 : i32, i32
  }
  func.func @transform_7(%arg0: i32, %arg1: i32) -> (i32, i32, i32) {
    %c0_i32 = arith.constant 0 : i32
    %c0_i32_0 = arith.constant 0 : i32
    %c0_i32_1 = arith.constant 0 : i32
    return %arg0, %c0_i32, %c0_i32_0 : i32, i32, i32
  }
  func.func @transform_8(%arg0: i32, %arg1: i32) -> (i32, i32, i32) {
    %c0_i32 = arith.constant 0 : i32
    %c0_i32_0 = arith.constant 0 : i32
    return %arg0, %arg1, %c0_i32 : i32, i32, i32
  }
}

module attributes {stable_mosaic.version = 11 : i64} {
  func.func @_tt_fused_kernel(%arg0: i32, %arg1: i32, %arg2: memref<1x8x1536xbf16, #tpu.memory_space<vmem>>, %arg3: memref<1536x256xbf16, #tpu.memory_space<vmem>>, %arg4: memref<1x256xf32, #tpu.memory_space<vmem>>, %arg5: memref<256x1536xbf16, #tpu.memory_space<vmem>>, %arg6: memref<1x1536xf32, #tpu.memory_space<vmem>>, %arg7: memref<1536x2xbf16, #tpu.memory_space<vmem>>, %arg8: memref<1x2xf32, #tpu.memory_space<vmem>>, %arg9: memref<1x1x2xf32, #tpu.memory_space<vmem>>, %arg10: memref<1x8x8xf32, #tpu.memory_space<vmem>>, %arg11: memref<8x1536xbf16, #tpu.memory_space<vmem>>, %arg12: memref<1x8xf32, #tpu.memory_space<vmem>>) attributes {dimension_semantics = [#tpu.dimension_semantics<parallel>, #tpu.dimension_semantics<arbitrary>], iteration_bounds = array<i64: 2, 1>, scalar_prefetch = 0 : i64, scratch_operands = 2 : i64, tpu.core_type = #tpu.core_type<tc>, window_params = [{transform_indices = @transform_0, window_bounds = array<i64: 1, 8, 1536>}, {pipeline_mode = #tpu.pipeline_mode<synchronous>, transform_indices = @transform_1, window_bounds = array<i64: 1536, 256>}, {pipeline_mode = #tpu.pipeline_mode<synchronous>, transform_indices = @transform_2, window_bounds = array<i64: 1, 256>}, {pipeline_mode = #tpu.pipeline_mode<synchronous>, transform_indices = @transform_3, window_bounds = array<i64: 256, 1536>}, {pipeline_mode = #tpu.pipeline_mode<synchronous>, transform_indices = @transform_4, window_bounds = array<i64: 1, 1536>}, {pipeline_mode = #tpu.pipeline_mode<synchronous>, transform_indices = @transform_5, window_bounds = array<i64: 1536, 2>}, {pipeline_mode = #tpu.pipeline_mode<synchronous>, transform_indices = @transform_6, window_bounds = array<i64: 1, 2>}, {transform_indices = @transform_7, window_bounds = array<i64: 1, 1, 2>}, {transform_indices = @transform_8, window_bounds = array<i64: 1, 8, 8>}]} {
    %c0_i32 = arith.constant 0 : i32
    %0 = arith.cmpi eq, %arg1, %c0_i32 : i32
    %1 = arith.extui %0 : i1 to i32
    %c0_i32_0 = arith.constant 0 : i32
    %2 = arith.cmpi ne, %1, %c0_i32_0 : i32
    scf.if %2 {
      %c0_17 = arith.constant 0 : index
      %c0_18 = arith.constant 0 : index
      %c0_19 = arith.constant 0 : index
      %28 = vector.load %arg2[%c0_17, %c0_18, %c0_19] : memref<1x8x1536xbf16, #tpu.memory_space<vmem>>, vector<1x8x1536xbf16>
      %29 = vector.shape_cast %28 : vector<1x8x1536xbf16> to vector<8x1536xbf16>
      %c0_20 = arith.constant 0 : index
      %c0_21 = arith.constant 0 : index
      %30 = vector.load %arg3[%c0_20, %c0_21] : memref<1536x256xbf16, #tpu.memory_space<vmem>>, vector<1536x256xbf16>
      %cst_22 = arith.constant dense<0.000000e+00> : vector<8x256xf32>
      %31 = tpu.matmul %29, %30, %cst_22 {dimension_numbers = #tpu.dot_dimension_numbers<[1], [0], [0], [1], [0, 0, 1, 1], [], []>} : vector<8x1536xbf16>, vector<1536x256xbf16>, vector<8x256xf32> -> vector<8x256xf32>
      %c0_23 = arith.constant 0 : index
      %c0_24 = arith.constant 0 : index
      %32 = vector.load %arg4[%c0_23, %c0_24] : memref<1x256xf32, #tpu.memory_space<vmem>>, vector<1x256xf32>
      %33 = vector.broadcast %32 : vector<1x256xf32> to vector<8x256xf32>
      %34 = arith.addf %31, %33 : vector<8x256xf32>
      %cst_25 = arith.constant 0.000000e+00 : f32
      %35 = vector.broadcast %cst_25 : f32 to vector<8x256xf32>
      %36 = arith.maximumf %34, %35 : vector<8x256xf32>
      %37 = arith.truncf %36 : vector<8x256xf32> to vector<8x256xbf16>
      %c0_26 = arith.constant 0 : index
      %c0_27 = arith.constant 0 : index
      %38 = vector.load %arg5[%c0_26, %c0_27] : memref<256x1536xbf16, #tpu.memory_space<vmem>>, vector<256x1536xbf16>
      %cst_28 = arith.constant dense<0.000000e+00> : vector<8x1536xf32>
      %39 = tpu.matmul %37, %38, %cst_28 {dimension_numbers = #tpu.dot_dimension_numbers<[1], [0], [0], [1], [0, 0, 1, 1], [], []>} : vector<8x256xbf16>, vector<256x1536xbf16>, vector<8x1536xf32> -> vector<8x1536xf32>
      %c0_29 = arith.constant 0 : index
      %c0_30 = arith.constant 0 : index
      %40 = vector.load %arg6[%c0_29, %c0_30] : memref<1x1536xf32, #tpu.memory_space<vmem>>, vector<1x1536xf32>
      %41 = vector.broadcast %40 : vector<1x1536xf32> to vector<8x1536xf32>
      %42 = arith.addf %39, %41 : vector<8x1536xf32>
      %43 = arith.truncf %42 : vector<8x1536xf32> to vector<8x1536xbf16>
      %c0_31 = arith.constant 0 : index
      %c0_32 = arith.constant 0 : index
      %44 = vector.load %arg11[%c0_31, %c0_32] : memref<8x1536xbf16, #tpu.memory_space<vmem>>, vector<8x1536xbf16>
      tpu.vector_store %arg11[%c0_31, %c0_32], %43 {strides = array<i32>} : memref<8x1536xbf16, #tpu.memory_space<vmem>>, vector<8x1536xbf16>,
      %cst_33 = arith.constant 0.000000e+00 : f32
      %45 = vector.broadcast %cst_33 : f32 to vector<1x8xf32>
      %c0_34 = arith.constant 0 : index
      %c0_35 = arith.constant 0 : index
      %46 = vector.load %arg12[%c0_34, %c0_35] : memref<1x8xf32, #tpu.memory_space<vmem>>, vector<1x8xf32>
      tpu.vector_store %arg12[%c0_34, %c0_35], %45 {strides = array<i32>} : memref<1x8xf32, #tpu.memory_space<vmem>>, vector<1x8xf32>,
    } else {
    }
    %c0 = arith.constant 0 : index
    %c0_1 = arith.constant 0 : index
    %c0_2 = arith.constant 0 : index
    %3 = vector.load %arg2[%c0, %c0_1, %c0_2] : memref<1x8x1536xbf16, #tpu.memory_space<vmem>>, vector<1x8x1536xbf16>
    %4 = vector.shape_cast %3 : vector<1x8x1536xbf16> to vector<8x1536xbf16>
    %c0_3 = arith.constant 0 : index
    %c0_4 = arith.constant 0 : index
    %5 = vector.load %arg11[%c0_3, %c0_4] : memref<8x1536xbf16, #tpu.memory_space<vmem>>, vector<8x1536xbf16>
    %cst = arith.constant dense<0.000000e+00> : vector<8x8xf32>
    %6 = tpu.matmul %4, %5, %cst {dimension_numbers = #tpu.dot_dimension_numbers<[1], [1], [0], [0], [0, 0, 1, 0], [], []>} : vector<8x1536xbf16>, vector<8x1536xbf16>, vector<8x8xf32> -> vector<8x8xf32>
    %cst_5 = arith.constant dense<0xFF800000> : vector<8xf32>
    %7 = vector.multi_reduction <maximumf>, %6, %cst_5 [1] : vector<8x8xf32> to vector<8xf32>
    %8 = vector.shape_cast %7 : vector<8xf32> to vector<8x1xf32>
    %9 = vector.broadcast %8 : vector<8x1xf32> to vector<8x8xf32>
    %10 = arith.subf %6, %9 : vector<8x8xf32>
    %11 = math.exp %10 : vector<8x8xf32>
    %cst_6 = arith.constant dense<0.000000e+00> : vector<8xf32>
    %12 = vector.multi_reduction <add>, %11, %cst_6 [1] : vector<8x8xf32> to vector<8xf32>
    %13 = vector.shape_cast %12 : vector<8xf32> to vector<8x1xf32>
    %14 = tpu.reciprocal %13 : vector<8x1xf32> -> vector<8x1xf32>
    %15 = vector.broadcast %14 : vector<8x1xf32> to vector<8x8xf32>
    %16 = arith.mulf %11, %15 : vector<8x8xf32>
    %c0_7 = arith.constant 0 : index
    %c0_8 = arith.constant 0 : index
    %c0_9 = arith.constant 0 : index
    %17 = vector.load %arg10[%c0_7, %c0_8, %c0_9] : memref<1x8x8xf32, #tpu.memory_space<vmem>>, vector<1x8x8xf32>
    %18 = vector.shape_cast %17 : vector<1x8x8xf32> to vector<8x8xf32>
    %19 = vector.shape_cast %16 : vector<8x8xf32> to vector<1x8x8xf32>
    tpu.vector_store %arg10[%c0_7, %c0_8, %c0_9], %19 {strides = array<i32>} : memref<1x8x8xf32, #tpu.memory_space<vmem>>, vector<1x8x8xf32>,
    %c0_10 = arith.constant 0 : index
    %c0_11 = arith.constant 0 : index
    %20 = vector.load %arg12[%c0_10, %c0_11] : memref<1x8xf32, #tpu.memory_space<vmem>>, vector<1x8xf32>
    %cst_12 = arith.constant dense<0.000000e+00> : vector<8xf32>
    %21 = vector.multi_reduction <add>, %16, %cst_12 [0] : vector<8x8xf32> to vector<8xf32>
    %22 = vector.shape_cast %21 : vector<8xf32> to vector<1x8xf32>
    %23 = arith.addf %20, %22 : vector<1x8xf32>
    %c0_13 = arith.constant 0 : index
    %c0_14 = arith.constant 0 : index
    %24 = vector.load %arg12[%c0_13, %c0_14] : memref<1x8xf32, #tpu.memory_space<vmem>>, vector<1x8xf32>
    tpu.vector_store %arg12[%c0_13, %c0_14], %23 {strides = array<i32>} : memref<1x8xf32, #tpu.memory_space<vmem>>, vector<1x8xf32>,
    %c0_i32_15 = arith.constant 0 : i32
    %25 = arith.cmpi eq, %arg1, %c0_i32_15 : i32
    %26 = arith.extui %25 : i1 to i32
    %c0_i32_16 = arith.constant 0 : i32
    %27 = arith.cmpi ne, %26, %c0_i32_16 : i32
    scf.if %27 {
      %c0_17 = arith.constant 0 : index
      %c0_18 = arith.constant 0 : index
      %28 = vector.load %arg12[%c0_17, %c0_18] : memref<1x8xf32, #tpu.memory_space<vmem>>, vector<1x8xf32>
      %29 = arith.truncf %28 : vector<1x8xf32> to vector<1x8xbf16>
      %cst_19 = arith.constant dense<0.000000e+00> : vector<1x1536xf32>
      %30 = tpu.matmul %29, %5, %cst_19 {dimension_numbers = #tpu.dot_dimension_numbers<[1], [0], [0], [1], [0, 0, 1, 1], [], []>} : vector<1x8xbf16>, vector<8x1536xbf16>, vector<1x1536xf32> -> vector<1x1536xf32>
      %31 = arith.truncf %30 : vector<1x1536xf32> to vector<1x1536xbf16>
      %c0_20 = arith.constant 0 : index
      %c0_21 = arith.constant 0 : index
      %32 = vector.load %arg7[%c0_20, %c0_21] : memref<1536x2xbf16, #tpu.memory_space<vmem>>, vector<1536x2xbf16>
      %cst_22 = arith.constant dense<0.000000e+00> : vector<1x2xf32>
      %33 = tpu.matmul %31, %32, %cst_22 {dimension_numbers = #tpu.dot_dimension_numbers<[1], [0], [0], [1], [0, 0, 1, 1], [], []>} : vector<1x1536xbf16>, vector<1536x2xbf16>, vector<1x2xf32> -> vector<1x2xf32>
      %c0_23 = arith.constant 0 : index
      %c0_24 = arith.constant 0 : index
      %34 = vector.load %arg8[%c0_23, %c0_24] : memref<1x2xf32, #tpu.memory_space<vmem>>, vector<1x2xf32>
      %35 = arith.addf %33, %34 : vector<1x2xf32>
      %cst_25 = arith.constant dense<0xFF800000> : vector<1xf32>
      %36 = vector.multi_reduction <maximumf>, %35, %cst_25 [1] : vector<1x2xf32> to vector<1xf32>
      %37 = vector.shape_cast %36 : vector<1xf32> to vector<1x1xf32>
      %38 = vector.broadcast %37 : vector<1x1xf32> to vector<1x2xf32>
      %39 = arith.subf %35, %38 : vector<1x2xf32>
      %40 = math.exp %39 : vector<1x2xf32>
      %cst_26 = arith.constant dense<0.000000e+00> : vector<1xf32>
      %41 = vector.multi_reduction <add>, %40, %cst_26 [1] : vector<1x2xf32> to vector<1xf32>
      %42 = vector.shape_cast %41 : vector<1xf32> to vector<1x1xf32>
      %43 = tpu.reciprocal %42 : vector<1x1xf32> -> vector<1x1xf32>
      %44 = vector.broadcast %43 : vector<1x1xf32> to vector<1x2xf32>
      %45 = arith.mulf %40, %44 : vector<1x2xf32>
      %c0_27 = arith.constant 0 : index
      %c0_28 = arith.constant 0 : index
      %c0_29 = arith.constant 0 : index
      %46 = vector.load %arg9[%c0_27, %c0_28, %c0_29] : memref<1x1x2xf32, #tpu.memory_space<vmem>>, vector<1x1x2xf32>
      %47 = vector.shape_cast %46 : vector<1x1x2xf32> to vector<1x2xf32>
      %48 = vector.shape_cast %45 : vector<1x2xf32> to vector<1x1x2xf32>
      tpu.vector_store %arg9[%c0_27, %c0_28, %c0_29], %48 {strides = array<i32>} : memref<1x1x2xf32, #tpu.memory_space<vmem>>, vector<1x1x2xf32>,
    } else {
    }
    return
  }
  func.func @transform_0(%arg0: i32, %arg1: i32) -> (i32, i32, i32) {
    %c0_i32 = arith.constant 0 : i32
    %c0_i32_0 = arith.constant 0 : i32
    %c0_i32_1 = arith.constant 0 : i32
    return %arg0, %c0_i32, %c0_i32_0 : i32, i32, i32
  }
  func.func @transform_1(%arg0: i32, %arg1: i32) -> (i32, i32) {
    %c0_i32 = arith.constant 0 : i32
    %c0_i32_0 = arith.constant 0 : i32
    %c0_i32_1 = arith.constant 0 : i32
    return %c0_i32, %c0_i32_0 : i32, i32
  }
  func.func @transform_2(%arg0: i32, %arg1: i32) -> (i32, i32) {
    %c0_i32 = arith.constant 0 : i32
    %c0_i32_0 = arith.constant 0 : i32
    %c0_i32_1 = arith.constant 0 : i32
    return %c0_i32, %c0_i32_0 : i32, i32
  }
  func.func @transform_3(%arg0: i32, %arg1: i32) -> (i32, i32) {
    %c0_i32 = arith.constant 0 : i32
    %c0_i32_0 = arith.constant 0 : i32
    %c0_i32_1 = arith.constant 0 : i32
    return %c0_i32, %c0_i32_0 : i32, i32
  }
  func.func @transform_4(%arg0: i32, %arg1: i32) -> (i32, i32) {
    %c0_i32 = arith.constant 0 : i32
    %c0_i32_0 = arith.constant 0 : i32
    %c0_i32_1 = arith.constant 0 : i32
    return %c0_i32, %c0_i32_0 : i32, i32
  }
  func.func @transform_5(%arg0: i32, %arg1: i32) -> (i32, i32) {
    %c0_i32 = arith.constant 0 : i32
    %c0_i32_0 = arith.constant 0 : i32
    %c0_i32_1 = arith.constant 0 : i32
    return %c0_i32, %c0_i32_0 : i32, i32
  }
  func.func @transform_6(%arg0: i32, %arg1: i32) -> (i32, i32) {
    %c0_i32 = arith.constant 0 : i32
    %c0_i32_0 = arith.constant 0 : i32
    %c0_i32_1 = arith.constant 0 : i32
    return %c0_i32, %c0_i32_0 : i32, i32
  }
  func.func @transform_7(%arg0: i32, %arg1: i32) -> (i32, i32, i32) {
    %c0_i32 = arith.constant 0 : i32
    %c0_i32_0 = arith.constant 0 : i32
    %c0_i32_1 = arith.constant 0 : i32
    return %arg0, %c0_i32, %c0_i32_0 : i32, i32, i32
  }
  func.func @transform_8(%arg0: i32, %arg1: i32) -> (i32, i32, i32) {
    %c0_i32 = arith.constant 0 : i32
    %c0_i32_0 = arith.constant 0 : i32
    return %arg0, %arg1, %c0_i32 : i32, i32, i32
  }
}

</mosaic_0001>

<bundles_post_ra>
// kernel: tpu_custom_call.1
= control target key start
LH: loop header
LB: loop body
LE: loop exit
PB: predicated region body
PF: predicated region fallthrough
CT: control target
= control target key end

     0   :  { %14 = vsyncpa [#allocation5], 0  ;;  %s7658_s0 = inlined_call_operand.vmem [shape: bf16[2,8,1536], index: 0, kind: input, shape index: {}]   ;;  %s7659_s1 = inlined_call_operand.hbm [shape: bf16[1536,256], index: 1, kind: input, shape index: {}]   ;;  %s7660_s2 = inlined_call_operand.vmem [shape: f32[1,256], index: 2, kind: input, shape index: {}]   ;;  %s7661_s3 = inlined_call_operand.hbm [shape: bf16[256,1536], index: 3, kind: input, shape index: {}]   ;;  %s7662_s4 = inlined_call_operand.vmem [shape: f32[1,1536], index: 4, kind: input, shape index: {}]   ;;  %s7663_s5 = inlined_call_operand.vmem [shape: bf16[1536,2], index: 5, kind: input, shape index: {}]   ;;  %s7664_s6 = inlined_call_operand.vmem [shape: f32[1,2], index: 6, kind: input, shape index: {}]   ;;  %s7665_s7 = inlined_call_operand.hbm [shape: f32[2,1,2], index: 7, kind: output, shape index: {0}]   ;;  %s7666_s8 = inlined_call_operand.hbm [shape: f32[2,8,8], index: 8, kind: output, shape index: {1}]  }
   0x1   :  { %15 = vsyncpa [#allocation8], 0 }
   0x2   :  { %16 = vsyncpa [#allocation6], 0 }
   0x3   :  { %18 = vsyncpa [#allocation6 + $0x1], 0 }
   0x4   :  { %19 = vsyncpa [#allocation11], 0 }
   0x5   :  { %21 = vsyncpa [#allocation11 + $0x1], 0  ;;  %s6943_s27 = smov 0   ;;  %s6945_s28 = smov 0  }
   0x6   :  { %s6947_s29 = smov 0   ;;  %s6949_s30 = smov 0  }
   0x7   :  { %s6951_s9 = smov 0   ;;  %s6953_s10 = smov 0  }
   0x8 LB: > { %7674 = sst [smem:[#allocation16_spill]] %s6874_s29  ;;  %s5178_s11 = sadd.s32 4294967295, %s6886_s10   ;;  %s6886_s10 = sphi %s6953_s10, %s27_s10   ;;  %s6882_s9 = sphi %s6951_s9, %s7690_s9   ;;  %s6878_s30 = sphi %s6949_s30, %s7689_s30   ;;  %s6874_s29 = sphi %s6947_s29, %s7688_s29   ;;  %s6870_s28 = sphi %s6945_s28, %s7692_s28   ;;  %s6866_s27 = sphi %s6943_s27, %s7691_s27  }
   0x9   : > { %7675 = sst [smem:[#allocation17_spill]] %s6882_s9  ;;  %s5179_s12 = sadd.s32 4294967294, %s6886_s10  }
   0xa   : > { %s39_s13 = sadd.s32 1, %s6882_s9  ;;  %s198_s14 = sadd.s32 1, %s6874_s29 }
   0xb   : > { %p41_p0 = scmp.ge.s32.totalorder %s39_s13, 2  ;;  %p208_p1 = scmp.ne.s32.totalorder %s6874_s29, %s6870_s28 }
   0xc   : > { %p209_p2 = scmp.eq.s32.totalorder %s5178_s11, 1  ;;  %p214_p3 = scmp.ne.s32.totalorder %s6870_s28, %s6866_s27 }
   0xd   : > { %s7694_s13 = smov (%p41_p0, %s39_s13), 0  ;;  %p215_p5 = scmp.eq.s32.totalorder %s5179_s12, 1 }
   0xe   : > { %7676 = sst [smem:[#allocation18_spill]] %s7694_s13  ;;  %p6983_p4 = por %p209_p2, %p208_p1 }
   0xf   : > { %s195_s16 = ssub.s32 %s6882_s9, %s7694_s13  ;;  %p5180_p6 = scmp.ge.s32.totalorder %s6886_s10, 1 }
  0x10   : > { %s7677_s15 = scalar_select %p6983_p4, 1, 0 }
  0x11   : > { %p196_p7 = scmp.eq.s32.totalorder %s195_s16, 0  ;;  %p6990_p8 = por %p215_p5, %p214_p3 }
  0x12   : > { %p250_p9 = scmp.lt.s32.totalorder %s6886_s10, 3  ;;  %p7002_p11 = scmp.eq.s32.totalorder %s5178_s11, 0 }
  0x13   : > { %s7678_s17 = scalar_select %p6990_p8, 1, 0 }
  0x14   : > { %s6996_s18 = scalar_select %p196_p7, %s6874_s29, %s198_s14  }
  0x15   : > { %p6998_p10 = pnand %p5180_p6, %p250_p9  ;;  %s6888_s21 = smov [#allocation4]  }
  0x16   : > { %7679 = sst [smem:[#allocation19_spill]] %s6996_s18  ;;  %s262_s22 = sshll.u32 %s6888_s21, 4  ;;  %s263_s22 = int_to_ptr.vmem [resolvable:$true] %s262_s22 }
  0x17   : > { %s7680_s19 = scalar_select %p6998_p10, 1, 0 }
  0x18   : > { %s7681_s20 = scalar_select %p7002_p11, 1, 0 }
  0x19   : > { %p5933_p12 = pneg %p6998_p10  ;;  %s6889_s24 = smov [#allocation7]  }
  0x1a   : > { %s278_s25 = sshll.u32 %s6889_s24, 4  ;;  %s6712_s12 = scalar_lea.hbm %s7659_s1, 24576  ;;  %s7014_s25 = int_to_ptr.vmem [resolvable:$true] %s278_s25 }
  0x1b   : > { %p7010_p13 = pnand %p7002_p11, %p5933_p12  ;;  %p6713_p0 = scmp.ne.s32.totalorder %s7659_s1, %s6712_s12 }
  0x1c   : > { %p6719_p5 = scmp.lt.u32.totalorder %s6712_s12, %s7659_s1 }
  0x1d   : > { %p6714_p1 = pneg %p7010_p13 }
  0x1f   : > { %p6715_p2 = pnand %p6714_p1, %p6713_p0 }
  0x21   : > { %p6716_p3 = pneg %p6715_p2 }
  0x23   : > { %p6721_p6 = pnand %p6719_p5, %p6716_p3 }
  0x25   : > { %6724 = shalt.err (!%p6721_p6)
}
  0x26   : > { %s6725_s24 = scalar_lea.vmem %s263_s22, 24576  ;;  %p6733_p8 = scmp.lt.s32.totalorder %s263_s22, %s263_s22 }
  0x27   : > { %p6726_p7 = scmp.ne.s32.totalorder %s263_s22, %s6725_s24  ;;  %p6734_p4 = scmp.lt.s32.totalorder %s6725_s24, %s6725_s24 }
  0x29   : > { %p6728_p9 = pnand %p6726_p7, %p6714_p1  ;;  %p6735_p11 = por %p6734_p4, %p6733_p8 }
  0x2b   : > { %p6729_p12 = pneg %p6728_p9 }
  0x2d   : > { %p6736_p10 = pnand %p6735_p11, %p6729_p12 }
  0x2f   : > { %6739 = shalt.err (!%p6736_p10)
}
  0x30   : > { %s6890_s26 = smov 128   ;;  %s6891_s11 = smov 8  }
  0x31   : > { %5936 = dma.hbm_to_vmem [thread:$0]  (!%p7010_p13), %s7659_s1, 24576, %s263_s22, [#allocation5], %s6890_s26, %s6890_s26, %s6891_s11  }
  0x32   : > { %s6740_s21 = scalar_lea.hbm %s7661_s3, 24576 }
  0x33   : > { %p6741_p0 = scmp.ne.s32.totalorder %s7661_s3, %s6740_s21  ;;  %p6747_p10 = scmp.lt.u32.totalorder %s6740_s21, %s7661_s3 }
  0x35   : > { %p6743_p4 = pnand %p6741_p0, %p6714_p1 }
  0x37   : > { %p6744_p8 = pneg %p6743_p4 }
  0x39   : > { %p6749_p11 = pnand %p6747_p10, %p6744_p8 }
  0x3b   : > { %6752 = shalt.err (!%p6749_p11)
}
  0x3c   : > { %s6753_s22 = scalar_lea.vmem %s7014_s25, 24576  ;;  %p6761_p6 = scmp.lt.s32.totalorder %s7014_s25, %s7014_s25 }
  0x3d   : > { %p6754_p2 = scmp.ne.s32.totalorder %s7014_s25, %s6753_s22  ;;  %p6762_p7 = scmp.lt.s32.totalorder %s6753_s22, %s6753_s22 }
  0x3f   : > { %p6756_p3 = pnand %p6754_p2, %p6714_p1  ;;  %p6763_p9 = por %p6762_p7, %p6761_p6 }
  0x41   : > { %p6757_p5 = pneg %p6756_p3 }
  0x43   : > { %p6764_p12 = pnand %p6763_p9, %p6757_p5 }
  0x45   : > { %6767 = shalt.err (!%p6764_p12)
}
  0x46   : > { %s6892_s29 = smov 768   ;;  %s6893_s9 = smov 48  }
  0x47   : > { %5939 = dma.hbm_to_vmem [thread:$0]  (!%p7010_p13), %s7661_s3, 24576, %s7014_s25, [#allocation8], %s6892_s29, %s6892_s29, %s6893_s9  }
  0x48   : > { %p7683_p0 = scmp.ne.s32.totalorder %s7680_s19, 0 }
  0x49   : > { %p7684_p1 = scmp.ne.s32.totalorder (!%p7683_p0), %s7681_s20, 0 }
  0x4a   : > { %311 = sbr.rel (%p7683_p0) target bundleno = 2618 (0xa3a), region = 48 }
  0x51   : > { %6849 = dma.done.wait (%p7684_p1), [#allocation5], 24576  }
  0x52   : > { %6851 = vsyncadd (%p7684_p1), [#allocation5], 4294942720 }
  0x53   : > { %6853 = dma.done.wait (%p7684_p1), [#allocation8], 24576  }
  0x54   : > { %6855 = vsyncadd (%p7684_p1), [#allocation8], 4294942720  ;;  %v6008_v0 = vld [vmem:[#allocation4 + $0x4] ss:$8 sps:$4 sm:$0xff]   ;;  %v6010_v1 = vld [vmem:[#allocation4] ss:$8 sps:$4 sm:$0xff]  }
  0x55   : > { %1575 = vmatprep.subr.bf16.mxu0 %v6008_v0  ;;  %v6011_v2 = vld [vmem:[#allocation4 + $0x14] ss:$8 sps:$4 sm:$0xff]   ;;  %v6013_v3 = vld [vmem:[#allocation4 + $0x10] ss:$8 sps:$4 sm:$0xff]   ;;  %v6014_v4 = vld [vmem:[#allocation4 + $0x24] ss:$8 sps:$4 sm:$0xff]  }
  0x56   : > { %1576 = vmatpush1.bf16.msra.mxu0 %v6010_v1  ;;  %p353_p13 = scmp.lt.s32.totalorder %s6878_s30, 1  ;;  %v6016_v5 = vld [vmem:[#allocation4 + $0x20] ss:$8 sps:$4 sm:$0xff]   ;;  %v6017_v6 = vld [vmem:[#allocation4 + $0x34] ss:$8 sps:$4 sm:$0xff]   ;;  %vm3711_vm0 = vcmask 1043456  }
  0x57   : > { %1577 = vmatprep.subr.bf16.mxu0 %v6011_v2  ;;  %v6019_v7 = vld [vmem:[#allocation4 + $0x30] ss:$8 sps:$4 sm:$0xff]   ;;  %v6020_v8 = vld [vmem:[#allocation4 + $0x44] ss:$8 sps:$4 sm:$0xff]   ;;  %v6022_v9 = vld [vmem:[#allocation4 + $0x40] ss:$8 sps:$4 sm:$0xff]  }
  0x58   : > { %s354_s19 = scalar_select %p353_p13, %s6878_s30, 1  ;;  %v6023_v10 = vld [vmem:[#allocation4 + $0x54] ss:$8 sps:$4 sm:$0xff]   ;;  %v6025_v11 = vld [vmem:[#allocation4 + $0x50] ss:$8 sps:$4 sm:$0xff]   ;;  %vm3679_vm1 = vcmask 64512  }
  0x59   : > { %v6026_v12 = vld [vmem:[#allocation4 + $0x64] ss:$8 sps:$4 sm:$0xff]   ;;  %v6028_v15 = vld [vmem:[#allocation4 + $0x60] ss:$8 sps:$4 sm:$0xff]   ;;  %v6029_v16 = vld [vmem:[#allocation4 + $0x74] ss:$8 sps:$4 sm:$0xff]  }
  0x5a   : > { %1578 = vmatpush1.bf16.msra.mxu0 %v6013_v3  ;;  %s5920_s20 = smul.u32 48, %s354_s19  ;;  %v6031_v17 = vld [vmem:[#allocation4 + $0x70] ss:$8 sps:$4 sm:$0xff]   ;;  %v6032_v18 = vld [vmem:[#allocation4 + $0x84] ss:$8 sps:$4 sm:$0xff]   ;;  %vm3341_vm2 = vcmask 57344  }
  0x5b   : > { %1579 = vmatprep.subr.bf16.mxu0 %v6014_v4  ;;  %v6034_v19 = vld [vmem:[#allocation4 + $0x80] ss:$8 sps:$4 sm:$0xff]   ;;  %v6035_v20 = vld [vmem:[#allocation4 + $0x94] ss:$8 sps:$4 sm:$0xff]   ;;  %v6037_v21 = vld [vmem:[#allocation4 + $0x90] ss:$8 sps:$4 sm:$0xff]  }
  0x5c   : > { %s7078_s11 = scalar_lea.vmem %s7658_s0, %s5920_s20  ;;  %v6038_v22 = vld [vmem:[#allocation4 + $0xa4] ss:$8 sps:$4 sm:$0xff]   ;;  %v6040_v23 = vld [vmem:[#allocation4 + $0xa0] ss:$8 sps:$4 sm:$0xff]   ;;  %v6041_v24 = vld [vmem:[#allocation4 + $0xb4] ss:$8 sps:$4 sm:$0xff]  }
  0x5d   : > { %v363_v13 = vld [vmem:[%s7078_s11] sm:$0xff]  ;;  %v6043_v25 = vld [vmem:[#allocation4 + $0xb0] ss:$8 sps:$4 sm:$0xff]   ;;  %v7082_v35 = vld [vmem:[%s7078_s11 + $0x8] sm:$0xff]  ;;  %s7282_s14 = sand.u32 1, %s6870_s28   ;;  %vm5015_vm3 = vcmask 8192  }
  0x5e   : > { %1580 = vmatpush1.bf16.msra.mxu0 %v6016_v5  ;;  %v5190_v14 = vcombine.high %v363_v13, %v363_v13  ;;  %v6044_v26 = vld [vmem:[#allocation4 + $0xc4] ss:$8 sps:$4 sm:$0xff]   ;;  %v6046_v27 = vld [vmem:[#allocation4 + $0xc0] ss:$8 sps:$4 sm:$0xff]   ;;  %v6047_v28 = vld [vmem:[#allocation4 + $0xd4] ss:$8 sps:$4 sm:$0xff]   ;;  %v5189_v36 = vcombine.low %v363_v13, %v363_v13  ;;  %v5192_v38 = vcombine.high %v7082_v35, %v7082_v35 }
  0x5f   : > { %1581 = vmatprep.subr.bf16.mxu0 %v6017_v6  ;;  %v6049_v29 = vld [vmem:[#allocation4 + $0xd0] ss:$8 sps:$4 sm:$0xff]   ;;  %v6050_v30 = vld [vmem:[#allocation4 + $0xe4] ss:$8 sps:$4 sm:$0xff]   ;;  %v6052_v31 = vld [vmem:[#allocation4 + $0xe0] ss:$8 sps:$4 sm:$0xff]  }
  0x60   : > { %1607 = vmatprep.mubr.bf16.mxu0 %v5190_v14  ;;  %v6053_v32 = vld [vmem:[#allocation4 + $0xf4] ss:$8 sps:$4 sm:$0xff]   ;;  %v6055_v33 = vld [vmem:[#allocation4 + $0xf0] ss:$8 sps:$4 sm:$0xff]   ;;  %v6060_v34 = vld [vmem:[#allocation4 + $0x104] ss:$8 sps:$4 sm:$0xff]  }
  0x61   : > { %v6058_v37 = vld [vmem:[#allocation4 + $0x100] ss:$8 sps:$4 sm:$0xff]   ;;  %v6063_v39 = vld [vmem:[#allocation4 + $0x114] ss:$8 sps:$4 sm:$0xff]   ;;  %v6061_v40 = vld [vmem:[#allocation4 + $0x110] ss:$8 sps:$4 sm:$0xff]  }
  0x62   : > { %1582 = vmatpush1.bf16.msra.mxu0 %v6019_v7  ;;  %v6066_v41 = vld [vmem:[#allocation4 + $0x124] ss:$8 sps:$4 sm:$0xff]   ;;  %v6064_v42 = vld [vmem:[#allocation4 + $0x120] ss:$8 sps:$4 sm:$0xff]   ;;  %v6069_v43 = vld [vmem:[#allocation4 + $0x134] ss:$8 sps:$4 sm:$0xff]   ;;  %v5191_v7 = vcombine.low %v7082_v35, %v7082_v35 }
  0x63   : > { %1583 = vmatprep.subr.bf16.mxu0 %v6020_v8  ;;  %v6067_v44 = vld [vmem:[#allocation4 + $0x130] ss:$8 sps:$4 sm:$0xff]   ;;  %v6072_v45 = vld [vmem:[#allocation4 + $0x144] ss:$8 sps:$4 sm:$0xff]   ;;  %v6070_v46 = vld [vmem:[#allocation4 + $0x140] ss:$8 sps:$4 sm:$0xff]  }
  0x64   : > { %v6075_v47 = vld [vmem:[#allocation4 + $0x154] ss:$8 sps:$4 sm:$0xff]   ;;  %v6073_v48 = vld [vmem:[#allocation4 + $0x150] ss:$8 sps:$4 sm:$0xff]   ;;  %v6078_v49 = vld [vmem:[#allocation4 + $0x164] ss:$8 sps:$4 sm:$0xff]  }
  0x65   : > { %v6076_v50 = vld [vmem:[#allocation4 + $0x160] ss:$8 sps:$4 sm:$0xff]   ;;  %v6081_v51 = vld [vmem:[#allocation4 + $0x174] ss:$8 sps:$4 sm:$0xff]   ;;  %v6079_v52 = vld [vmem:[#allocation4 + $0x170] ss:$8 sps:$4 sm:$0xff]  }
  0x66   : > { %1584 = vmatpush1.bf16.msra.mxu0 %v6022_v9  ;;  %v6084_v53 = vld [vmem:[#allocation4 + $0x184] ss:$8 sps:$4 sm:$0xff]   ;;  %v6082_v54 = vld [vmem:[#allocation4 + $0x180] ss:$8 sps:$4 sm:$0xff]   ;;  %v6087_v55 = vld [vmem:[#allocation4 + $0x194] ss:$8 sps:$4 sm:$0xff]  }
  0x67   : > { %1585 = vmatprep.subr.bf16.mxu0 %v6023_v10  ;;  %v6085_v56 = vld [vmem:[#allocation4 + $0x190] ss:$8 sps:$4 sm:$0xff]   ;;  %v6090_v57 = vld [vmem:[#allocation4 + $0x1a4] ss:$8 sps:$4 sm:$0xff]   ;;  %v6088_v58 = vld [vmem:[#allocation4 + $0x1a0] ss:$8 sps:$4 sm:$0xff]  }
  0x68   : > { %v6093_v59 = vld [vmem:[#allocation4 + $0x1b4] ss:$8 sps:$4 sm:$0xff]   ;;  %v6091_v60 = vld [vmem:[#allocation4 + $0x1b0] ss:$8 sps:$4 sm:$0xff]   ;;  %v6096_v61 = vld [vmem:[#allocation4 + $0x1c4] ss:$8 sps:$4 sm:$0xff]  }
  0x69   : > { %v6094_v62 = vld [vmem:[#allocation4 + $0x1c0] ss:$8 sps:$4 sm:$0xff]   ;;  %v6099_v63 = vld [vmem:[#allocation4 + $0x1d4] ss:$8 sps:$4 sm:$0xff]   ;;  %v6097_v0 = vld [vmem:[#allocation4 + $0x1d0] ss:$8 sps:$4 sm:$0xff]  }
  0x6a   : > { %1586 = vmatpush1.bf16.msra.mxu0 %v6025_v11  ;;  %v6102_v1 = vld [vmem:[#allocation4 + $0x1e4] ss:$8 sps:$4 sm:$0xff]   ;;  %v6100_v2 = vld [vmem:[#allocation4 + $0x1e0] ss:$8 sps:$4 sm:$0xff]   ;;  %v6105_v3 = vld [vmem:[#allocation4 + $0x1f4] ss:$8 sps:$4 sm:$0xff]  }
  0x6b   : > { %1587 = vmatprep.subr.bf16.mxu0 %v6026_v12  ;;  %v6103_v4 = vld [vmem:[#allocation4 + $0x1f0] ss:$8 sps:$4 sm:$0xff]   ;;  %v6110_v5 = vld [vmem:[#allocation4 + $0x204] ss:$8 sps:$4 sm:$0xff]   ;;  %v6108_v8 = vld [vmem:[#allocation4 + $0x200] ss:$8 sps:$4 sm:$0xff]  }
  0x6c   : > { %v7087_v6 = vld [vmem:[%s7078_s11 + $0x10] sm:$0xff]  ;;  %v6114_v13 = vld [vmem:[#allocation4 + $0x220] ss:$8 sps:$4 sm:$0xff]   ;;  %s5187_s16 = sshll.u32 %s7282_s14, 3  ;;  %s5725_s12 = sshll.u32 %s6878_s30, 7 }
  0x6d   : > { %v6113_v9 = vld [vmem:[#allocation4 + $0x214] ss:$8 sps:$4 sm:$0xff]   ;;  %v5194_v10 = vcombine.high %v7087_v6, %v7087_v6  ;;  %v6111_v11 = vld [vmem:[#allocation4 + $0x210] ss:$8 sps:$4 sm:$0xff]   ;;  %v6116_v12 = vld [vmem:[#allocation4 + $0x224] ss:$8 sps:$4 sm:$0xff]   ;;  %s7584_s29 = scalar_lea.hbm %s7666_s8, %s5725_s12 }
  0x6e   : > { %1588 = vmatpush1.bf16.msra.mxu0 %v6028_v15  ;;  %v6119_v14 = vld [vmem:[#allocation4 + $0x234] ss:$8 sps:$4 sm:$0xff]   ;;  %v6117_v15 = vld [vmem:[#allocation4 + $0x230] ss:$8 sps:$4 sm:$0xff]   ;;  %s7286_s21 = scalar_lea.vmem [#allocation10], %s5187_s16  ;;  %s5033_s9 = scalar_lea.sflag [#allocation11], %s7282_s14 }
  0x6f   : > { %1589 = vmatprep.subr.bf16.mxu0 %v6029_v16  ;;  %v6122_v16 = vld [vmem:[#allocation4 + $0x244] ss:$8 sps:$4 sm:$0xff]   ;;  %v6147_v35 = vld [vmem:[#allocation4 + $0x2d0] ss:$8 sps:$4 sm:$0xff]   ;;  %s5060_s16 = sshll.u32 %s7286_s21, 4  ;;  %p7685_p8 = scmp.ne.s32.totalorder %s7677_s15, 0  ;;  %s5061_s16 = int_to_ptr.vmem [resolvable:$true] %s5060_s16 }
  0x70   : > { %s6768_s18 = scalar_lea.vmem %s5061_s16, 128  ;;  %s6896_s26 = smov [#allocation10]  }
  0x71   : > { %p6769_p4 = scmp.ne.s32.totalorder %s5061_s16, %s6768_s18  ;;  %s6772_s19 = sshll.u32 %s6896_s26, 4  ;;  %s6773_s19 = int_to_ptr.vmem [resolvable:$false] %s6772_s19 }
  0x72   : > { %1590 = vmatpush1.bf16.msra.mxu0 %v6031_v17  ;;  %v6120_v17 = vld [vmem:[#allocation4 + $0x240] ss:$8 sps:$4 sm:$0xff]   ;;  %s6774_s20 = scalar_lea.vmem %s6773_s19, 256  ;;  %p6775_p2 = scmp.lt.s32.totalorder %s5061_s16, %s6773_s19 }
  0x73   : > { %1591 = vmatprep.subr.bf16.mxu0 %v6032_v18  ;;  %v6125_v18 = vld [vmem:[#allocation4 + $0x254] ss:$8 sps:$4 sm:$0xff]   ;;  %p6770_p10 = pnand %p6769_p4, %p7685_p8  ;;  %p6776_p3 = scmp.lt.s32.totalorder %s6774_s20, %s6768_s18 }
  0x75   : > { %p6771_p11 = pneg %p6770_p10  ;;  %p6777_p5 = por %p6776_p3, %p6775_p2 }
  0x76   : > { %1592 = vmatpush1.bf16.msra.mxu0 %v6034_v19  ;;  %v6123_v19 = vld [vmem:[#allocation4 + $0x250] ss:$8 sps:$4 sm:$0xff]  }
  0x77   : > { %1593 = vmatprep.subr.bf16.mxu0 %v6035_v20  ;;  %v6128_v20 = vld [vmem:[#allocation4 + $0x264] ss:$8 sps:$4 sm:$0xff]   ;;  %p6778_p6 = pnand %p6777_p5, %p6771_p11 }
  0x7a   : > { %1594 = vmatpush1.bf16.msra.mxu0 %v6037_v21  ;;  %v6126_v21 = vld [vmem:[#allocation4 + $0x260] ss:$8 sps:$4 sm:$0xff]  }
  0x7b   : > { %1595 = vmatprep.subr.bf16.mxu0 %v6038_v22  ;;  %v6131_v22 = vld [vmem:[#allocation4 + $0x274] ss:$8 sps:$4 sm:$0xff]  }
  0x7e   : > { %1596 = vmatpush1.bf16.msra.mxu0 %v6040_v23  ;;  %v6129_v23 = vld [vmem:[#allocation4 + $0x270] ss:$8 sps:$4 sm:$0xff]  }
  0x7f   : > { %1597 = vmatprep.subr.bf16.mxu0 %v6041_v24  ;;  %v6134_v24 = vld [vmem:[#allocation4 + $0x284] ss:$8 sps:$4 sm:$0xff]  }
  0x82   : > { %1598 = vmatpush1.bf16.msra.mxu0 %v6043_v25  ;;  %v6132_v25 = vld [vmem:[#allocation4 + $0x280] ss:$8 sps:$4 sm:$0xff]  }
  0x83   : > { %1599 = vmatprep.subr.bf16.mxu0 %v6044_v26  ;;  %v6137_v26 = vld [vmem:[#allocation4 + $0x294] ss:$8 sps:$4 sm:$0xff]  }
  0x86   : > { %1600 = vmatpush1.bf16.msra.mxu0 %v6046_v27  ;;  %v6135_v27 = vld [vmem:[#allocation4 + $0x290] ss:$8 sps:$4 sm:$0xff]  }
  0x87   : > { %1601 = vmatprep.subr.bf16.mxu0 %v6047_v28  ;;  %v6140_v28 = vld [vmem:[#allocation4 + $0x2a4] ss:$8 sps:$4 sm:$0xff]  }
  0x8a   : > { %1602 = vmatpush1.bf16.msra.mxu0 %v6049_v29  ;;  %v6138_v29 = vld [vmem:[#allocation4 + $0x2a0] ss:$8 sps:$4 sm:$0xff]  }
  0x8b   : > { %1603 = vmatprep.subr.bf16.mxu0 %v6050_v30  ;;  %v6143_v30 = vld [vmem:[#allocation4 + $0x2b4] ss:$8 sps:$4 sm:$0xff]  }
  0x8e   : > { %1604 = vmatpush1.bf16.msra.mxu0 %v6052_v31  ;;  %v6141_v31 = vld [vmem:[#allocation4 + $0x2b0] ss:$8 sps:$4 sm:$0xff]  }
  0x8f   : > { %1605 = vmatprep.subr.bf16.mxu0 %v6053_v32  ;;  %v6146_v32 = vld [vmem:[#allocation4 + $0x2c4] ss:$8 sps:$4 sm:$0xff]  }
  0x92   : > { %1606 = vmatpush1.bf16.msra.mxu0 %v6055_v33  ;;  %v6144_v33 = vld [vmem:[#allocation4 + $0x2c0] ss:$8 sps:$4 sm:$0xff]  }
  0x93   : > { %1616 = vmatprep.subr.bf16.mxu0 %v6060_v34  ;;  %v6149_v34 = vld [vmem:[#allocation4 + $0x2d4] ss:$8 sps:$4 sm:$0xff]  }
  0x95   : > { %1608 = vmatmul.mubr.bf16.vlgmr.msra.gmra.mrb[0].mxu0 %v5189_v36  ;;  %v6152_v36 = vld [vmem:[#allocation4 + $0x2e4] ss:$8 sps:$4 sm:$0xff]  }
  0x96   : > { %1617 = vmatpush1.bf16.msra.mxu0 %v6058_v37  ;;  %1648 = vmatprep.mubr.bf16.mxu0 %v5192_v38  ;;  %v6150_v37 = vld [vmem:[#allocation4 + $0x2e0] ss:$8 sps:$4 sm:$0xff]   ;;  %v6155_v38 = vld [vmem:[#allocation4 + $0x2f4] ss:$8 sps:$4 sm:$0xff]  }
  0x97   : > { %1618 = vmatprep.subr.bf16.mxu0 %v6063_v39  ;;  %v6153_v39 = vld [vmem:[#allocation4 + $0x2f0] ss:$8 sps:$4 sm:$0xff]  }
  0x9a   : > { %1619 = vmatpush1.bf16.msra.mxu0 %v6061_v40  ;;  %v6160_v40 = vld [vmem:[#allocation4 + $0x304] ss:$8 sps:$4 sm:$0xff]  }
  0x9b   : > { %1620 = vmatprep.subr.bf16.mxu0 %v6066_v41  ;;  %v7094_v41 = vld [vmem:[%s7078_s11 + $0x18] sm:$0xff] }
  0x9e   : > { %1621 = vmatpush1.bf16.msra.mxu0 %v6064_v42  ;;  %v5193_v42 = vcombine.low %v7087_v6, %v7087_v6  ;;  %v6197_v6 = vld [vmem:[#allocation4 + $0x3d0] ss:$8 sps:$4 sm:$0xff]  }
  0x9f   : > { %1622 = vmatprep.subr.bf16.mxu0 %v6069_v43  ;;  %v6158_v43 = vld [vmem:[#allocation4 + $0x300] ss:$8 sps:$4 sm:$0xff]  }
  0xa2   : > { %1623 = vmatpush1.bf16.msra.mxu0 %v6067_v44  ;;  %v6163_v44 = vld [vmem:[#allocation4 + $0x314] ss:$8 sps:$4 sm:$0xff]  }
  0xa3   : > { %1624 = vmatprep.subr.bf16.mxu0 %v6072_v45  ;;  %v5196_v45 = vcombine.high %v7094_v41, %v7094_v41 }
  0xa6   : > { %1625 = vmatpush1.bf16.msra.mxu0 %v6070_v46  ;;  %v6161_v46 = vld [vmem:[#allocation4 + $0x310] ss:$8 sps:$4 sm:$0xff]  }
  0xa7   : > { %1626 = vmatprep.subr.bf16.mxu0 %v6075_v47  ;;  %v6166_v47 = vld [vmem:[#allocation4 + $0x324] ss:$8 sps:$4 sm:$0xff]  }
  0xaa   : > { %1627 = vmatpush1.bf16.msra.mxu0 %v6073_v48  ;;  %v6164_v48 = vld [vmem:[#allocation4 + $0x320] ss:$8 sps:$4 sm:$0xff]  }
  0xab   : > { %1628 = vmatprep.subr.bf16.mxu0 %v6078_v49  ;;  %v6169_v49 = vld [vmem:[#allocation4 + $0x334] ss:$8 sps:$4 sm:$0xff]  }
  0xae   : > { %1629 = vmatpush1.bf16.msra.mxu0 %v6076_v50  ;;  %v6167_v50 = vld [vmem:[#allocation4 + $0x330] ss:$8 sps:$4 sm:$0xff]  }
  0xaf   : > { %1630 = vmatprep.subr.bf16.mxu0 %v6081_v51  ;;  %v6172_v51 = vld [vmem:[#allocation4 + $0x344] ss:$8 sps:$4 sm:$0xff]  }
  0xb2   : > { %1631 = vmatpush1.bf16.msra.mxu0 %v6079_v52  ;;  %v6170_v52 = vld [vmem:[#allocation4 + $0x340] ss:$8 sps:$4 sm:$0xff]  }
  0xb3   : > { %1632 = vmatprep.subr.bf16.mxu0 %v6084_v53  ;;  %v6175_v53 = vld [vmem:[#allocation4 + $0x354] ss:$8 sps:$4 sm:$0xff]  }
  0xb6   : > { %1633 = vmatpush1.bf16.msra.mxu0 %v6082_v54  ;;  %v6173_v54 = vld [vmem:[#allocation4 + $0x350] ss:$8 sps:$4 sm:$0xff]  }
  0xb7   : > { %1634 = vmatprep.subr.bf16.mxu0 %v6087_v55  ;;  %v6178_v55 = vld [vmem:[#allocation4 + $0x364] ss:$8 sps:$4 sm:$0xff]  }
  0xba   : > { %1635 = vmatpush1.bf16.msra.mxu0 %v6085_v56  ;;  %v6176_v56 = vld [vmem:[#allocation4 + $0x360] ss:$8 sps:$4 sm:$0xff]  }
  0xbb   : > { %1636 = vmatprep.subr.bf16.mxu0 %v6090_v57  ;;  %v6181_v57 = vld [vmem:[#allocation4 + $0x374] ss:$8 sps:$4 sm:$0xff]  }
  0xbe   : > { %1637 = vmatpush1.bf16.msra.mxu0 %v6088_v58  ;;  %v6179_v58 = vld [vmem:[#allocation4 + $0x370] ss:$8 sps:$4 sm:$0xff]  }
  0xbf   : > { %1638 = vmatprep.subr.bf16.mxu0 %v6093_v59  ;;  %v6184_v59 = vld [vmem:[#allocation4 + $0x384] ss:$8 sps:$4 sm:$0xff]  }
  0xc2   : > { %1639 = vmatpush1.bf16.msra.mxu0 %v6091_v60  ;;  %v6182_v60 = vld [vmem:[#allocation4 + $0x380] ss:$8 sps:$4 sm:$0xff]  }
  0xc3   : > { %1640 = vmatprep.subr.bf16.mxu0 %v6096_v61  ;;  %v6187_v61 = vld [vmem:[#allocation4 + $0x394] ss:$8 sps:$4 sm:$0xff]  }
  0xc6   : > { %1641 = vmatpush1.bf16.msra.mxu0 %v6094_v62  ;;  %v6185_v62 = vld [vmem:[#allocation4 + $0x390] ss:$8 sps:$4 sm:$0xff]  }
  0xc7   : > { %1642 = vmatprep.subr.bf16.mxu0 %v6099_v63  ;;  %v6190_v63 = vld [vmem:[#allocation4 + $0x3a4] ss:$8 sps:$4 sm:$0xff]  }
  0xca   : > { %1643 = vmatpush1.bf16.msra.mxu0 %v6097_v0  ;;  %v6188_v0 = vld [vmem:[#allocation4 + $0x3a0] ss:$8 sps:$4 sm:$0xff]  }
  0xcb   : > { %1644 = vmatprep.subr.bf16.mxu0 %v6102_v1  ;;  %v6193_v1 = vld [vmem:[#allocation4 + $0x3b4] ss:$8 sps:$4 sm:$0xff]  }
  0xce   : > { %1645 = vmatpush1.bf16.msra.mxu0 %v6100_v2  ;;  %v6191_v2 = vld [vmem:[#allocation4 + $0x3b0] ss:$8 sps:$4 sm:$0xff]  }
  0xcf   : > { %1646 = vmatprep.subr.bf16.mxu0 %v6105_v3  ;;  %v6196_v3 = vld [vmem:[#allocation4 + $0x3c4] ss:$8 sps:$4 sm:$0xff]  }
  0xd2   : > { %1647 = vmatpush1.bf16.msra.mxu0 %v6103_v4  ;;  %v6194_v4 = vld [vmem:[#allocation4 + $0x3c0] ss:$8 sps:$4 sm:$0xff]  }
  0xd3   : > { %1657 = vmatprep.subr.bf16.mxu0 %v6110_v5  ;;  %v6199_v5 = vld [vmem:[#allocation4 + $0x3d4] ss:$8 sps:$4 sm:$0xff]  }
  0xd5   : > { %1649 = vmatmul.mubr.bf16.vlgmr.msra.gmra.mrb[0].mxu0 %v5191_v7  ;;  %v6202_v7 = vld [vmem:[#allocation4 + $0x3e4] ss:$8 sps:$4 sm:$0xff]  }
  0xd6   : > { %1658 = vmatpush1.bf16.msra.mxu0 %v6108_v8  ;;  %1689 = vmatprep.mubr.bf16.mxu0 %v5194_v10  ;;  %v6200_v8 = vld [vmem:[#allocation4 + $0x3e0] ss:$8 sps:$4 sm:$0xff]   ;;  %v6203_v10 = vld [vmem:[#allocation4 + $0x3f0] ss:$8 sps:$4 sm:$0xff]  }
  0xd7   : > { %1659 = vmatprep.subr.bf16.mxu0 %v6113_v9  ;;  %v6205_v9 = vld [vmem:[#allocation4 + $0x3f4] ss:$8 sps:$4 sm:$0xff]  }
  0xda   : > { %1660 = vmatpush1.bf16.msra.mxu0 %v6111_v11  ;;  %v6210_v11 = vld [vmem:[#allocation4 + $0x404] ss:$8 sps:$4 sm:$0xff]  }
  0xdb   : > { %1661 = vmatprep.subr.bf16.mxu0 %v6116_v12  ;;  %v7101_v12 = vld [vmem:[%s7078_s11 + $0x20] sm:$0xff] }
  0xde   : > { %1662 = vmatpush1.bf16.msra.mxu0 %v6114_v13  ;;  %v6208_v13 = vld [vmem:[#allocation4 + $0x400] ss:$8 sps:$4 sm:$0xff]  }
  0xdf   : > { %1663 = vmatprep.subr.bf16.mxu0 %v6119_v14  ;;  %v5195_v14 = vcombine.low %v7094_v41, %v7094_v41  ;;  %v6231_v41 = vld [vmem:[#allocation4 + $0x474] ss:$8 sps:$4 sm:$0xff]  }
  0xe2   : > { %1664 = vmatpush1.bf16.msra.mxu0 %v6117_v15  ;;  %v6213_v15 = vld [vmem:[#allocation4 + $0x414] ss:$8 sps:$4 sm:$0xff]  }
  0xe3   : > { %1665 = vmatprep.subr.bf16.mxu0 %v6122_v16  ;;  %v5198_v16 = vcombine.high %v7101_v12, %v7101_v12 }
  0xe6   : > { %1666 = vmatpush1.bf16.msra.mxu0 %v6120_v17  ;;  %v6308_v17 = vld [vmem:[#allocation7 + $0x4] ss:$48 sps:$4 sm:$0xff]  }
  0xe7   : > { %1667 = vmatprep.subr.bf16.mxu0 %v6125_v18  ;;  %v6310_v18 = vld [vmem:[#allocation7] ss:$48 sps:$4 sm:$0xff]   ;;  %3041 = vmatprep.subr.bf16.mxu1 %v6308_v17 }
  0xe8   : > { %3042 = vmatpush1.bf16.msra.mxu1 %v6310_v18  ;;  %v6261_v17 = vld [vmem:[#allocation4 + $0x510] ss:$8 sps:$4 sm:$0xff]   ;;  %v6266_v18 = vld [vmem:[#allocation4 + $0x524] ss:$8 sps:$4 sm:$0xff]  }
  0xea   : > { %1668 = vmatpush1.bf16.msra.mxu0 %v6123_v19  ;;  %v6311_v19 = vld [vmem:[#allocation7 + $0x64] ss:$48 sps:$4 sm:$0xff]  }
  0xeb   : > { %1669 = vmatprep.subr.bf16.mxu0 %v6128_v20  ;;  %v6211_v20 = vld [vmem:[#allocation4 + $0x410] ss:$8 sps:$4 sm:$0xff]   ;;  %3043 = vmatprep.subr.bf16.mxu1 %v6311_v19  ;;  %v6264_v19 = vld [vmem:[#allocation4 + $0x520] ss:$8 sps:$4 sm:$0xff]  }
  0xee   : > { %1670 = vmatpush1.bf16.msra.mxu0 %v6126_v21  ;;  %v6216_v21 = vld [vmem:[#allocation4 + $0x424] ss:$8 sps:$4 sm:$0xff]  }
  0xef   : > { %1671 = vmatprep.subr.bf16.mxu0 %v6131_v22  ;;  %v6313_v22 = vld [vmem:[#allocation7 + $0x60] ss:$48 sps:$4 sm:$0xff]  }
  0xf0   : > { %3044 = vmatpush1.bf16.msra.mxu1 %v6313_v22  ;;  %v6270_v22 = vld [vmem:[#allocation4 + $0x540] ss:$8 sps:$4 sm:$0xff]  }
  0xf2   : > { %1672 = vmatpush1.bf16.msra.mxu0 %v6129_v23  ;;  %v6314_v23 = vld [vmem:[#allocation7 + $0xc4] ss:$48 sps:$4 sm:$0xff]  }
  0xf3   : > { %1673 = vmatprep.subr.bf16.mxu0 %v6134_v24  ;;  %v6214_v24 = vld [vmem:[#allocation4 + $0x420] ss:$8 sps:$4 sm:$0xff]   ;;  %3045 = vmatprep.subr.bf16.mxu1 %v6314_v23  ;;  %v6275_v23 = vld [vmem:[#allocation4 + $0x554] ss:$8 sps:$4 sm:$0xff]  }
  0xf6   : > { %1674 = vmatpush1.bf16.msra.mxu0 %v6132_v25  ;;  %v6219_v25 = vld [vmem:[#allocation4 + $0x434] ss:$8 sps:$4 sm:$0xff]  }
  0xf7   : > { %1675 = vmatprep.subr.bf16.mxu0 %v6137_v26  ;;  %v6316_v26 = vld [vmem:[#allocation7 + $0xc0] ss:$48 sps:$4 sm:$0xff]  }
  0xf8   : > { %3046 = vmatpush1.bf16.msra.mxu1 %v6316_v26  ;;  %v6276_v26 = vld [vmem:[#allocation4 + $0x560] ss:$8 sps:$4 sm:$0xff]  }
  0xfa   : > { %1676 = vmatpush1.bf16.msra.mxu0 %v6135_v27  ;;  %v6317_v27 = vld [vmem:[#allocation7 + $0x124] ss:$48 sps:$4 sm:$0xff]  }
  0xfb   : > { %1677 = vmatprep.subr.bf16.mxu0 %v6140_v28  ;;  %v6217_v28 = vld [vmem:[#allocation4 + $0x430] ss:$8 sps:$4 sm:$0xff]   ;;  %3047 = vmatprep.subr.bf16.mxu1 %v6317_v27  ;;  %v6281_v27 = vld [vmem:[#allocation4 + $0x574] ss:$8 sps:$4 sm:$0xff]  }
  0xfe   : > { %1678 = vmatpush1.bf16.msra.mxu0 %v6138_v29  ;;  %v6222_v29 = vld [vmem:[#allocation4 + $0x444] ss:$8 sps:$4 sm:$0xff]  }
  0xff   : > { %1679 = vmatprep.subr.bf16.mxu0 %v6143_v30  ;;  %v6319_v30 = vld [vmem:[#allocation7 + $0x120] ss:$48 sps:$4 sm:$0xff]  }
 0x100   : > { %3048 = vmatpush1.bf16.msra.mxu1 %v6319_v30  ;;  %v6282_v30 = vld [vmem:[#allocation4 + $0x580] ss:$8 sps:$4 sm:$0xff]  }
 0x102   : > { %1680 = vmatpush1.bf16.msra.mxu0 %v6141_v31  ;;  %v6320_v31 = vld [vmem:[#allocation7 + $0x184] ss:$48 sps:$4 sm:$0xff]  }
 0x103   : > { %1681 = vmatprep.subr.bf16.mxu0 %v6146_v32  ;;  %v6220_v32 = vld [vmem:[#allocation4 + $0x440] ss:$8 sps:$4 sm:$0xff]   ;;  %3049 = vmatprep.subr.bf16.mxu1 %v6320_v31  ;;  %v6287_v31 = vld [vmem:[#allocation4 + $0x594] ss:$8 sps:$4 sm:$0xff]  }
 0x106   : > { %1682 = vmatpush1.bf16.msra.mxu0 %v6144_v33  ;;  %v6225_v33 = vld [vmem:[#allocation4 + $0x454] ss:$8 sps:$4 sm:$0xff]  }
 0x107   : > { %1683 = vmatprep.subr.bf16.mxu0 %v6149_v34  ;;  %v6322_v34 = vld [vmem:[#allocation7 + $0x180] ss:$48 sps:$4 sm:$0xff]  }
 0x108   : > { %3050 = vmatpush1.bf16.msra.mxu1 %v6322_v34  ;;  %v6288_v34 = vld [vmem:[#allocation4 + $0x5a0] ss:$8 sps:$4 sm:$0xff]  }
 0x10a   : > { %1684 = vmatpush1.bf16.msra.mxu0 %v6147_v35  ;;  %v6323_v35 = vld [vmem:[#allocation7 + $0x1e4] ss:$48 sps:$4 sm:$0xff]  }
 0x10b   : > { %1685 = vmatprep.subr.bf16.mxu0 %v6152_v36  ;;  %v6223_v36 = vld [vmem:[#allocation4 + $0x450] ss:$8 sps:$4 sm:$0xff]   ;;  %3051 = vmatprep.subr.bf16.mxu1 %v6323_v35  ;;  %v6293_v35 = vld [vmem:[#allocation4 + $0x5b4] ss:$8 sps:$4 sm:$0xff]  }
 0x10e   : > { %1686 = vmatpush1.bf16.msra.mxu0 %v6150_v37  ;;  %v6228_v37 = vld [vmem:[#allocation4 + $0x464] ss:$8 sps:$4 sm:$0xff]  }
 0x10f   : > { %1687 = vmatprep.subr.bf16.mxu0 %v6155_v38  ;;  %v6325_v38 = vld [vmem:[#allocation7 + $0x1e0] ss:$48 sps:$4 sm:$0xff]  }
 0x110   : > { %3052 = vmatpush1.bf16.msra.mxu1 %v6325_v38  ;;  %v6294_v38 = vld [vmem:[#allocation4 + $0x5c0] ss:$8 sps:$4 sm:$0xff]  }
 0x112   : > { %1688 = vmatpush1.bf16.msra.mxu0 %v6153_v39  ;;  %v6326_v39 = vld [vmem:[#allocation7 + $0x244] ss:$48 sps:$4 sm:$0xff]  }
 0x113   : > { %1698 = vmatprep.subr.bf16.mxu0 %v6160_v40  ;;  %v6226_v40 = vld [vmem:[#allocation4 + $0x460] ss:$8 sps:$4 sm:$0xff]   ;;  %3053 = vmatprep.subr.bf16.mxu1 %v6326_v39  ;;  %v6299_v39 = vld [vmem:[#allocation4 + $0x5d4] ss:$8 sps:$4 sm:$0xff]  }
 0x115   : > { %1690 = vmatmul.mubr.bf16.vlgmr.msra.gmra.mrb[0].mxu0 %v5193_v42  ;;  %v6328_v42 = vld [vmem:[#allocation7 + $0x240] ss:$48 sps:$4 sm:$0xff]  }
 0x116   : > { %1699 = vmatpush1.bf16.msra.mxu0 %v6158_v43  ;;  %1730 = vmatprep.mubr.bf16.mxu0 %v5196_v45  ;;  %v6329_v43 = vld [vmem:[#allocation7 + $0x2a4] ss:$48 sps:$4 sm:$0xff]  }
 0x117   : > { %1700 = vmatprep.subr.bf16.mxu0 %v6163_v44  ;;  %v6229_v44 = vld [vmem:[#allocation4 + $0x470] ss:$8 sps:$4 sm:$0xff]   ;;  %v6234_v45 = vld [vmem:[#allocation4 + $0x484] ss:$8 sps:$4 sm:$0xff]   ;;  %3054 = vmatpush1.bf16.msra.mxu1 %v6328_v42  ;;  %v6300_v42 = vld [vmem:[#allocation4 + $0x5e0] ss:$8 sps:$4 sm:$0xff]  }
 0x118   : > { %3055 = vmatprep.subr.bf16.mxu1 %v6329_v43  ;;  %v6305_v43 = vld [vmem:[#allocation4 + $0x5f4] ss:$8 sps:$4 sm:$0xff]  }
 0x11a   : > { %1701 = vmatpush1.bf16.msra.mxu0 %v6161_v46  ;;  %v6331_v46 = vld [vmem:[#allocation7 + $0x2a0] ss:$48 sps:$4 sm:$0xff]  }
 0x11b   : > { %1702 = vmatprep.subr.bf16.mxu0 %v6166_v47  ;;  %v6332_v47 = vld [vmem:[#allocation7 + $0x304] ss:$48 sps:$4 sm:$0xff]   ;;  %3056 = vmatpush1.bf16.msra.mxu1 %v6331_v46 }
 0x11c   : > { %3057 = vmatprep.subr.bf16.mxu1 %v6332_v47  ;;  %v6350_v46 = vld [vmem:[#allocation7 + $0x544] ss:$48 sps:$4 sm:$0xff]   ;;  %v6352_v47 = vld [vmem:[#allocation7 + $0x540] ss:$48 sps:$4 sm:$0xff]  }
 0x11e   : > { %1703 = vmatpush1.bf16.msra.mxu0 %v6164_v48  ;;  %v6232_v48 = vld [vmem:[#allocation4 + $0x480] ss:$8 sps:$4 sm:$0xff]  }
 0x11f   : > { %1704 = vmatprep.subr.bf16.mxu0 %v6169_v49  ;;  %v6237_v49 = vld [vmem:[#allocation4 + $0x494] ss:$8 sps:$4 sm:$0xff]  }
 0x122   : > { %1705 = vmatpush1.bf16.msra.mxu0 %v6167_v50  ;;  %v6334_v50 = vld [vmem:[#allocation7 + $0x300] ss:$48 sps:$4 sm:$0xff]  }
 0x123   : > { %1706 = vmatprep.subr.bf16.mxu0 %v6172_v51  ;;  %v6335_v51 = vld [vmem:[#allocation7 + $0x364] ss:$48 sps:$4 sm:$0xff]   ;;  %3058 = vmatpush1.bf16.msra.mxu1 %v6334_v50  ;;  %v6358_v50 = vld [vmem:[#allocation7 + $0xc] ss:$48 sps:$4 sm:$0xff]  }
 0x124   : > { %3059 = vmatprep.subr.bf16.mxu1 %v6335_v51  ;;  %v563_v51 = vlaneseq }
 0x126   : > { %1707 = vmatpush1.bf16.msra.mxu0 %v6170_v52  ;;  %v6235_v52 = vld [vmem:[#allocation4 + $0x490] ss:$8 sps:$4 sm:$0xff]  }
 0x127   : > { %1708 = vmatprep.subr.bf16.mxu0 %v6175_v53  ;;  %v6240_v53 = vld [vmem:[#allocation4 + $0x4a4] ss:$8 sps:$4 sm:$0xff]  }
 0x12a   : > { %1709 = vmatpush1.bf16.msra.mxu0 %v6173_v54  ;;  %v6337_v54 = vld [vmem:[#allocation7 + $0x360] ss:$48 sps:$4 sm:$0xff]  }
 0x12b   : > { %1710 = vmatprep.subr.bf16.mxu0 %v6178_v55  ;;  %v6338_v55 = vld [vmem:[#allocation7 + $0x3c4] ss:$48 sps:$4 sm:$0xff]   ;;  %3060 = vmatpush1.bf16.msra.mxu1 %v6337_v54  ;;  %v561_v54 = vld [vmem:[%s7660_s2] sm:$0x3] }
 0x12c   : > { %3061 = vmatprep.subr.bf16.mxu1 %v6338_v55 }
 0x12e   : > { %1711 = vmatpush1.bf16.msra.mxu0 %v6176_v56  ;;  %v6238_v56 = vld [vmem:[#allocation4 + $0x4a0] ss:$8 sps:$4 sm:$0xff]  }
 0x12f   : > { %1712 = vmatprep.subr.bf16.mxu0 %v6181_v57  ;;  %v6243_v57 = vld [vmem:[#allocation4 + $0x4b4] ss:$8 sps:$4 sm:$0xff]  }
 0x132   : > { %1713 = vmatpush1.bf16.msra.mxu0 %v6179_v58  ;;  %v6340_v58 = vld [vmem:[#allocation7 + $0x3c0] ss:$48 sps:$4 sm:$0xff]  }
 0x133   : > { %1714 = vmatprep.subr.bf16.mxu0 %v6184_v59  ;;  %v6341_v59 = vld [vmem:[#allocation7 + $0x424] ss:$48 sps:$4 sm:$0xff]   ;;  %3062 = vmatpush1.bf16.msra.mxu1 %v6340_v58 }
 0x134   : > { %3063 = vmatprep.subr.bf16.mxu1 %v6341_v59 }
 0x136   : > { %1715 = vmatpush1.bf16.msra.mxu0 %v6182_v60  ;;  %v6241_v60 = vld [vmem:[#allocation4 + $0x4b0] ss:$8 sps:$4 sm:$0xff]  }
 0x137   : > { %1716 = vmatprep.subr.bf16.mxu0 %v6187_v61  ;;  %v6246_v61 = vld [vmem:[#allocation4 + $0x4c4] ss:$8 sps:$4 sm:$0xff]  }
 0x13a   : > { %1717 = vmatpush1.bf16.msra.mxu0 %v6185_v62  ;;  %v6343_v62 = vld [vmem:[#allocation7 + $0x420] ss:$48 sps:$4 sm:$0xff]  }
 0x13b   : > { %1718 = vmatprep.subr.bf16.mxu0 %v6190_v63  ;;  %v6344_v63 = vld [vmem:[#allocation7 + $0x484] ss:$48 sps:$4 sm:$0xff]   ;;  %3064 = vmatpush1.bf16.msra.mxu1 %v6343_v62 }
 0x13c   : > { %3065 = vmatprep.subr.bf16.mxu1 %v6344_v63 }
 0x13e   : > { %1719 = vmatpush1.bf16.msra.mxu0 %v6188_v0  ;;  %v6244_v0 = vld [vmem:[#allocation4 + $0x4c0] ss:$8 sps:$4 sm:$0xff]  }
 0x13f   : > { %1720 = vmatprep.subr.bf16.mxu0 %v6193_v1  ;;  %v6249_v1 = vld [vmem:[#allocation4 + $0x4d4] ss:$8 sps:$4 sm:$0xff]  }
 0x142   : > { %1721 = vmatpush1.bf16.msra.mxu0 %v6191_v2  ;;  %v6346_v2 = vld [vmem:[#allocation7 + $0x480] ss:$48 sps:$4 sm:$0xff]  }
 0x143   : > { %1722 = vmatprep.subr.bf16.mxu0 %v6196_v3  ;;  %v6347_v3 = vld [vmem:[#allocation7 + $0x4e4] ss:$48 sps:$4 sm:$0xff]   ;;  %3066 = vmatpush1.bf16.msra.mxu1 %v6346_v2 }
 0x144   : > { %3067 = vmatprep.subr.bf16.mxu1 %v6347_v3  ;;  %v6356_v3 = vld [vmem:[#allocation7 + $0x8] ss:$48 sps:$4 sm:$0xff]  }
 0x146   : > { %1723 = vmatpush1.bf16.msra.mxu0 %v6194_v4  ;;  %v6247_v4 = vld [vmem:[#allocation4 + $0x4d0] ss:$8 sps:$4 sm:$0xff]  }
 0x147   : > { %1724 = vmatprep.subr.bf16.mxu0 %v6199_v5  ;;  %v6252_v5 = vld [vmem:[#allocation4 + $0x4e4] ss:$8 sps:$4 sm:$0xff]  }
 0x14a   : > { %1725 = vmatpush1.bf16.msra.mxu0 %v6197_v6  ;;  %v6349_v6 = vld [vmem:[#allocation7 + $0x4e0] ss:$48 sps:$4 sm:$0xff]  }
 0x14b   : > { %1726 = vmatprep.subr.bf16.mxu0 %v6202_v7  ;;  %v6250_v7 = vld [vmem:[#allocation4 + $0x4e0] ss:$8 sps:$4 sm:$0xff]   ;;  %3068 = vmatpush1.bf16.msra.mxu1 %v6349_v6 }
 0x14c   : > { %3069 = vmatprep.subr.bf16.mxu1 %v6350_v46  ;;  %v6359_v6 = vld [vmem:[#allocation7 + $0x68] ss:$48 sps:$4 sm:$0xff]   ;;  %v6419_v46 = vld [vmem:[#allocation7 + $0x1f0] ss:$48 sps:$4 sm:$0xff]  }
 0x14e   : > { %1727 = vmatpush1.bf16.msra.mxu0 %v6200_v8  ;;  %v6255_v8 = vld [vmem:[#allocation4 + $0x4f4] ss:$8 sps:$4 sm:$0xff]  }
 0x14f   : > { %1728 = vmatprep.subr.bf16.mxu0 %v6205_v9  ;;  %v6253_v9 = vld [vmem:[#allocation4 + $0x4f0] ss:$8 sps:$4 sm:$0xff]   ;;  %3070 = vmatpush1.bf16.msra.mxu1 %v6352_v47  ;;  %v6424_v47 = vld [vmem:[#allocation7 + $0x254] ss:$48 sps:$4 sm:$0xff]  }
 0x152   : > { %1729 = vmatpush1.bf16.msra.mxu0 %v6203_v10  ;;  %v6260_v10 = vld [vmem:[#allocation4 + $0x504] ss:$8 sps:$4 sm:$0xff]  }
 0x153   : > { %1739 = vmatprep.subr.bf16.mxu0 %v6210_v11  ;;  %v7108_v11 = vld [vmem:[%s7078_s11 + $0x28] sm:$0xff] }
 0x155   : > { %1731 = vmatmul.mubr.bf16.vlgmr.msra.gmra.mrb[0].mxu0 %v5195_v14  ;;  %v6258_v14 = vld [vmem:[#allocation4 + $0x500] ss:$8 sps:$4 sm:$0xff]  }
 0x156   : > { %1740 = vmatpush1.bf16.msra.mxu0 %v6208_v13  ;;  %1771 = vmatprep.mubr.bf16.mxu0 %v5198_v16  ;;  %v5197_v13 = vcombine.low %v7101_v12, %v7101_v12  ;;  %v6263_v16 = vld [vmem:[#allocation4 + $0x514] ss:$8 sps:$4 sm:$0xff]   ;;  %v6272_v12 = vld [vmem:[#allocation4 + $0x544] ss:$8 sps:$4 sm:$0xff]  }
 0x157   : > { %1741 = vmatprep.subr.bf16.mxu0 %v6213_v15  ;;  %v5200_v15 = vcombine.high %v7108_v11, %v7108_v11 }
 0x15a   : > { %1742 = vmatpush1.bf16.msra.mxu0 %v6211_v20  ;;  %v6269_v20 = vld [vmem:[#allocation4 + $0x534] ss:$8 sps:$4 sm:$0xff]  }
 0x15b   : > { %1743 = vmatprep.subr.bf16.mxu0 %v6216_v21  ;;  %v6267_v21 = vld [vmem:[#allocation4 + $0x530] ss:$8 sps:$4 sm:$0xff]  }
 0x15e   : > { %1744 = vmatpush1.bf16.msra.mxu0 %v6214_v24  ;;  %v6273_v24 = vld [vmem:[#allocation4 + $0x550] ss:$8 sps:$4 sm:$0xff]  }
 0x15f   : > { %1745 = vmatprep.subr.bf16.mxu0 %v6219_v25  ;;  %v6278_v25 = vld [vmem:[#allocation4 + $0x564] ss:$8 sps:$4 sm:$0xff]  }
 0x162   : > { %1746 = vmatpush1.bf16.msra.mxu0 %v6217_v28  ;;  %v6279_v28 = vld [vmem:[#allocation4 + $0x570] ss:$8 sps:$4 sm:$0xff]  }
 0x163   : > { %1747 = vmatprep.subr.bf16.mxu0 %v6222_v29  ;;  %v6284_v29 = vld [vmem:[#allocation4 + $0x584] ss:$8 sps:$4 sm:$0xff]  }
 0x166   : > { %1748 = vmatpush1.bf16.msra.mxu0 %v6220_v32  ;;  %v6285_v32 = vld [vmem:[#allocation4 + $0x590] ss:$8 sps:$4 sm:$0xff]  }
 0x167   : > { %1749 = vmatprep.subr.bf16.mxu0 %v6225_v33  ;;  %v6290_v33 = vld [vmem:[#allocation4 + $0x5a4] ss:$8 sps:$4 sm:$0xff]  }
 0x16a   : > { %1750 = vmatpush1.bf16.msra.mxu0 %v6223_v36  ;;  %v6291_v36 = vld [vmem:[#allocation4 + $0x5b0] ss:$8 sps:$4 sm:$0xff]  }
 0x16b   : > { %1751 = vmatprep.subr.bf16.mxu0 %v6228_v37  ;;  %v6296_v37 = vld [vmem:[#allocation4 + $0x5c4] ss:$8 sps:$4 sm:$0xff]  }
 0x16e   : > { %1752 = vmatpush1.bf16.msra.mxu0 %v6226_v40  ;;  %v6297_v40 = vld [vmem:[#allocation4 + $0x5d0] ss:$8 sps:$4 sm:$0xff]  }
 0x16f   : > { %1753 = vmatprep.subr.bf16.mxu0 %v6231_v41  ;;  %v6302_v41 = vld [vmem:[#allocation4 + $0x5e4] ss:$8 sps:$4 sm:$0xff]  }
 0x172   : > { %1754 = vmatpush1.bf16.msra.mxu0 %v6229_v44  ;;  %v6303_v44 = vld [vmem:[#allocation4 + $0x5f0] ss:$8 sps:$4 sm:$0xff]  }
 0x173   : > { %1755 = vmatprep.subr.bf16.mxu0 %v6234_v45  ;;  %v5199_v45 = vcombine.low %v7108_v11, %v7108_v11  ;;  %v6370_v11 = vld [vmem:[#allocation7 + $0x18c] ss:$48 sps:$4 sm:$0xff]  }
 0x176   : > { %1756 = vmatpush1.bf16.msra.mxu0 %v6232_v48  ;;  %v6353_v48 = vld [vmem:[#allocation7 + $0x5a4] ss:$48 sps:$4 sm:$0xff]  }
 0x177   : > { %1757 = vmatprep.subr.bf16.mxu0 %v6237_v49  ;;  %v6355_v49 = vld [vmem:[#allocation7 + $0x5a0] ss:$48 sps:$4 sm:$0xff]   ;;  %3071 = vmatprep.subr.bf16.mxu1 %v6353_v48 }
 0x178   : > { %3072 = vmatpush1.bf16.msra.mxu1 %v6355_v49  ;;  %v6422_v48 = vld [vmem:[#allocation7 + $0x250] ss:$48 sps:$4 sm:$0xff]   ;;  %v6427_v49 = vld [vmem:[#allocation7 + $0x2b4] ss:$48 sps:$4 sm:$0xff]  }
 0x179   : > { %3082 = vmatprep.subr.bf16.mxu1 %v6358_v50  ;;  %v6425_v50 = vld [vmem:[#allocation7 + $0x2b0] ss:$48 sps:$4 sm:$0xff]  }
 0x17a   : > { %1758 = vmatpush1.bf16.msra.mxu0 %v6235_v52  ;;  %v7116_v52 = vshrl.u32 %v563_v51, 7  ;;  %v6430_v51 = vld [vmem:[#allocation7 + $0x314] ss:$48 sps:$4 sm:$0xff]  }
 0x17b   : > { %1759 = vmatprep.subr.bf16.mxu0 %v6240_v53 }
 0x17c   : > { %v7119_v53 = vsub.s32 0, %v7116_v52  ;;  %v7125_v55 = vsub.s32 1, %v7116_v52 }
 0x17e   : > { %1760 = vmatpush1.bf16.msra.mxu0 %v6238_v56  ;;  %v566_v56 = vrot.slane %v561_v54, %v7119_v53 }
 0x17f   : > { %1761 = vmatprep.subr.bf16.mxu0 %v6243_v57  ;;  %v570_v57 = vrot.slane %v561_v54, %v7125_v55  ;;  %v6428_v54 = vld [vmem:[#allocation7 + $0x310] ss:$48 sps:$4 sm:$0xff]  }
 0x182   : > { %1762 = vmatpush1.bf16.msra.mxu0 %v6241_v60 }
 0x183   : > { %1763 = vmatprep.subr.bf16.mxu0 %v6246_v61 }
 0x186   : > { %1764 = vmatpush1.bf16.msra.mxu0 %v6244_v0 }
 0x187   : > { %1765 = vmatprep.subr.bf16.mxu0 %v6249_v1 }
 0x18a   : > { %1766 = vmatpush1.bf16.msra.mxu0 %v6247_v4 }
 0x18b   : > { %1767 = vmatprep.subr.bf16.mxu0 %v6252_v5  ;;  %v6361_v5 = vld [vmem:[#allocation7 + $0x6c] ss:$48 sps:$4 sm:$0xff]  }
 0x18e   : > { %1768 = vmatpush1.bf16.msra.mxu0 %v6250_v7  ;;  %v6364_v7 = vld [vmem:[#allocation7 + $0xcc] ss:$48 sps:$4 sm:$0xff]  }
 0x18f   : > { %1769 = vmatprep.subr.bf16.mxu0 %v6255_v8  ;;  %v6362_v8 = vld [vmem:[#allocation7 + $0xc8] ss:$48 sps:$4 sm:$0xff]  }
 0x192   : > { %1770 = vmatpush1.bf16.msra.mxu0 %v6253_v9  ;;  %v6367_v9 = vld [vmem:[#allocation7 + $0x12c] ss:$48 sps:$4 sm:$0xff]  }
 0x193   : > { %1780 = vmatprep.subr.bf16.mxu0 %v6260_v10  ;;  %v6365_v10 = vld [vmem:[#allocation7 + $0x128] ss:$48 sps:$4 sm:$0xff]  }
 0x195   : > { %1772 = vmatmul.mubr.bf16.vlgmr.msra.gmra.mrb[0].mxu0 %v5197_v13  ;;  %v6368_v13 = vld [vmem:[#allocation7 + $0x188] ss:$48 sps:$4 sm:$0xff]  }
 0x196   : > { %1781 = vmatpush1.bf16.msra.mxu0 %v6258_v14  ;;  %1812 = vmatprep.mubr.bf16.mxu0 %v5200_v15  ;;  %v6373_v14 = vld [vmem:[#allocation7 + $0x1ec] ss:$48 sps:$4 sm:$0xff]   ;;  %v6371_v15 = vld [vmem:[#allocation7 + $0x1e8] ss:$48 sps:$4 sm:$0xff]  }
 0x197   : > { %1782 = vmatprep.subr.bf16.mxu0 %v6263_v16  ;;  %v6376_v16 = vld [vmem:[#allocation7 + $0x24c] ss:$48 sps:$4 sm:$0xff]  }
 0x19a   : > { %1783 = vmatpush1.bf16.msra.mxu0 %v6261_v17  ;;  %v6374_v17 = vld [vmem:[#allocation7 + $0x248] ss:$48 sps:$4 sm:$0xff]  }
 0x19b   : > { %1784 = vmatprep.subr.bf16.mxu0 %v6266_v18  ;;  %v6379_v18 = vld [vmem:[#allocation7 + $0x2ac] ss:$48 sps:$4 sm:$0xff]  }
 0x19e   : > { %1785 = vmatpush1.bf16.msra.mxu0 %v6264_v19  ;;  %v6377_v19 = vld [vmem:[#allocation7 + $0x2a8] ss:$48 sps:$4 sm:$0xff]  }
 0x19f   : > { %1786 = vmatprep.subr.bf16.mxu0 %v6269_v20  ;;  %v6382_v20 = vld [vmem:[#allocation7 + $0x30c] ss:$48 sps:$4 sm:$0xff]  }
 0x1a2   : > { %1787 = vmatpush1.bf16.msra.mxu0 %v6267_v21  ;;  %v6380_v21 = vld [vmem:[#allocation7 + $0x308] ss:$48 sps:$4 sm:$0xff]  }
 0x1a3   : > { %1788 = vmatprep.subr.bf16.mxu0 %v6272_v12  ;;  %v6385_v12 = vld [vmem:[#allocation7 + $0x36c] ss:$48 sps:$4 sm:$0xff]  }
 0x1a6   : > { %1789 = vmatpush1.bf16.msra.mxu0 %v6270_v22  ;;  %v6383_v22 = vld [vmem:[#allocation7 + $0x368] ss:$48 sps:$4 sm:$0xff]  }
 0x1a7   : > { %1790 = vmatprep.subr.bf16.mxu0 %v6275_v23  ;;  %v6388_v23 = vld [vmem:[#allocation7 + $0x3cc] ss:$48 sps:$4 sm:$0xff]  }
 0x1aa   : > { %1791 = vmatpush1.bf16.msra.mxu0 %v6273_v24  ;;  %v6386_v24 = vld [vmem:[#allocation7 + $0x3c8] ss:$48 sps:$4 sm:$0xff]  }
 0x1ab   : > { %1792 = vmatprep.subr.bf16.mxu0 %v6278_v25  ;;  %v6391_v25 = vld [vmem:[#allocation7 + $0x42c] ss:$48 sps:$4 sm:$0xff]  }
 0x1ae   : > { %1793 = vmatpush1.bf16.msra.mxu0 %v6276_v26  ;;  %v6389_v26 = vld [vmem:[#allocation7 + $0x428] ss:$48 sps:$4 sm:$0xff]  }
 0x1af   : > { %1794 = vmatprep.subr.bf16.mxu0 %v6281_v27  ;;  %v6394_v27 = vld [vmem:[#allocation7 + $0x48c] ss:$48 sps:$4 sm:$0xff]  }
 0x1b2   : > { %1795 = vmatpush1.bf16.msra.mxu0 %v6279_v28  ;;  %v6392_v28 = vld [vmem:[#allocation7 + $0x488] ss:$48 sps:$4 sm:$0xff]  }
 0x1b3   : > { %1796 = vmatprep.subr.bf16.mxu0 %v6284_v29  ;;  %v6397_v29 = vld [vmem:[#allocation7 + $0x4ec] ss:$48 sps:$4 sm:$0xff]  }
 0x1b6   : > { %1797 = vmatpush1.bf16.msra.mxu0 %v6282_v30  ;;  %v6395_v30 = vld [vmem:[#allocation7 + $0x4e8] ss:$48 sps:$4 sm:$0xff]  }
 0x1b7   : > { %1798 = vmatprep.subr.bf16.mxu0 %v6287_v31  ;;  %v6400_v31 = vld [vmem:[#allocation7 + $0x54c] ss:$48 sps:$4 sm:$0xff]  }
 0x1ba   : > { %1799 = vmatpush1.bf16.msra.mxu0 %v6285_v32  ;;  %v6398_v32 = vld [vmem:[#allocation7 + $0x548] ss:$48 sps:$4 sm:$0xff]  }
 0x1bb   : > { %1800 = vmatprep.subr.bf16.mxu0 %v6290_v33  ;;  %v6403_v33 = vld [vmem:[#allocation7 + $0x5ac] ss:$48 sps:$4 sm:$0xff]  }
 0x1be   : > { %1801 = vmatpush1.bf16.msra.mxu0 %v6288_v34  ;;  %v6401_v34 = vld [vmem:[#allocation7 + $0x5a8] ss:$48 sps:$4 sm:$0xff]  }
 0x1bf   : > { %1802 = vmatprep.subr.bf16.mxu0 %v6293_v35  ;;  %v6406_v35 = vld [vmem:[#allocation7 + $0x14] ss:$48 sps:$4 sm:$0xff]  }
 0x1c2   : > { %1803 = vmatpush1.bf16.msra.mxu0 %v6291_v36  ;;  %v6404_v36 = vld [vmem:[#allocation7 + $0x10] ss:$48 sps:$4 sm:$0xff]  }
 0x1c3   : > { %1804 = vmatprep.subr.bf16.mxu0 %v6296_v37  ;;  %v6409_v37 = vld [vmem:[#allocation7 + $0x74] ss:$48 sps:$4 sm:$0xff]  }
 0x1c6   : > { %1805 = vmatpush1.bf16.msra.mxu0 %v6294_v38  ;;  %v6407_v38 = vld [vmem:[#allocation7 + $0x70] ss:$48 sps:$4 sm:$0xff]  }
 0x1c7   : > { %1806 = vmatprep.subr.bf16.mxu0 %v6299_v39  ;;  %v6412_v39 = vld [vmem:[#allocation7 + $0xd4] ss:$48 sps:$4 sm:$0xff]  }
 0x1ca   : > { %1807 = vmatpush1.bf16.msra.mxu0 %v6297_v40  ;;  %v6410_v40 = vld [vmem:[#allocation7 + $0xd0] ss:$48 sps:$4 sm:$0xff]  }
 0x1cb   : > { %1808 = vmatprep.subr.bf16.mxu0 %v6302_v41  ;;  %v6415_v41 = vld [vmem:[#allocation7 + $0x134] ss:$48 sps:$4 sm:$0xff]  }
 0x1ce   : > { %1809 = vmatpush1.bf16.msra.mxu0 %v6300_v42  ;;  %v6413_v42 = vld [vmem:[#allocation7 + $0x130] ss:$48 sps:$4 sm:$0xff]  }
 0x1cf   : > { %1810 = vmatprep.subr.bf16.mxu0 %v6305_v43  ;;  %v6418_v43 = vld [vmem:[#allocation7 + $0x194] ss:$48 sps:$4 sm:$0xff]  }
 0x1d2   : > { %1811 = vmatpush1.bf16.msra.mxu0 %v6303_v44  ;;  %v6416_v44 = vld [vmem:[#allocation7 + $0x190] ss:$48 sps:$4 sm:$0xff]  }
 0x1d5   : > { %1813 = vmatmul.mubr.bf16.vlgmr.msra.gmra.mrb[0].mxu0 %v5199_v45  ;;  %v6421_v45 = vld [vmem:[#allocation7 + $0x1f4] ss:$48 sps:$4 sm:$0xff]  }
 0x2a8   : > { %v1814_v58 = vpop.f32.mrb[0].mxu0 }
 0x2a9   : > { %v5878_v59 = vadd.f32 %v1814_v58, %v566_v56  ;;  %v1816_v60 = vpop.f32.mrb[1].mxu0  ;;  %v6433_v56 = vld [vmem:[#allocation7 + $0x374] ss:$48 sps:$4 sm:$0xff]  }
 0x2aa   : > { %v5879_v61 = vadd.f32 %v1816_v60, %v570_v57  ;;  %v1818_v62 = vpop.f32.mrb[2].mxu0  ;;  %v6431_v57 = vld [vmem:[#allocation7 + $0x370] ss:$48 sps:$4 sm:$0xff]   ;;  %v6436_v58 = vld [vmem:[#allocation7 + $0x3d4] ss:$48 sps:$4 sm:$0xff]  }
 0x2ab   : > { %v1821_v63 = vmax.f32 %v5878_v59, 0.0  ;;  %v1819_v0 = vpop.f32.mrb[3].mxu0  ;;  %v6434_v59 = vld [vmem:[#allocation7 + $0x3d0] ss:$48 sps:$4 sm:$0xff]   ;;  %v6439_v60 = vld [vmem:[#allocation7 + $0x434] ss:$48 sps:$4 sm:$0xff]  }
 0x2ac   : > { %v1822_v1 = vmax.f32 %v5879_v61, 0.0  ;;  %v6437_v61 = vld [vmem:[#allocation7 + $0x430] ss:$48 sps:$4 sm:$0xff]   ;;  %v6442_v62 = vld [vmem:[#allocation7 + $0x494] ss:$48 sps:$4 sm:$0xff]  }
 0x2ad   : > { %v7131_v4 = vpack.c.bf16 %v1821_v63, %v1821_v63  ;;  %v6440_v63 = vld [vmem:[#allocation7 + $0x490] ss:$48 sps:$4 sm:$0xff]   ;;  %v6445_v0 = vld [vmem:[#allocation7 + $0x4f4] ss:$48 sps:$4 sm:$0xff]  }
 0x2ae   : > { %v7129_v2 = vpack.c.bf16 %v1822_v1, %v1822_v1  ;;  %v6443_v1 = vld [vmem:[#allocation7 + $0x4f0] ss:$48 sps:$4 sm:$0xff]  }
 0x2b0   : > { %3073 = vmatprep.mubr.bf16.mxu1 %v7129_v2 }
 0x2b1   : > { %3074 = vmatmul.mubr.bf16.vlgmr.msra.gmra.mrb[0].mxu1 %v7131_v4 }
 0x2b2   : > { %3083 = vmatpush1.bf16.msra.mxu1 %v6356_v3  ;;  %3114 = vmatprep.mubr.bf16.mxu1 %v7129_v2  ;;  %v6448_v3 = vld [vmem:[#allocation7 + $0x554] ss:$48 sps:$4 sm:$0xff]  }
 0x2b3   : > { %3084 = vmatprep.subr.bf16.mxu1 %v6361_v5  ;;  %v6446_v5 = vld [vmem:[#allocation7 + $0x550] ss:$48 sps:$4 sm:$0xff]  }
 0x2b6   : > { %3085 = vmatpush1.bf16.msra.mxu1 %v6359_v6  ;;  %v6451_v6 = vld [vmem:[#allocation7 + $0x5b4] ss:$48 sps:$4 sm:$0xff]  }
 0x2b7   : > { %3086 = vmatprep.subr.bf16.mxu1 %v6364_v7  ;;  %v6449_v7 = vld [vmem:[#allocation7 + $0x5b0] ss:$48 sps:$4 sm:$0xff]  }
 0x2ba   : > { %3087 = vmatpush1.bf16.msra.mxu1 %v6362_v8  ;;  %v6454_v8 = vld [vmem:[#allocation7 + $0x1c] ss:$48 sps:$4 sm:$0xff]  }
 0x2bb   : > { %3088 = vmatprep.subr.bf16.mxu1 %v6367_v9  ;;  %v6452_v9 = vld [vmem:[#allocation7 + $0x18] ss:$48 sps:$4 sm:$0xff]  }
 0x2be   : > { %3089 = vmatpush1.bf16.msra.mxu1 %v6365_v10  ;;  %v6457_v10 = vld [vmem:[#allocation7 + $0x7c] ss:$48 sps:$4 sm:$0xff]  }
 0x2bf   : > { %3090 = vmatprep.subr.bf16.mxu1 %v6370_v11  ;;  %v6455_v11 = vld [vmem:[#allocation7 + $0x78] ss:$48 sps:$4 sm:$0xff]  }
 0x2c2   : > { %3091 = vmatpush1.bf16.msra.mxu1 %v6368_v13  ;;  %v6460_v13 = vld [vmem:[#allocation7 + $0xdc] ss:$48 sps:$4 sm:$0xff]  }
 0x2c3   : > { %3092 = vmatprep.subr.bf16.mxu1 %v6373_v14  ;;  %v6458_v14 = vld [vmem:[#allocation7 + $0xd8] ss:$48 sps:$4 sm:$0xff]  }
 0x2c6   : > { %3093 = vmatpush1.bf16.msra.mxu1 %v6371_v15  ;;  %v6463_v15 = vld [vmem:[#allocation7 + $0x13c] ss:$48 sps:$4 sm:$0xff]  }
 0x2c7   : > { %3094 = vmatprep.subr.bf16.mxu1 %v6376_v16  ;;  %v6461_v16 = vld [vmem:[#allocation7 + $0x138] ss:$48 sps:$4 sm:$0xff]  }
 0x2ca   : > { %3095 = vmatpush1.bf16.msra.mxu1 %v6374_v17  ;;  %v6466_v17 = vld [vmem:[#allocation7 + $0x19c] ss:$48 sps:$4 sm:$0xff]  }
 0x2cb   : > { %3096 = vmatprep.subr.bf16.mxu1 %v6379_v18  ;;  %v6464_v18 = vld [vmem:[#allocation7 + $0x198] ss:$48 sps:$4 sm:$0xff]  }
 0x2ce   : > { %3097 = vmatpush1.bf16.msra.mxu1 %v6377_v19  ;;  %v6469_v19 = vld [vmem:[#allocation7 + $0x1fc] ss:$48 sps:$4 sm:$0xff]  }
 0x2cf   : > { %3098 = vmatprep.subr.bf16.mxu1 %v6382_v20  ;;  %v6467_v20 = vld [vmem:[#allocation7 + $0x1f8] ss:$48 sps:$4 sm:$0xff]  }
 0x2d2   : > { %3099 = vmatpush1.bf16.msra.mxu1 %v6380_v21  ;;  %v6472_v21 = vld [vmem:[#allocation7 + $0x25c] ss:$48 sps:$4 sm:$0xff]  }
 0x2d3   : > { %3100 = vmatprep.subr.bf16.mxu1 %v6385_v12  ;;  %v6470_v12 = vld [vmem:[#allocation7 + $0x258] ss:$48 sps:$4 sm:$0xff]  }
 0x2d6   : > { %3101 = vmatpush1.bf16.msra.mxu1 %v6383_v22  ;;  %v6475_v22 = vld [vmem:[#allocation7 + $0x2bc] ss:$48 sps:$4 sm:$0xff]  }
 0x2d7   : > { %3102 = vmatprep.subr.bf16.mxu1 %v6388_v23  ;;  %v7141_v23 = vld [vmem:[%s7078_s11] sm:$0xff] }
 0x2da   : > { %3103 = vmatpush1.bf16.msra.mxu1 %v6386_v24  ;;  %v5592_v24 = vcombine.high %v7141_v23, %v7141_v23 }
 0x2db   : > { %3104 = vmatprep.subr.bf16.mxu1 %v6391_v25  ;;  %v6473_v25 = vld [vmem:[#allocation7 + $0x2b8] ss:$48 sps:$4 sm:$0xff]  }
 0x2dc   : > { %3471 = vmatprep.mubr.bf16.mxu0 %v5592_v24  ;;  %v6539_v24 = vld [vmem:[#allocation7 + $0x500] ss:$48 sps:$4 sm:$0xff]  }
 0x2de   : > { %3105 = vmatpush1.bf16.msra.mxu1 %v6389_v26  ;;  %v6478_v26 = vld [vmem:[#allocation7 + $0x31c] ss:$48 sps:$4 sm:$0xff]  }
 0x2df   : > { %3106 = vmatprep.subr.bf16.mxu1 %v6394_v27  ;;  %v6476_v27 = vld [vmem:[#allocation7 + $0x318] ss:$48 sps:$4 sm:$0xff]  }
 0x2e2   : > { %3107 = vmatpush1.bf16.msra.mxu1 %v6392_v28  ;;  %v6481_v28 = vld [vmem:[#allocation7 + $0x37c] ss:$48 sps:$4 sm:$0xff]  }
 0x2e3   : > { %3108 = vmatprep.subr.bf16.mxu1 %v6397_v29  ;;  %v6479_v29 = vld [vmem:[#allocation7 + $0x378] ss:$48 sps:$4 sm:$0xff]  }
 0x2e6   : > { %3109 = vmatpush1.bf16.msra.mxu1 %v6395_v30  ;;  %v6484_v30 = vld [vmem:[#allocation7 + $0x3dc] ss:$48 sps:$4 sm:$0xff]  }
 0x2e7   : > { %3110 = vmatprep.subr.bf16.mxu1 %v6400_v31  ;;  %v6482_v31 = vld [vmem:[#allocation7 + $0x3d8] ss:$48 sps:$4 sm:$0xff]  }
 0x2ea   : > { %3111 = vmatpush1.bf16.msra.mxu1 %v6398_v32  ;;  %v6487_v32 = vld [vmem:[#allocation7 + $0x43c] ss:$48 sps:$4 sm:$0xff]  }
 0x2eb   : > { %3112 = vmatprep.subr.bf16.mxu1 %v6403_v33  ;;  %v6485_v33 = vld [vmem:[#allocation7 + $0x438] ss:$48 sps:$4 sm:$0xff]  }
 0x2ee   : > { %3113 = vmatpush1.bf16.msra.mxu1 %v6401_v34  ;;  %v6490_v34 = vld [vmem:[#allocation7 + $0x49c] ss:$48 sps:$4 sm:$0xff]  }
 0x2ef   : > { %3123 = vmatprep.subr.bf16.mxu1 %v6406_v35  ;;  %v6488_v35 = vld [vmem:[#allocation7 + $0x498] ss:$48 sps:$4 sm:$0xff]  }
 0x2f1   : > { %3115 = vmatmul.mubr.bf16.vlgmr.msra.gmra.mrb[4].mxu1 %v7131_v4 }
 0x2f2   : > { %3124 = vmatpush1.bf16.msra.mxu1 %v6404_v36  ;;  %3155 = vmatprep.mubr.bf16.mxu1 %v7129_v2  ;;  %v6493_v36 = vld [vmem:[#allocation7 + $0x4fc] ss:$48 sps:$4 sm:$0xff]  }
 0x2f3   : > { %3125 = vmatprep.subr.bf16.mxu1 %v6409_v37  ;;  %v6491_v37 = vld [vmem:[#allocation7 + $0x4f8] ss:$48 sps:$4 sm:$0xff]  }
 0x2f6   : > { %3126 = vmatpush1.bf16.msra.mxu1 %v6407_v38  ;;  %v6496_v38 = vld [vmem:[#allocation7 + $0x55c] ss:$48 sps:$4 sm:$0xff]  }
 0x2f7   : > { %3127 = vmatprep.subr.bf16.mxu1 %v6412_v39  ;;  %v6494_v39 = vld [vmem:[#allocation7 + $0x558] ss:$48 sps:$4 sm:$0xff]  }
 0x2fa   : > { %3128 = vmatpush1.bf16.msra.mxu1 %v6410_v40  ;;  %v6499_v40 = vld [vmem:[#allocation7 + $0x5bc] ss:$48 sps:$4 sm:$0xff]  }
 0x2fb   : > { %3129 = vmatprep.subr.bf16.mxu1 %v6415_v41  ;;  %v6497_v41 = vld [vmem:[#allocation7 + $0x5b8] ss:$48 sps:$4 sm:$0xff]  }
 0x2fe   : > { %3130 = vmatpush1.bf16.msra.mxu1 %v6413_v42  ;;  %v6502_v42 = vld [vmem:[#allocation7 + $0x24] ss:$48 sps:$4 sm:$0xff]  }
 0x2ff   : > { %3131 = vmatprep.subr.bf16.mxu1 %v6418_v43  ;;  %v6500_v43 = vld [vmem:[#allocation7 + $0x20] ss:$48 sps:$4 sm:$0xff]  }
 0x302   : > { %3132 = vmatpush1.bf16.msra.mxu1 %v6416_v44  ;;  %v6505_v44 = vld [vmem:[#allocation7 + $0x84] ss:$48 sps:$4 sm:$0xff]  }
 0x303   : > { %3133 = vmatprep.subr.bf16.mxu1 %v6421_v45  ;;  %v6503_v45 = vld [vmem:[#allocation7 + $0x80] ss:$48 sps:$4 sm:$0xff]  }
 0x306   : > { %3134 = vmatpush1.bf16.msra.mxu1 %v6419_v46  ;;  %v6508_v46 = vld [vmem:[#allocation7 + $0xe4] ss:$48 sps:$4 sm:$0xff]  }
 0x307   : > { %3135 = vmatprep.subr.bf16.mxu1 %v6424_v47  ;;  %v6506_v47 = vld [vmem:[#allocation7 + $0xe0] ss:$48 sps:$4 sm:$0xff]  }
 0x30a   : > { %3136 = vmatpush1.bf16.msra.mxu1 %v6422_v48  ;;  %v6511_v48 = vld [vmem:[#allocation7 + $0x144] ss:$48 sps:$4 sm:$0xff]  }
 0x30b   : > { %3137 = vmatprep.subr.bf16.mxu1 %v6427_v49  ;;  %v6509_v49 = vld [vmem:[#allocation7 + $0x140] ss:$48 sps:$4 sm:$0xff]  }
 0x30e   : > { %3138 = vmatpush1.bf16.msra.mxu1 %v6425_v50  ;;  %v6514_v50 = vld [vmem:[#allocation7 + $0x1a4] ss:$48 sps:$4 sm:$0xff]  }
 0x30f   : > { %3139 = vmatprep.subr.bf16.mxu1 %v6430_v51  ;;  %v6512_v51 = vld [vmem:[#allocation7 + $0x1a0] ss:$48 sps:$4 sm:$0xff]  }
 0x312   : > { %3140 = vmatpush1.bf16.msra.mxu1 %v6428_v54  ;;  %v7150_v54 = vld [vmem:[%s7662_s4] sm:$0xff] }
 0x313   : > { %3141 = vmatprep.subr.bf16.mxu1 %v6433_v56  ;;  %v6517_v56 = vld [vmem:[#allocation7 + $0x204] ss:$48 sps:$4 sm:$0xff]  }
 0x316   : > { %3142 = vmatpush1.bf16.msra.mxu1 %v6431_v57  ;;  %v2024_v57 = vrot.slane %v7150_v54, %v7119_v53 }
 0x317   : > { %3143 = vmatprep.subr.bf16.mxu1 %v6436_v58  ;;  %v6515_v58 = vld [vmem:[#allocation7 + $0x200] ss:$48 sps:$4 sm:$0xff]  }
 0x31a   : > { %3144 = vmatpush1.bf16.msra.mxu1 %v6434_v59  ;;  %v2028_v59 = vrot.slane %v7150_v54, %v7125_v55 }
 0x31b   : > { %3145 = vmatprep.subr.bf16.mxu1 %v6439_v60  ;;  %v6520_v60 = vld [vmem:[#allocation7 + $0x264] ss:$48 sps:$4 sm:$0xff]  }
 0x31e   : > { %3146 = vmatpush1.bf16.msra.mxu1 %v6437_v61 }
 0x31f   : > { %3147 = vmatprep.subr.bf16.mxu1 %v6442_v62 }
 0x322   : > { %3148 = vmatpush1.bf16.msra.mxu1 %v6440_v63 }
 0x323   : > { %3149 = vmatprep.subr.bf16.mxu1 %v6445_v0 }
 0x326   : > { %3150 = vmatpush1.bf16.msra.mxu1 %v6443_v1 }
 0x327   : > { %3151 = vmatprep.subr.bf16.mxu1 %v6448_v3  ;;  %v6518_v3 = vld [vmem:[#allocation7 + $0x260] ss:$48 sps:$4 sm:$0xff]  }
 0x32a   : > { %3152 = vmatpush1.bf16.msra.mxu1 %v6446_v5 }
 0x32b   : > { %3153 = vmatprep.subr.bf16.mxu1 %v6451_v6  ;;  %v6523_v6 = vld [vmem:[#allocation7 + $0x2c4] ss:$48 sps:$4 sm:$0xff]  }
 0x32e   : > { %3154 = vmatpush1.bf16.msra.mxu1 %v6449_v7 }
 0x32f   : > { %3164 = vmatprep.subr.bf16.mxu1 %v6454_v8 }
 0x331   : > { %3156 = vmatmul.mubr.bf16.vlgmr.msra.gmra.mrb[8].mxu1 %v7131_v4 }
 0x332   : > { %3165 = vmatpush1.bf16.msra.mxu1 %v6452_v9  ;;  %3196 = vmatprep.mubr.bf16.mxu1 %v7129_v2  ;;  %v6521_v9 = vld [vmem:[#allocation7 + $0x2c0] ss:$48 sps:$4 sm:$0xff]  }
 0x333   : > { %3166 = vmatprep.subr.bf16.mxu1 %v6457_v10  ;;  %v6526_v10 = vld [vmem:[#allocation7 + $0x324] ss:$48 sps:$4 sm:$0xff]  }
 0x336   : > { %3167 = vmatpush1.bf16.msra.mxu1 %v6455_v11  ;;  %v7163_v11 = vld [vmem:[%s7078_s11 + $0x8] sm:$0xff] }
 0x337   : > { %3168 = vmatprep.subr.bf16.mxu1 %v6460_v13  ;;  %v6524_v13 = vld [vmem:[#allocation7 + $0x320] ss:$48 sps:$4 sm:$0xff]  }
 0x33a   : > { %3169 = vmatpush1.bf16.msra.mxu1 %v6458_v14  ;;  %v5591_v14 = vcombine.low %v7141_v23, %v7141_v23  ;;  %v6541_v23 = vld [vmem:[#allocation7 + $0x504] ss:$48 sps:$4 sm:$0xff]  }
 0x33b   : > { %3170 = vmatprep.subr.bf16.mxu1 %v6463_v15  ;;  %v6529_v15 = vld [vmem:[#allocation7 + $0x384] ss:$48 sps:$4 sm:$0xff]  }
 0x33e   : > { %3171 = vmatpush1.bf16.msra.mxu1 %v6461_v16  ;;  %v5594_v16 = vcombine.high %v7163_v11, %v7163_v11 }
 0x33f   : > { %3172 = vmatprep.subr.bf16.mxu1 %v6466_v17  ;;  %v6527_v17 = vld [vmem:[#allocation7 + $0x380] ss:$48 sps:$4 sm:$0xff]  }
 0x342   : > { %3173 = vmatpush1.bf16.msra.mxu1 %v6464_v18  ;;  %v6532_v18 = vld [vmem:[#allocation7 + $0x3e4] ss:$48 sps:$4 sm:$0xff]  }
 0x343   : > { %3174 = vmatprep.subr.bf16.mxu1 %v6469_v19  ;;  %v6530_v19 = vld [vmem:[#allocation7 + $0x3e0] ss:$48 sps:$4 sm:$0xff]  }
 0x346   : > { %3175 = vmatpush1.bf16.msra.mxu1 %v6467_v20  ;;  %v6535_v20 = vld [vmem:[#allocation7 + $0x444] ss:$48 sps:$4 sm:$0xff]  }
 0x347   : > { %3176 = vmatprep.subr.bf16.mxu1 %v6472_v21  ;;  %v6533_v21 = vld [vmem:[#allocation7 + $0x440] ss:$48 sps:$4 sm:$0xff]  }
 0x34a   : > { %3177 = vmatpush1.bf16.msra.mxu1 %v6470_v12  ;;  %v6538_v12 = vld [vmem:[#allocation7 + $0x4a4] ss:$48 sps:$4 sm:$0xff]  }
 0x34b   : > { %3178 = vmatprep.subr.bf16.mxu1 %v6475_v22  ;;  %v6536_v22 = vld [vmem:[#allocation7 + $0x4a0] ss:$48 sps:$4 sm:$0xff]  }
 0x34e   : > { %3179 = vmatpush1.bf16.msra.mxu1 %v6473_v25  ;;  %v6544_v25 = vld [vmem:[#allocation7 + $0x564] ss:$48 sps:$4 sm:$0xff]  }
 0x34f   : > { %3180 = vmatprep.subr.bf16.mxu1 %v6478_v26  ;;  %v6542_v26 = vld [vmem:[#allocation7 + $0x560] ss:$48 sps:$4 sm:$0xff]  }
 0x352   : > { %3181 = vmatpush1.bf16.msra.mxu1 %v6476_v27  ;;  %v6547_v27 = vld [vmem:[#allocation7 + $0x5c4] ss:$48 sps:$4 sm:$0xff]  }
 0x353   : > { %3182 = vmatprep.subr.bf16.mxu1 %v6481_v28  ;;  %v6545_v28 = vld [vmem:[#allocation7 + $0x5c0] ss:$48 sps:$4 sm:$0xff]  }
 0x356   : > { %3183 = vmatpush1.bf16.msra.mxu1 %v6479_v29  ;;  %v6550_v29 = vld [vmem:[#allocation7 + $0x2c] ss:$48 sps:$4 sm:$0xff]  }
 0x357   : > { %3184 = vmatprep.subr.bf16.mxu1 %v6484_v30  ;;  %v6548_v30 = vld [vmem:[#allocation7 + $0x28] ss:$48 sps:$4 sm:$0xff]  }
 0x35a   : > { %3185 = vmatpush1.bf16.msra.mxu1 %v6482_v31  ;;  %v6553_v31 = vld [vmem:[#allocation7 + $0x8c] ss:$48 sps:$4 sm:$0xff]  }
 0x35b   : > { %3186 = vmatprep.subr.bf16.mxu1 %v6487_v32  ;;  %v6551_v32 = vld [vmem:[#allocation7 + $0x88] ss:$48 sps:$4 sm:$0xff]  }
 0x35e   : > { %3187 = vmatpush1.bf16.msra.mxu1 %v6485_v33  ;;  %v6556_v33 = vld [vmem:[#allocation7 + $0xec] ss:$48 sps:$4 sm:$0xff]  }
 0x35f   : > { %3188 = vmatprep.subr.bf16.mxu1 %v6490_v34  ;;  %v6554_v34 = vld [vmem:[#allocation7 + $0xe8] ss:$48 sps:$4 sm:$0xff]  }
 0x362   : > { %3189 = vmatpush1.bf16.msra.mxu1 %v6488_v35  ;;  %v6559_v35 = vld [vmem:[#allocation7 + $0x14c] ss:$48 sps:$4 sm:$0xff]  }
 0x363   : > { %3190 = vmatprep.subr.bf16.mxu1 %v6493_v36  ;;  %v6557_v36 = vld [vmem:[#allocation7 + $0x148] ss:$48 sps:$4 sm:$0xff]  }
 0x366   : > { %3191 = vmatpush1.bf16.msra.mxu1 %v6491_v37  ;;  %v6562_v37 = vld [vmem:[#allocation7 + $0x1ac] ss:$48 sps:$4 sm:$0xff]  }
 0x367   : > { %3192 = vmatprep.subr.bf16.mxu1 %v6496_v38  ;;  %v2031_v38 = vsub.s32 2, %v7116_v52 }
 0x36a   : > { %3193 = vmatpush1.bf16.msra.mxu1 %v6494_v39  ;;  %v6560_v39 = vld [vmem:[#allocation7 + $0x1a8] ss:$48 sps:$4 sm:$0xff]  }
 0x36b   : > { %3194 = vmatprep.subr.bf16.mxu1 %v6499_v40  ;;  %v2035_v40 = vsub.s32 3, %v7116_v52 }
 0x36e   : > { %3195 = vmatpush1.bf16.msra.mxu1 %v6497_v41  ;;  %v6565_v41 = vld [vmem:[#allocation7 + $0x20c] ss:$48 sps:$4 sm:$0xff]  }
 0x36f   : > { %3205 = vmatprep.subr.bf16.mxu1 %v6502_v42  ;;  %v2036_v42 = vrot.slane %v7150_v54, %v2035_v40 }
 0x371   : > { %3197 = vmatmul.mubr.bf16.vlgmr.msra.gmra.mrb[12].mxu1 %v7131_v4 }
 0x372   : > { %3206 = vmatpush1.bf16.msra.mxu1 %v6500_v43  ;;  %3237 = vmatprep.mubr.bf16.mxu1 %v7129_v2  ;;  %v6563_v43 = vld [vmem:[#allocation7 + $0x208] ss:$48 sps:$4 sm:$0xff]  }
 0x373   : > { %3207 = vmatprep.subr.bf16.mxu1 %v6505_v44  ;;  %v6568_v44 = vld [vmem:[#allocation7 + $0x26c] ss:$48 sps:$4 sm:$0xff]  }
 0x376   : > { %3208 = vmatpush1.bf16.msra.mxu1 %v6503_v45 }
 0x377   : > { %3209 = vmatprep.subr.bf16.mxu1 %v6508_v46 }
 0x37a   : > { %3210 = vmatpush1.bf16.msra.mxu1 %v6506_v47 }
 0x37b   : > { %3211 = vmatprep.subr.bf16.mxu1 %v6511_v48 }
 0x37e   : > { %3212 = vmatpush1.bf16.msra.mxu1 %v6509_v49 }
 0x37f   : > { %3213 = vmatprep.subr.bf16.mxu1 %v6514_v50  ;;  %v6566_v50 = vld [vmem:[#allocation7 + $0x268] ss:$48 sps:$4 sm:$0xff]  }
 0x382   : > { %3214 = vmatpush1.bf16.msra.mxu1 %v6512_v51 }
 0x383   : > { %3215 = vmatprep.subr.bf16.mxu1 %v6517_v56  ;;  %v6573_v56 = vld [vmem:[#allocation7 + $0x2cc] ss:$48 sps:$4 sm:$0xff]  }
 0x384   : > { %v3075_v61 = vpop.f32.mrb[0].mxu1 }
 0x385   : > { %v3076_v62 = vadd.f32 %v3075_v61, %v2024_v57  ;;  %v3077_v63 = vpop.f32.mrb[1].mxu1  ;;  %v3345_v61 = vld [vmem:[%s7078_s11 + $0x10] sm:$0xff] }
 0x386   : > { %v3078_v0 = vadd.f32 %v3077_v63, %v2028_v59  ;;  %3216 = vmatpush1.bf16.msra.mxu1 %v6515_v58  ;;  %v3079_v1 = vpop.f32.mrb[2].mxu1  ;;  %v6571_v59 = vld [vmem:[#allocation7 + $0x2c8] ss:$48 sps:$4 sm:$0xff]   ;;  %v5593_v63 = vcombine.low %v7163_v11, %v7163_v11  ;;  %v6591_v11 = vld [vmem:[#allocation7 + $0x50c] ss:$48 sps:$4 sm:$0xff]  }
 0x387   : > { %v3080_v5 = vpop.f32.mrb[3].mxu1  ;;  %3217 = vmatprep.subr.bf16.mxu1 %v6520_v60  ;;  %v7158_v8 = vpack.c.bf16 %v3076_v62, %v3076_v62  ;;  %v6576_v60 = vld [vmem:[#allocation7 + $0x32c] ss:$48 sps:$4 sm:$0xff]   ;;  %v6574_v62 = vld [vmem:[#allocation7 + $0x328] ss:$48 sps:$4 sm:$0xff]   ;;  %v5596_v1 = vcombine.high %v3345_v61, %v3345_v61 }
 0x388   : > { %v7156_v7 = vpack.c.bf16 %v3078_v0, %v3078_v0  ;;  %v6579_v0 = vld [vmem:[#allocation7 + $0x38c] ss:$48 sps:$4 sm:$0xff]  }
 0x389   : > { %v6582_v5 = vld [vmem:[#allocation7 + $0x3ec] ss:$48 sps:$4 sm:$0xff]  }
 0x38a   : > { %3218 = vmatpush1.bf16.msra.mxu1 %v6518_v3  ;;  %3439 = vmatprep.subr.bf16.mxu0 %v7156_v7  ;;  %v6577_v3 = vld [vmem:[#allocation7 + $0x388] ss:$48 sps:$4 sm:$0xff]  }
 0x38b   : > { %3440 = vmatpush1.bf16.xpose.msra.mxu0 %v7158_v8  ;;  %3219 = vmatprep.subr.bf16.mxu1 %v6523_v6  ;;  %v6580_v6 = vld [vmem:[#allocation7 + $0x3e8] ss:$48 sps:$4 sm:$0xff]  }
 0x38e   : > { %3220 = vmatpush1.bf16.msra.mxu1 %v6521_v9  ;;  %v6585_v9 = vld [vmem:[#allocation7 + $0x44c] ss:$48 sps:$4 sm:$0xff]  }
 0x38f   : > { %3221 = vmatprep.subr.bf16.mxu1 %v6526_v10  ;;  %v6583_v10 = vld [vmem:[#allocation7 + $0x448] ss:$48 sps:$4 sm:$0xff]  }
 0x392   : > { %3222 = vmatpush1.bf16.msra.mxu1 %v6524_v13  ;;  %3472 = vmatmul.mubr.bf16.vlgmr.msra.gmra.mrb[4].mxu0 %v5591_v14  ;;  %v6588_v13 = vld [vmem:[#allocation7 + $0x4ac] ss:$48 sps:$4 sm:$0xff]   ;;  %v6586_v14 = vld [vmem:[#allocation7 + $0x4a8] ss:$48 sps:$4 sm:$0xff]  }
 0x393   : > { %3223 = vmatprep.subr.bf16.mxu1 %v6529_v15  ;;  %3511 = vmatprep.mubr.bf16.mxu0 %v5594_v16  ;;  %v6589_v15 = vld [vmem:[#allocation7 + $0x508] ss:$48 sps:$4 sm:$0xff]   ;;  %v6594_v16 = vld [vmem:[#allocation7 + $0x56c] ss:$48 sps:$4 sm:$0xff]  }
 0x396   : > { %3224 = vmatpush1.bf16.msra.mxu1 %v6527_v17  ;;  %v6592_v17 = vld [vmem:[#allocation7 + $0x568] ss:$48 sps:$4 sm:$0xff]  }
 0x397   : > { %3225 = vmatprep.subr.bf16.mxu1 %v6532_v18  ;;  %v6597_v18 = vld [vmem:[#allocation7 + $0x5cc] ss:$48 sps:$4 sm:$0xff]  }
 0x39a   : > { %3226 = vmatpush1.bf16.msra.mxu1 %v6530_v19  ;;  %v6595_v19 = vld [vmem:[#allocation7 + $0x5c8] ss:$48 sps:$4 sm:$0xff]  }
 0x39b   : > { %3227 = vmatprep.subr.bf16.mxu1 %v6535_v20  ;;  %v3713_v20 = vsel %vm3711_vm0, %v7158_v8, 0 }
 0x39e   : > { %3228 = vmatpush1.bf16.msra.mxu1 %v6533_v21  ;;  %v2039_v21 = vsub.s32 4, %v7116_v52 }
 0x39f   : > { %3229 = vmatprep.subr.bf16.mxu1 %v6538_v12  ;;  %v2043_v12 = vsub.s32 5, %v7116_v52 }
 0x3a2   : > { %3230 = vmatpush1.bf16.msra.mxu1 %v6536_v22  ;;  %v2040_v22 = vrot.slane %v7150_v54, %v2039_v21 }
 0x3a3   : > { %3231 = vmatprep.subr.bf16.mxu1 %v6541_v23  ;;  %v2044_v23 = vrot.slane %v7150_v54, %v2043_v12 }
 0x3a6   : > { %3232 = vmatpush1.bf16.msra.mxu1 %v6539_v24 }
 0x3a7   : > { %3233 = vmatprep.subr.bf16.mxu1 %v6544_v25 }
 0x3aa   : > { %3234 = vmatpush1.bf16.msra.mxu1 %v6542_v26 }
 0x3ab   : > { %3235 = vmatprep.subr.bf16.mxu1 %v6547_v27 }
 0x3ae   : > { %3236 = vmatpush1.bf16.msra.mxu1 %v6545_v28 }
 0x3af   : > { %3246 = vmatprep.subr.bf16.mxu1 %v6550_v29  ;;  %v3346_v29 = vld [vmem:[%s7078_s11 + $0x18] sm:$0xff] }
 0x3b1   : > { %3238 = vmatmul.mubr.bf16.vlgmr.msra.gmra.mrb[16].mxu1 %v7131_v4 }
 0x3b2   : > { %3247 = vmatpush1.bf16.msra.mxu1 %v6548_v30  ;;  %3278 = vmatprep.mubr.bf16.mxu1 %v7129_v2  ;;  %v2032_v2 = vrot.slane %v7150_v54, %v2031_v38  ;;  %v5595_v30 = vcombine.low %v3345_v61, %v3345_v61 }
 0x3b3   : > { %3248 = vmatprep.subr.bf16.mxu1 %v6553_v31  ;;  %v5598_v31 = vcombine.high %v3346_v29, %v3346_v29 }
 0x3b6   : > { %3249 = vmatpush1.bf16.msra.mxu1 %v6551_v32  ;;  %v2047_v32 = vsub.s32 6, %v7116_v52 }
 0x3b7   : > { %3250 = vmatprep.subr.bf16.mxu1 %v6556_v33  ;;  %v2051_v33 = vsub.s32 7, %v7116_v52 }
 0x3ba   : > { %3251 = vmatpush1.bf16.msra.mxu1 %v6554_v34  ;;  %v2048_v34 = vrot.slane %v7150_v54, %v2047_v32  ;;  %v6622_v32 = vld [vmem:[%s7663_s5 + $0x20] sm:$0xff]  }
 0x3bb   : > { %3252 = vmatprep.subr.bf16.mxu1 %v6559_v35  ;;  %v2052_v35 = vrot.slane %v7150_v54, %v2051_v33  ;;  %v2018_v54 = vld [vmem:[%s7662_s4 + $0x8] sm:$0xf] }
 0x3bc   : > { %v6624_v33 = vld [vmem:[%s7663_s5 + $0x68] sm:$0xff]  }
 0x3be   : > { %3253 = vmatpush1.bf16.msra.mxu1 %v6557_v36 }
 0x3bf   : > { %3254 = vmatprep.subr.bf16.mxu1 %v6562_v37 }
 0x3c2   : > { %3255 = vmatpush1.bf16.msra.mxu1 %v6560_v39 }
 0x3c3   : > { %3256 = vmatprep.subr.bf16.mxu1 %v6565_v41 }
 0x3c4   : > { %v3116_v45 = vpop.f32.mrb[4].mxu1 }
 0x3c5   : > { %v3117_v46 = vadd.f32 %v3116_v45, %v2032_v2  ;;  %v3118_v47 = vpop.f32.mrb[5].mxu1  ;;  %v3347_v45 = vld [vmem:[%s7078_s11 + $0x20] sm:$0xff] }
 0x3c6   : > { %v3119_v48 = vadd.f32 %v3118_v47, %v2036_v42  ;;  %v3120_v49 = vpop.f32.mrb[6].mxu1  ;;  %3257 = vmatpush1.bf16.msra.mxu1 %v6563_v43  ;;  %v5600_v47 = vcombine.high %v3347_v45, %v3347_v45 }
 0x3c7   : > { %v3121_v51 = vpop.f32.mrb[7].mxu1  ;;  %3258 = vmatprep.subr.bf16.mxu1 %v6568_v44  ;;  %v7179_v58 = vpack.c.bf16 %v3117_v46, %v3117_v46  ;;  %v5597_v46 = vcombine.low %v3346_v29, %v3346_v29  ;;  %v2060_v49 = vrot.slane %v2018_v54, %v7125_v55  ;;  %v2068_v55 = vrot.slane %v2018_v54, %v2035_v40  ;;  %v6616_v29 = vld [vmem:[%s7663_s5 + $0x58] sm:$0xff]  }
 0x3c8   : > { %v5737_v57 = vpack.c.bf16 %v3119_v48, %v3119_v48  ;;  %v2056_v48 = vrot.slane %v2018_v54, %v7119_v53  ;;  %v2064_v53 = vrot.slane %v2018_v54, %v2031_v38 }
 0x3ca   : > { %3259 = vmatpush1.bf16.msra.mxu1 %v6566_v50  ;;  %3479 = vmatprep.subr.bf16.mxu0 %v5737_v57 }
 0x3cb   : > { %3480 = vmatpush1.bf16.xpose.msra.mxu0 %v7179_v58  ;;  %3260 = vmatprep.subr.bf16.mxu1 %v6573_v56 }
 0x3ce   : > { %3261 = vmatpush1.bf16.msra.mxu1 %v6571_v59 }
 0x3cf   : > { %3262 = vmatprep.subr.bf16.mxu1 %v6576_v60 }
 0x3d2   : > { %3263 = vmatpush1.bf16.msra.mxu1 %v6574_v62  ;;  %3512 = vmatmul.mubr.bf16.vlgmr.msra.gmra.mrb[4].mxu0 %v5593_v63  ;;  %v3348_v63 = vld [vmem:[%s7078_s11 + $0x28] sm:$0xff] }
 0x3d3   : > { %3264 = vmatprep.subr.bf16.mxu1 %v6579_v0  ;;  %3551 = vmatprep.mubr.bf16.mxu0 %v5596_v1  ;;  %v5599_v0 = vcombine.low %v3347_v45, %v3347_v45  ;;  %v5602_v1 = vcombine.high %v3348_v63, %v3348_v63 }
 0x3d6   : > { %3265 = vmatpush1.bf16.msra.mxu1 %v6577_v3 }
 0x3d7   : > { %3266 = vmatprep.subr.bf16.mxu1 %v6582_v5 }
 0x3da   : > { %3267 = vmatpush1.bf16.msra.mxu1 %v6580_v6 }
 0x3db   : > { %3268 = vmatprep.subr.bf16.mxu1 %v6585_v9 }
 0x3de   : > { %3269 = vmatpush1.bf16.msra.mxu1 %v6583_v10 }
 0x3df   : > { %3270 = vmatprep.subr.bf16.mxu1 %v6588_v13 }
 0x3e2   : > { %3271 = vmatpush1.bf16.msra.mxu1 %v6586_v14 }
 0x3e3   : > { %3272 = vmatprep.subr.bf16.mxu1 %v6591_v11 }
 0x3e6   : > { %3273 = vmatpush1.bf16.msra.mxu1 %v6589_v15  ;;  %v5601_v15 = vcombine.low %v3348_v63, %v3348_v63  ;;  %v6623_v63 = vld [vmem:[%s7663_s5 + $0x90] sm:$0xff]  }
 0x3e7   : > { %3274 = vmatprep.subr.bf16.mxu1 %v6594_v16 }
 0x3ea   : > { %3275 = vmatpush1.bf16.msra.mxu1 %v6592_v17 }
 0x3eb   : > { %3276 = vmatprep.subr.bf16.mxu1 %v6597_v18  ;;  %v6894_v18 = vmov 0.0  }
 0x3ec   : > { %3342 = vst.msk [vmem:[#allocation3] sm:$0x1] %vm3341_vm2, %v6894_v18  ;;  %v6639_v18 = vld [vmem:[%s7663_s5 + $0x100] sm:$0xff]  }
 0x3ee   : > { %3277 = vmatpush1.bf16.msra.mxu1 %v6595_v19 }
 0x3ef   : > { %5615 = vmatprep.subr.msk.bf16.mxu1 %vm3711_vm0, %v7156_v7 }
 0x3f1   : > { %3279 = vmatmul.mubr.bf16.vlgmr.msra.gmra.mrb[20].mxu1 %v7131_v4 }
 0x3f2   : > { %3749 = vmatpush1.bf16.msra.mxu1 %v3713_v20 }
 0x3f3   : > { %5617 = vmatprep.subr.msk.bf16.mxu1 %vm3711_vm0, %v5737_v57 }
 0x404   : > { %v3157_v24 = vpop.f32.mrb[8].mxu1 }
 0x405   : > { %v3158_v25 = vadd.f32 %v3157_v24, %v2040_v22  ;;  %v3159_v7 = vpop.f32.mrb[9].mxu1  ;;  %v6608_v24 = vld [vmem:[%s7663_s5 + $0x40] sm:$0xff]  }
 0x406   : > { %v3160_v26 = vadd.f32 %v3159_v7, %v2044_v23  ;;  %v3161_v27 = vpop.f32.mrb[10].mxu1  ;;  %v6895_v23 = vmov 0   ;;  %v6610_v7 = vld [vmem:[%s7663_s5 + $0x48] sm:$0xff]  }
 0x407   : > { %v3162_v8 = vpop.f32.mrb[11].mxu1  ;;  %v7197_v4 = vpack.c.bf16 %v3158_v25, %v3158_v25  ;;  %3780 = vmatprep.mubr.bf16.mxu1 %v6895_v23  ;;  %v6609_v25 = vld [vmem:[%s7663_s5] sm:$0xff]   ;;  %v6612_v27 = vld [vmem:[%s7663_s5 + $0x50] sm:$0xff]  }
 0x408   : > { %v7195_v28 = vpack.c.bf16 %v3160_v26, %v3160_v26  ;;  %v6611_v26 = vld [vmem:[%s7663_s5 + $0x8] sm:$0xff]   ;;  %v6614_v8 = vld [vmem:[%s7663_s5 + $0x10] sm:$0xff]  }
 0x40a   : > { %3519 = vmatprep.subr.bf16.mxu0 %v7195_v28 }
 0x40b   : > { %3520 = vmatpush1.bf16.xpose.msra.mxu0 %v7197_v4 }
 0x412   : > { %3552 = vmatmul.mubr.bf16.vlgmr.msra.gmra.mrb[4].mxu0 %v5595_v30  ;;  %v6618_v30 = vld [vmem:[%s7663_s5 + $0x18] sm:$0xff]  }
 0x413   : > { %3591 = vmatprep.mubr.bf16.mxu0 %v5598_v31  ;;  %v6620_v31 = vld [vmem:[%s7663_s5 + $0x60] sm:$0xff]  }
 0x444   : > { %v3198_v36 = vpop.f32.mrb[12].mxu1 }
 0x445   : > { %v3199_v37 = vadd.f32 %v3198_v36, %v2048_v34  ;;  %v3200_v39 = vpop.f32.mrb[13].mxu1  ;;  %v6626_v34 = vld [vmem:[%s7663_s5 + $0x28] sm:$0xff]   ;;  %v6630_v36 = vld [vmem:[%s7663_s5 + $0x30] sm:$0xff]  }
 0x446   : > { %v3201_v41 = vadd.f32 %v3200_v39, %v2052_v35  ;;  %v3202_v2 = vpop.f32.mrb[14].mxu1  ;;  %v6628_v35 = vld [vmem:[%s7663_s5 + $0x70] sm:$0xff]  }
 0x447   : > { %v3203_v42 = vpop.f32.mrb[15].mxu1  ;;  %v7208_v44 = vpack.c.bf16 %v3199_v37, %v3199_v37 }
 0x448   : > { %v7206_v43 = vpack.c.bf16 %v3201_v41, %v3201_v41 }
 0x44a   : > { %3559 = vmatprep.subr.bf16.mxu0 %v7206_v43 }
 0x44b   : > { %3560 = vmatpush1.bf16.xpose.msra.mxu0 %v7208_v44 }
 0x452   : > { %3592 = vmatmul.mubr.bf16.vlgmr.msra.gmra.mrb[4].mxu0 %v5597_v46 }
 0x453   : > { %3631 = vmatprep.mubr.bf16.mxu0 %v5600_v47 }
 0x484   : > { %v3239_v50 = vpop.f32.mrb[16].mxu1 }
 0x485   : > { %v3240_v51 = vadd.f32 %v3239_v50, %v2056_v48  ;;  %v3241_v56 = vpop.f32.mrb[17].mxu1  ;;  %v3692_v48 = vld [vmem:[#allocation3] sm:$0x1] }
 0x486   : > { %v3242_v57 = vadd.f32 %v3241_v56, %v2060_v49  ;;  %v3243_v59 = vpop.f32.mrb[18].mxu1 }
 0x487   : > { %v3244_v60 = vpop.f32.mrb[19].mxu1  ;;  %v7220_v62 = vpack.c.bf16 %v3240_v51, %v3240_v51  ;;  %v3725_v59 = vsel %vm3711_vm0, %v7197_v4, 0  ;;  %v6613_v4 = vld [vmem:[%s7663_s5 + $0xc0] sm:$0xff]  }
 0x488   : > { %v7218_v61 = vpack.c.bf16 %v3242_v57, %v3242_v57  ;;  %v3719_v57 = vsel %vm3711_vm0, %v7179_v58, 0  ;;  %v3731_v58 = vsel %vm3711_vm0, %v7208_v44, 0  ;;  %v6615_v44 = vld [vmem:[%s7663_s5 + $0x80] sm:$0xff]   ;;  %v6617_v60 = vld [vmem:[%s7663_s5 + $0xc8] sm:$0xff]  }
 0x48a   : > { %3599 = vmatprep.subr.bf16.mxu0 %v7218_v61 }
 0x48b   : > { %3600 = vmatpush1.bf16.xpose.msra.mxu0 %v7220_v62 }
 0x492   : > { %3632 = vmatmul.mubr.bf16.vlgmr.msra.gmra.mrb[4].mxu0 %v5599_v0  ;;  %v6625_v0 = vld [vmem:[%s7663_s5 + $0xd8] sm:$0xff]  }
 0x493   : > { %3671 = vmatprep.mubr.bf16.mxu0 %v5602_v1  ;;  %v6627_v1 = vld [vmem:[%s7663_s5 + $0x98] sm:$0xff]  }
 0x4c4   : > { %v3280_v3 = vpop.f32.mrb[20].mxu1 }
 0x4c5   : > { %v3281_v5 = vadd.f32 %v3280_v3, %v2064_v53  ;;  %v3282_v6 = vpop.f32.mrb[21].mxu1  ;;  %v6629_v53 = vld [vmem:[%s7663_s5 + $0xe0] sm:$0xff]   ;;  %v6632_v3 = vld [vmem:[%s7663_s5 + $0x78] sm:$0xff]  }
 0x4c6   : > { %v3283_v9 = vadd.f32 %v3282_v6, %v2068_v55  ;;  %v3284_v10 = vpop.f32.mrb[22].mxu1  ;;  %v6631_v55 = vld [vmem:[%s7663_s5 + $0xa0] sm:$0xff]   ;;  %v6634_v6 = vld [vmem:[%s7663_s5 + $0x38] sm:$0xff]  }
 0x4c7   : > { %v3285_v13 = vpop.f32.mrb[23].mxu1  ;;  %v7231_v11 = vpack.c.bf16 %v3281_v5, %v3281_v5  ;;  %v6633_v5 = vld [vmem:[%s7663_s5 + $0xe8] sm:$0xff]   ;;  %v6636_v10 = vld [vmem:[%s7663_s5 + $0xf0] sm:$0xff]  }
 0x4c8   : > { %v7229_v14 = vpack.c.bf16 %v3283_v9, %v3283_v9  ;;  %v6635_v9 = vld [vmem:[%s7663_s5 + $0xa8] sm:$0xff]   ;;  %v6637_v13 = vld [vmem:[%s7663_s5 + $0x140] sm:$0xff]  }
 0x4ca   : > { %3639 = vmatprep.subr.bf16.mxu0 %v7229_v14 }
 0x4cb   : > { %3640 = vmatpush1.bf16.xpose.msra.mxu0 %v7231_v11 }
 0x4cc   : > { %5746 = vmatprep.subr.bf16.mxu0 %v6608_v24 }
 0x4d2   : > { %3672 = vmatmul.mubr.bf16.vlgmr.msra.gmra.mrb[4].mxu0 %v5601_v15  ;;  %v6642_v15 = vld [vmem:[%s7663_s5 + $0xb8] sm:$0xff]  }
 0x4d3   : > { %5747 = vmatpush3.bf16.msra.mxu0 %v6609_v25 }
 0x4d4   : > { %5748 = vmatprep.subr.bf16.mxu0 %v6610_v7 }
 0x4d7   : > { %5749 = vmatpush3.bf16.msra.mxu0 %v6611_v26  ;;  %v6646_v26 = vld [vmem:[%s7663_s5 + $0x110] sm:$0xff]  }
 0x4d8   : > { %5750 = vmatprep.subr.bf16.mxu0 %v6612_v27  ;;  %v6647_v27 = vld [vmem:[%s7663_s5 + $0x180] sm:$0xff]  }
 0x4db   : > { %5751 = vmatpush3.bf16.msra.mxu0 %v6614_v8 }
 0x4dc   : > { %5752 = vmatprep.subr.bf16.mxu0 %v6616_v29 }
 0x4df   : > { %5753 = vmatpush3.bf16.msra.mxu0 %v6618_v30  ;;  %v6648_v30 = vld [vmem:[%s7663_s5 + $0x158] sm:$0xff]  }
 0x4e0   : > { %5754 = vmatprep.subr.bf16.mxu0 %v6620_v31  ;;  %v6649_v31 = vld [vmem:[%s7663_s5 + $0x1c8] sm:$0xff]  }
 0x4e3   : > { %5755 = vmatpush3.bf16.msra.mxu0 %v6622_v32  ;;  %v6650_v32 = vld [vmem:[%s7663_s5 + $0x118] sm:$0xff]  }
 0x4e4   : > { %5756 = vmatprep.subr.bf16.mxu0 %v6624_v33  ;;  %v6651_v33 = vld [vmem:[%s7663_s5 + $0x188] sm:$0xff]  }
 0x4e7   : > { %5757 = vmatpush3.bf16.msra.mxu0 %v6626_v34  ;;  %v6652_v34 = vld [vmem:[%s7663_s5 + $0x160] sm:$0xff]  }
 0x4e8   : > { %5758 = vmatprep.subr.bf16.mxu0 %v6628_v35  ;;  %v6653_v35 = vld [vmem:[%s7663_s5 + $0x1d0] sm:$0xff]  }
 0x4eb   : > { %5759 = vmatpush3.bf16.msra.mxu0 %v6630_v36 }
 0x4ec   : > { %5760 = vmatprep.subr.bf16.mxu0 %v6632_v3  ;;  %v6671_v3 = vld [vmem:[%s7663_s5 + $0x200] sm:$0xff]  }
 0x4ef   : > { %5761 = vmatpush3.bf16.msra.mxu0 %v6634_v6 }
 0x4f0   : > { %5790 = vmatprep.subr.bf16.mxu0 %v6637_v13  ;;  %v6673_v13 = vld [vmem:[%s7663_s5 + $0x248] sm:$0xff]  }
 0x5a5   : > { %v3673_v38 = vpop.f32.mrb[4].mxu0 }
 0x5a6   : > { %v3675_v52 = vpop.f32.mrb[5].mxu0  ;;  %v3680_v40 = vsel %vm3679_vm1, %v3673_v38, -inf }
 0x5a7   : > { %3681 = vmax.xlane.f32.xlu0 %v3680_v40  ;;  %v3676_v16 = vpop.f32.mrb[6].mxu0 }
 0x5a8   : > { %v3677_v17 = vpop.f32.mrb[7].mxu0 }
 0x634   : > { %v3682_v19 = vpop.xlane.xlu0 %3681 }
 0x635   : > { %v3683_v20 = vsub.f32 %v3673_v38, %v3682_v19  ;;  %v6645_v38 = vld [vmem:[%s7663_s5 + $0x1c0] sm:$0xff]  }
 0x637   : > { %v3684_v21 = vmul.f32 1.442695, %v3683_v20 }
 0x639   : > { %6704 = vpow2.f32 %v3684_v21  ;;  %v6641_v21 = vld [vmem:[%s7663_s5 + $0x148] sm:$0xff]  }
 0x643   : > { %v6705_v12 = vpop.eup %6704 }
 0x644   : > { %v3686_v22 = vsel %vm3679_vm1, %v6705_v12, 0.0 }
 0x645   : > { %3687 = vadd.xlane.f32.xlu0 %v3686_v22  ;;  %v6644_v22 = vld [vmem:[%s7663_s5 + $0x150] sm:$0xff]  }
 0x6d2   : > { %v3688_v37 = vpop.xlane.xlu0 %3687 }
 0x6d3   : > { %6706 = vrcp.f32 %v3688_v37 }
 0x6dd   : > { %v6707_v39 = vpop.eup %6706 }
 0x6de   : > { %v3690_v41 = vmul.f32 %v6707_v39, %v6705_v12  ;;  %v6643_v12 = vld [vmem:[%s7663_s5 + $0x108] sm:$0xff]  }
 0x6e0   : > { %v3693_v2 = vsel %vm3679_vm1, %v3690_v41, 0.0  ;;  %3691 = vst.msk [vmem:[%s7286_s21] sm:$0xff] %vm3679_vm1, %v3690_v41 }
 0x6e1   : > { %v3694_v42 = vrot.slane %v3693_v2, 4 }
 0x6e3   : > { %v3695_v45 = vadd.f32 %v3694_v42, %v3693_v2  ;;  %v6654_v2 = vld [vmem:[%s7663_s5 + $0x120] sm:$0xff]   ;;  %v6655_v42 = vld [vmem:[%s7663_s5 + $0x190] sm:$0xff]  }
 0x6e5   : > { %v3696_v46 = vrot.slane %v3695_v45, 2 }
 0x6e7   : > { %v3697_v47 = vadd.f32 %v3696_v46, %v3695_v45  ;;  %v6656_v46 = vld [vmem:[%s7663_s5 + $0x168] sm:$0xff]  }
 0x6e9   : > { %v3698_v54 = vrot.slane %v3697_v47, 1 }
 0x6eb   : > { %v3699_v49 = vadd.f32 %v3698_v54, %v3697_v47  ;;  %v6657_v47 = vld [vmem:[%s7663_s5 + $0x1d8] sm:$0xff]   ;;  %v6658_v54 = vld [vmem:[%s7663_s5 + $0x128] sm:$0xff]  }
 0x6ed   : > { %v3700_v50 = vadd.f32 %v3699_v49, %v3692_v48  ;;  %v6659_v48 = vld [vmem:[%s7663_s5 + $0x198] sm:$0xff]   ;;  %v6660_v49 = vld [vmem:[%s7663_s5 + $0x170] sm:$0xff]  }
 0x6ef   : > { %3702 = vst.msk [vmem:[#allocation3] sm:$0x1] %vm3341_vm2, %v3700_v50  ;;  %v6661_v50 = vld [vmem:[%s7663_s5 + $0x1e0] sm:$0xff]  }
 0x6f6   : > { %v3706_v51 = vld [vmem:[#allocation3] sm:$0x1] }
 0x6f7   : > { %v3707_v56 = vpack.c.bf16 %v3706_v51, %v3706_v51 }
 0x6f9   : > { %5616 = vmatmul.mubr.msk.bf16.vlgmr.msra.gmra.mrb[24].mxu1 %vm3679_vm1, %v3707_v56 }
 0x6fa   : > { %3790 = vmatpush1.bf16.msra.mxu1 %v3719_v57  ;;  %3821 = vmatprep.mubr.bf16.mxu1 %v6895_v23 }
 0x6fb   : > { %5619 = vmatprep.subr.msk.bf16.mxu1 %vm3711_vm0, %v7195_v28  ;;  %v3737_v28 = vsel %vm3711_vm0, %v7220_v62, 0  ;;  %v6621_v62 = vld [vmem:[%s7663_s5 + $0xd0] sm:$0xff]  }
 0x701   : > { %5618 = vmatmul.mubr.msk.bf16.vlgmr.msra.gmra.mrb[28].mxu1 %vm3679_vm1, %v3707_v56 }
 0x702   : > { %3831 = vmatpush1.bf16.msra.mxu1 %v3725_v59  ;;  %3862 = vmatprep.mubr.bf16.mxu1 %v6895_v23 }
 0x703   : > { %5621 = vmatprep.subr.msk.bf16.mxu1 %vm3711_vm0, %v7206_v43  ;;  %v3743_v43 = vsel %vm3711_vm0, %v7231_v11, 0  ;;  %v6640_v11 = vld [vmem:[%s7663_s5 + $0xf8] sm:$0xff]  }
 0x709   : > { %5620 = vmatmul.mubr.msk.bf16.vlgmr.msra.gmra.mrb[32].mxu1 %vm3679_vm1, %v3707_v56 }
 0x70a   : > { %3872 = vmatpush1.bf16.msra.mxu1 %v3731_v58  ;;  %3903 = vmatprep.mubr.bf16.mxu1 %v6895_v23  ;;  %v6662_v58 = vld [vmem:[%s7663_s5 + $0x130] sm:$0xff]  }
 0x70b   : > { %5623 = vmatprep.subr.msk.bf16.mxu1 %vm3711_vm0, %v7218_v61  ;;  %v6619_v61 = vld [vmem:[%s7663_s5 + $0x88] sm:$0xff]  }
 0x711   : > { %5622 = vmatmul.mubr.msk.bf16.vlgmr.msra.gmra.mrb[36].mxu1 %vm3679_vm1, %v3707_v56 }
 0x712   : > { %3913 = vmatpush1.bf16.msra.mxu1 %v3737_v28  ;;  %3944 = vmatprep.mubr.bf16.mxu1 %v6895_v23  ;;  %v6663_v28 = vld [vmem:[%s7663_s5 + $0x1a0] sm:$0xff]  }
 0x713   : > { %5625 = vmatprep.subr.msk.bf16.mxu1 %vm3711_vm0, %v7229_v14  ;;  %v6638_v14 = vld [vmem:[%s7663_s5 + $0xb0] sm:$0xff]  }
 0x719   : > { %5624 = vmatmul.mubr.msk.bf16.vlgmr.msra.gmra.mrb[40].mxu1 %vm3679_vm1, %v3707_v56 }
 0x71a   : > { %3954 = vmatpush1.bf16.msra.mxu1 %v3743_v43  ;;  %3985 = vmatprep.mubr.bf16.mxu1 %v6895_v23  ;;  %v6664_v43 = vld [vmem:[%s7663_s5 + $0x178] sm:$0xff]  }
 0x71b   : > { %5768 = vmatprep.subr.bf16.mxu1 %v6613_v4 }
 0x721   : > { %5626 = vmatmul.mubr.msk.bf16.vlgmr.msra.gmra.mrb[44].mxu1 %vm3679_vm1, %v3707_v56 }
 0x722   : > { %5769 = vmatpush3.bf16.msra.mxu1 %v6615_v44  ;;  %v6665_v44 = vld [vmem:[%s7663_s5 + $0x1e8] sm:$0xff]  }
 0x723   : > { %5770 = vmatprep.subr.bf16.mxu1 %v6617_v60  ;;  %v6666_v60 = vld [vmem:[%s7663_s5 + $0x138] sm:$0xff]  }
 0x726   : > { %5771 = vmatpush3.bf16.msra.mxu1 %v6619_v61  ;;  %v6667_v61 = vld [vmem:[%s7663_s5 + $0x1a8] sm:$0xff]  }
 0x727   : > { %5772 = vmatprep.subr.bf16.mxu1 %v6621_v62  ;;  %v6668_v62 = vld [vmem:[%s7663_s5 + $0x1f0] sm:$0xff]  }
 0x72a   : > { %5773 = vmatpush3.bf16.msra.mxu1 %v6623_v63  ;;  %v6669_v63 = vld [vmem:[%s7663_s5 + $0x240] sm:$0xff]  }
 0x72b   : > { %5774 = vmatprep.subr.bf16.mxu1 %v6625_v0 }
 0x72e   : > { %5775 = vmatpush3.bf16.msra.mxu1 %v6627_v1 }
 0x72f   : > { %5776 = vmatprep.subr.bf16.mxu1 %v6629_v53 }
 0x732   : > { %5777 = vmatpush3.bf16.msra.mxu1 %v6631_v55  ;;  %v6670_v55 = vld [vmem:[%s7663_s5 + $0x1b0] sm:$0xff]  }
 0x733   : > { %5778 = vmatprep.subr.bf16.mxu1 %v6633_v5 }
 0x736   : > { %5779 = vmatpush3.bf16.msra.mxu1 %v6635_v9 }
 0x737   : > { %5780 = vmatprep.subr.bf16.mxu1 %v6636_v10  ;;  %v6672_v10 = vld [vmem:[%s7663_s5 + $0x1f8] sm:$0xff]  }
 0x73a   : > { %5781 = vmatpush3.bf16.msra.mxu1 %v6638_v14  ;;  %v6674_v14 = vld [vmem:[%s7663_s5 + $0x1b8] sm:$0xff]  }
 0x73b   : > { %5782 = vmatprep.subr.bf16.mxu1 %v6640_v11  ;;  %v6675_v11 = vld [vmem:[%s7663_s5 + $0x208] sm:$0xff]  }
 0x73e   : > { %5783 = vmatpush3.bf16.msra.mxu1 %v6642_v15  ;;  %v6676_v15 = vld [vmem:[%s7663_s5 + $0x250] sm:$0xff]  }
 0x73f   : > { %5812 = vmatprep.subr.bf16.mxu1 %v6645_v38  ;;  %v6677_v38 = vld [vmem:[%s7663_s5 + $0x2c0] sm:$0xff]  }
 0x7cc   : > { %v3782_v52 = vpop.f32.mrb[24].mxu1 }
 0x7cd   : > { %v3784_v40 = vpop.f32.mrb[25].mxu1  ;;  %v3994_v19 = vpack.c.bf16 %v3782_v52, %v3782_v52 }
 0x7ce   : > { %v3995_v16 = vpack.c.bf16 %v3784_v40, %v3784_v40  ;;  %v3786_v17 = vpop.f32.mrb[26].mxu1 }
 0x7cf   : > { %v3787_v20 = vpop.f32.mrb[27].mxu1  ;;  %v6678_v17 = vld [vmem:[%s7663_s5 + $0x210] sm:$0xff]  }
 0x7d0   : > { %4807 = vmatprep.mubr.bf16.mxu0 %v3995_v16 }
 0x7d1   : > { %4808 = vmatmul.mubr.bf16.vlgmr.msra.gmra.mrb[8].mxu0 %v3994_v19 }
 0x7d2   : > { %5791 = vmatpush3.bf16.msra.mxu0 %v6639_v18  ;;  %v6679_v18 = vld [vmem:[%s7663_s5 + $0x280] sm:$0xff]  }
 0x7d3   : > { %5792 = vmatprep.subr.bf16.mxu0 %v6641_v21 }
 0x7d4   : > { %v3823_v23 = vpop.f32.mrb[28].mxu1 }
 0x7d5   : > { %v3825_v24 = vpop.f32.mrb[29].mxu1  ;;  %v3996_v8 = vpack.c.bf16 %v3823_v23, %v3823_v23  ;;  %v6682_v23 = vld [vmem:[%s7663_s5 + $0x218] sm:$0xff]  }
 0x7d6   : > { %v3997_v25 = vpack.c.bf16 %v3825_v24, %v3825_v24  ;;  %5793 = vmatpush3.bf16.msra.mxu0 %v6643_v12  ;;  %v3827_v7 = vpop.f32.mrb[30].mxu1  ;;  %v6680_v12 = vld [vmem:[%s7663_s5 + $0x258] sm:$0xff]   ;;  %v6683_v24 = vld [vmem:[%s7663_s5 + $0x288] sm:$0xff]  }
 0x7d7   : > { %v3828_v29 = vpop.f32.mrb[31].mxu1  ;;  %5794 = vmatprep.subr.bf16.mxu0 %v6644_v22  ;;  %v6681_v22 = vld [vmem:[%s7663_s5 + $0x2c8] sm:$0xff]   ;;  %v6685_v7 = vld [vmem:[%s7663_s5 + $0x2d0] sm:$0xff]  }
 0x7d8   : > { %4847 = vmatprep.mubr.bf16.mxu1 %v3997_v25  ;;  %v6684_v25 = vld [vmem:[%s7663_s5 + $0x260] sm:$0xff]   ;;  %v6689_v29 = vld [vmem:[%s7663_s5 + $0x2d8] sm:$0xff]  }
 0x7d9   : > { %4848 = vmatmul.mubr.bf16.vlgmr.msra.gmra.mrb[48].mxu1 %v3996_v8  ;;  %v6688_v8 = vld [vmem:[%s7663_s5 + $0x268] sm:$0xff]  }
 0x7da   : > { %5795 = vmatpush3.bf16.msra.mxu0 %v6646_v26  ;;  %5813 = vmatpush3.bf16.msra.mxu1 %v6647_v27  ;;  %v6686_v26 = vld [vmem:[%s7663_s5 + $0x220] sm:$0xff]   ;;  %v6687_v27 = vld [vmem:[%s7663_s5 + $0x290] sm:$0xff]  }
 0x7db   : > { %5796 = vmatprep.subr.bf16.mxu0 %v6648_v30  ;;  %5814 = vmatprep.subr.bf16.mxu1 %v6649_v31  ;;  %v6690_v30 = vld [vmem:[%s7663_s5 + $0x228] sm:$0xff]   ;;  %v6691_v31 = vld [vmem:[%s7663_s5 + $0x298] sm:$0xff]  }
 0x7dc   : > { %v3864_v36 = vpop.f32.mrb[32].mxu1 }
 0x7dd   : > { %v3866_v37 = vpop.f32.mrb[33].mxu1  ;;  %v3998_v5 = vpack.c.bf16 %v3864_v36, %v3864_v36  ;;  %v6696_v36 = vld [vmem:[%s7663_s5 + $0x278] sm:$0xff]  }
 0x7de   : > { %v3999_v39 = vpack.c.bf16 %v3866_v37, %v3866_v37  ;;  %5797 = vmatpush3.bf16.msra.mxu0 %v6650_v32  ;;  %5815 = vmatpush3.bf16.msra.mxu1 %v6651_v33  ;;  %v3868_v41 = vpop.f32.mrb[34].mxu1  ;;  %v6692_v32 = vld [vmem:[%s7663_s5 + $0x270] sm:$0xff]   ;;  %v6693_v33 = vld [vmem:[%s7663_s5 + $0x2e0] sm:$0xff]   ;;  %v6697_v37 = vld [vmem:[%s7663_s5 + $0x2e8] sm:$0xff]  }
 0x7df   : > { %v3869_v45 = vpop.f32.mrb[35].mxu1  ;;  %5798 = vmatprep.subr.bf16.mxu0 %v6652_v34  ;;  %5816 = vmatprep.subr.bf16.mxu1 %v6653_v35  ;;  %v6694_v34 = vld [vmem:[%s7663_s5 + $0x230] sm:$0xff]   ;;  %v6695_v35 = vld [vmem:[%s7663_s5 + $0x2a0] sm:$0xff]   ;;  %v6699_v41 = vld [vmem:[%s7663_s5 + $0x2a8] sm:$0xff]  }
 0x7e0   : > { %4887 = vmatprep.mubr.bf16.mxu0 %v3999_v39  ;;  %v6698_v39 = vld [vmem:[%s7663_s5 + $0x238] sm:$0xff]  }
 0x7e2   : > { %5799 = vmatpush3.bf16.msra.mxu0 %v6654_v2  ;;  %5817 = vmatpush3.bf16.msra.mxu1 %v6655_v42  ;;  %v6700_v2 = vld [vmem:[%s7663_s5 + $0x2f0] sm:$0xff]  }
 0x7e3   : > { %5800 = vmatprep.subr.bf16.mxu0 %v6656_v46  ;;  %5818 = vmatprep.subr.bf16.mxu1 %v6657_v47  ;;  %v6701_v42 = vld [vmem:[%s7663_s5 + $0x2b0] sm:$0xff]   ;;  %v6702_v46 = vld [vmem:[%s7663_s5 + $0x2f8] sm:$0xff]  }
 0x7e4   : > { %v3905_v51 = vpop.f32.mrb[36].mxu1  ;;  %v6703_v47 = vld [vmem:[%s7663_s5 + $0x2b8] sm:$0xff]  }
 0x7e5   : > { %v3907_v56 = vpop.f32.mrb[37].mxu1  ;;  %v4000_v19 = vpack.c.bf16 %v3905_v51, %v3905_v51 }
 0x7e6   : > { %v4001_v57 = vpack.c.bf16 %v3907_v56, %v3907_v56  ;;  %5801 = vmatpush3.bf16.msra.mxu0 %v6658_v54  ;;  %5819 = vmatpush3.bf16.msra.mxu1 %v6659_v48  ;;  %v3909_v59 = vpop.f32.mrb[38].mxu1 }
 0x7e7   : > { %v3910_v4 = vpop.f32.mrb[39].mxu1  ;;  %5802 = vmatprep.subr.bf16.mxu0 %v6660_v49  ;;  %5820 = vmatprep.subr.bf16.mxu1 %v6661_v50 }
 0x7e8   : > { %4927 = vmatprep.mubr.bf16.mxu1 %v4001_v57  ;;  %v4198_v57 = vld [vmem:[%s7664_s6] sm:$0x1] }
 0x7ea   : > { %5803 = vmatpush3.bf16.msra.mxu0 %v6662_v58  ;;  %5821 = vmatpush3.bf16.msra.mxu1 %v6663_v28 }
 0x7eb   : > { %5804 = vmatprep.subr.bf16.mxu0 %v6664_v43  ;;  %5822 = vmatprep.subr.bf16.mxu1 %v6665_v44 }
 0x7ec   : > { %v7464_v0 = vpop.f32.mrb[40].mxu1 }
 0x7ed   : > { %v3948_v1 = vpop.f32.mrb[41].mxu1  ;;  %v4002_v45 = vpack.c.bf16 %v7464_v0, %v7464_v0 }
 0x7ee   : > { %5805 = vmatpush3.bf16.msra.mxu0 %v6666_v60  ;;  %5823 = vmatpush3.bf16.msra.mxu1 %v6667_v61  ;;  %v3950_v53 = vpop.f32.mrb[42].mxu1  ;;  %v4003_v6 = vpack.c.bf16 %v3948_v1, %v3948_v1 }
 0x7ef   : > { %v3951_v9 = vpop.f32.mrb[43].mxu1  ;;  %5824 = vmatprep.subr.bf16.mxu1 %v6668_v62  ;;  %5834 = vmatprep.subr.bf16.mxu0 %v6669_v63 }
 0x7f1   : > { %4888 = vmatmul.mubr.bf16.vlgmr.msra.gmra.mrb[12].mxu0 %v3998_v5 }
 0x7f2   : > { %5825 = vmatpush3.bf16.msra.mxu1 %v6670_v55  ;;  %5835 = vmatpush3.bf16.msra.mxu0 %v6671_v3 }
 0x7f3   : > { %4967 = vmatprep.mubr.bf16.mxu0 %v4003_v6  ;;  %5826 = vmatprep.subr.bf16.mxu1 %v6672_v10 }
 0x7f4   : > { %v7490_v52 = vpop.f32.mrb[44].mxu1  ;;  %5836 = vmatprep.subr.bf16.mxu0 %v6673_v13 }
 0x7f5   : > { %v3989_v40 = vpop.f32.mrb[45].mxu1  ;;  %v4004_v54 = vpack.c.bf16 %v7490_v52, %v7490_v52 }
 0x7f6   : > { %5827 = vmatpush3.bf16.msra.mxu1 %v6674_v14  ;;  %5837 = vmatpush3.bf16.msra.mxu0 %v6675_v11  ;;  %v3991_v16 = vpop.f32.mrb[46].mxu1  ;;  %v4005_v20 = vpack.c.bf16 %v3989_v40, %v3989_v40 }
 0x7f7   : > { %v3992_v21 = vpop.f32.mrb[47].mxu1  ;;  %5838 = vmatprep.subr.bf16.mxu0 %v6676_v15  ;;  %5856 = vmatprep.subr.bf16.mxu1 %v6677_v38 }
 0x7f9   : > { %4928 = vmatmul.mubr.bf16.vlgmr.msra.gmra.mrb[52].mxu1 %v4000_v19 }
 0x7fa   : > { %5839 = vmatpush3.bf16.msra.mxu0 %v6678_v17  ;;  %5857 = vmatpush3.bf16.msra.mxu1 %v6679_v18 }
 0x7fb   : > { %5007 = vmatprep.mubr.bf16.mxu1 %v4005_v20  ;;  %5840 = vmatprep.subr.bf16.mxu0 %v6680_v12 }
 0x7fc   : > { %5858 = vmatprep.subr.bf16.mxu1 %v6681_v22 }
 0x7fe   : > { %5841 = vmatpush3.bf16.msra.mxu0 %v6682_v23  ;;  %5859 = vmatpush3.bf16.msra.mxu1 %v6683_v24 }
 0x7ff   : > { %5842 = vmatprep.subr.bf16.mxu0 %v6684_v25  ;;  %5860 = vmatprep.subr.bf16.mxu1 %v6685_v7 }
 0x802   : > { %5843 = vmatpush3.bf16.msra.mxu0 %v6686_v26  ;;  %5861 = vmatpush3.bf16.msra.mxu1 %v6687_v27 }
 0x803   : > { %5844 = vmatprep.subr.bf16.mxu0 %v6688_v8  ;;  %5862 = vmatprep.subr.bf16.mxu1 %v6689_v29 }
 0x806   : > { %5845 = vmatpush3.bf16.msra.mxu0 %v6690_v30  ;;  %5863 = vmatpush3.bf16.msra.mxu1 %v6691_v31 }
 0x807   : > { %5846 = vmatprep.subr.bf16.mxu0 %v6692_v32  ;;  %5864 = vmatprep.subr.bf16.mxu1 %v6693_v33 }
 0x80a   : > { %5847 = vmatpush3.bf16.msra.mxu0 %v6694_v34  ;;  %5865 = vmatpush3.bf16.msra.mxu1 %v6695_v35 }
 0x80b   : > { %5848 = vmatprep.subr.bf16.mxu0 %v6696_v36  ;;  %5866 = vmatprep.subr.bf16.mxu1 %v6697_v37 }
 0x80e   : > { %5849 = vmatpush3.bf16.msra.mxu0 %v6698_v39  ;;  %5867 = vmatpush3.bf16.msra.mxu1 %v6699_v41 }
 0x80f   : > { %5868 = vmatprep.subr.bf16.mxu1 %v6700_v2 }
 0x811   : > { %4968 = vmatmul.mubr.bf16.vlgmr.msra.gmra.mrb[16].mxu0 %v4002_v45 }
 0x812   : > { %5869 = vmatpush3.bf16.msra.mxu1 %v6701_v42 }
 0x813   : > { %5870 = vmatprep.subr.bf16.mxu1 %v6702_v46 }
 0x816   : > { %5871 = vmatpush3.bf16.msra.mxu1 %v6703_v47 }
 0x819   : > { %5008 = vmatmul.mubr.bf16.vlgmr.msra.gmra.mrb[56].mxu1 %v4004_v54 }
 0x8a4   : > { %v5762_v48 = vpop.f32.mrb[8].mxu0 }
 0x8a5   : > { %v5763_v49 = vpop.f32.mrb[9].mxu0 }
 0x8a6   : > { %v5764_v50 = vadd.f32 %v5763_v49, %v5762_v48  ;;  %v5765_v51 = vpop.f32.mrb[10].mxu0 }
 0x8a7   : > { %v5766_v56 = vpop.f32.mrb[11].mxu0 }
 0x8a8   : > { %v4810_v28 = vadd.f32 %v5764_v50, %v4198_v57 }
 0x8ac   : > { %v5784_v59 = vpop.f32.mrb[48].mxu1 }
 0x8ad   : > { %v5785_v58 = vpop.f32.mrb[49].mxu1 }
 0x8ae   : > { %v5786_v4 = vadd.f32 %v5785_v58, %v5784_v59  ;;  %v5787_v43 = vpop.f32.mrb[50].mxu1 }
 0x8af   : > { %v5788_v44 = vpop.f32.mrb[51].mxu1 }
 0x8b0   : > { %v4850_v60 = vadd.f32 %v5786_v4, %v4810_v28 }
 0x8c4   : > { %v5806_v61 = vpop.f32.mrb[12].mxu0 }
 0x8c5   : > { %v5807_v62 = vpop.f32.mrb[13].mxu0 }
 0x8c6   : > { %v5808_v63 = vadd.f32 %v5807_v62, %v5806_v61  ;;  %v5809_v0 = vpop.f32.mrb[14].mxu0 }
 0x8c7   : > { %v5810_v1 = vpop.f32.mrb[15].mxu0 }
 0x8c8   : > { %v4890_v53 = vadd.f32 %v5808_v63, %v4850_v60 }
 0x8cc   : > { %v5828_v55 = vpop.f32.mrb[52].mxu1 }
 0x8cd   : > { %v5829_v3 = vpop.f32.mrb[53].mxu1 }
 0x8ce   : > { %v5830_v5 = vadd.f32 %v5829_v3, %v5828_v55  ;;  %v5831_v6 = vpop.f32.mrb[54].mxu1 }
 0x8cf   : > { %v5832_v9 = vpop.f32.mrb[55].mxu1 }
 0x8d0   : > { %v4930_v10 = vadd.f32 %v5830_v5, %v4890_v53 }
 0x8e4   : > { %v5850_v13 = vpop.f32.mrb[16].mxu0 }
 0x8e5   : > { %v5851_v14 = vpop.f32.mrb[17].mxu0 }
 0x8e6   : > { %v5852_v11 = vadd.f32 %v5851_v14, %v5850_v13  ;;  %v5853_v15 = vpop.f32.mrb[18].mxu0 }
 0x8e7   : > { %v5854_v38 = vpop.f32.mrb[19].mxu0 }
 0x8e8   : > { %v4970_v52 = vadd.f32 %v5852_v11, %v4930_v10 }
 0x8ec   : > { %v5872_v40 = vpop.f32.mrb[56].mxu1 }
 0x8ed   : > { %v5873_v16 = vpop.f32.mrb[57].mxu1 }
 0x8ee   : > { %v5874_v17 = vadd.f32 %v5873_v16, %v5872_v40  ;;  %v5875_v18 = vpop.f32.mrb[58].mxu1 }
 0x8ef   : > { %v5876_v19 = vpop.f32.mrb[59].mxu1 }
 0x8f0   : > { %v5010_v20 = vadd.f32 %v5874_v17, %v4970_v52 }
 0x8f2   : > { %v5016_v21 = vsel %vm5015_vm3, %v5010_v20, -inf }
 0x8f3   : > { %5017 = vmax.xlane.f32.xlu1 %v5016_v21 }
 0x980   : > { %v5018_v12 = vpop.xlane.xlu1 %5017 }
 0x981   : > { %v5019_v22 = vsub.f32 %v5010_v20, %v5018_v12 }
 0x983   : > { %v5020_v23 = vmul.f32 1.442695, %v5019_v22 }
 0x985   : > { %6708 = vpow2.f32 %v5020_v23 }
 0x98f   : > { %v6709_v24 = vpop.eup %6708 }
 0x990   : > { %v5022_v25 = vsel %vm5015_vm3, %v6709_v24, 0.0 }
 0x991   : > { %5023 = vadd.xlane.f32.xlu1 %v5022_v25 }
 0x992   : > { %6781 = shalt.err (!%p6778_p6)
}
 0x993   : > { %s6782_s21 = scalar_lea.hbm %s7584_s29, 128  ;;  %s6786_s11 = scalar_lea.hbm %s7666_s8, 256 }
 0x994   : > { %p6783_p7 = scmp.ne.s32.totalorder %s7584_s29, %s6782_s21  ;;  %p6787_p0 = scmp.lt.u32.totalorder %s7584_s29, %s7666_s8 }
 0x995   : > { %p6788_p1 = scmp.lt.u32.totalorder %s6786_s11, %s6782_s21  ;;  %p6790_p4 = scmp.lt.u32.totalorder %s6782_s21, %s7584_s29 }
 0x996   : > { %p6784_p9 = pnand %p6783_p7, %p7685_p8 }
 0x997   : > { %p6789_p13 = por %p6788_p1, %p6787_p0 }
 0x998   : > { %p6785_p12 = pneg %p6784_p9 }
 0x999   : > { %p6791_p10 = por %p6790_p4, %p6789_p13 }
 0x99b   : > { %p6792_p11 = pnand %p6791_p10, %p6785_p12 }
 0x99d   : > { %6795 = shalt.err (!%p6792_p11)
}
 0x99e   : > { %5930 = dma.vmem_to_hbm [thread:$0]  (%p7685_p8), %s5061_s16, 128, %s7584_s29, %s5033_s9  }
 0x99f   : > { %s5724_s24 = sshll.u32 %s6878_s30, 4  ;;  %s345_s22 = scalar_lea.vmem [#allocation9], %s7282_s14 }
 0x9a0   : > { %s5046_s18 = sshll.u32 %s345_s22, 4  ;;  %s7609_s20 = scalar_lea.hbm %s7665_s7, %s5724_s24  ;;  %s7611_s18 = int_to_ptr.vmem [resolvable:$true] %s5046_s18 }
 0x9a1   : > { %s5029_s16 = scalar_lea.sflag [#allocation6], %s7282_s14  ;;  %s6796_s29 = scalar_lea.vmem %s7611_s18, 16 }
 0x9a2   : > { %p6797_p2 = scmp.ne.s32.totalorder %s7611_s18, %s6796_s29  ;;  %s6897_s30 = smov [#allocation9]  }
 0x9a3   : > { %s6800_s9 = sshll.u32 %s6897_s30, 4  ;;  %s6801_s9 = int_to_ptr.vmem [resolvable:$false] %s6800_s9 }
 0x9a4   : > { %p6798_p3 = pnand %p6797_p2, %p7685_p8  ;;  %s6802_s21 = scalar_lea.vmem %s6801_s9, 32 }
 0x9a5   : > { %p6803_p6 = scmp.lt.s32.totalorder %s7611_s18, %s6801_s9  ;;  %p6804_p7 = scmp.lt.s32.totalorder %s6802_s21, %s6796_s29 }
 0x9a6   : > { %p6799_p5 = pneg %p6798_p3 }
 0x9a7   : > { %p6805_p9 = por %p6804_p7, %p6803_p6 }
 0x9a9   : > { %p6806_p12 = pnand %p6805_p9, %p6799_p5 }
 0xa1e   : > { %v5024_v7 = vpop.xlane.xlu1 %5023 }
 0xa1f   : > { %6710 = vrcp.f32 %v5024_v7 }
 0xa29   : > { %v6711_v26 = vpop.eup %6710 }
 0xa2a   : > { %v5026_v27 = vmul.f32 %v6711_v26, %v6709_v24 }
 0xa2c   : > { %5027 = vst.msk [vmem:[%s345_s22] sm:$0x1] %vm5015_vm3, %v5026_v27 }
 0xa2d   : > { %6809 = shalt.err (!%p6806_p12)
}
 0xa2e   : > { %s6810_s14 = scalar_lea.hbm %s7609_s20, 16  ;;  %s6814_s11 = scalar_lea.hbm %s7665_s7, 32 }
 0xa2f   : > { %p6811_p0 = scmp.ne.s32.totalorder %s7609_s20, %s6810_s14  ;;  %p6815_p4 = scmp.lt.u32.totalorder %s7609_s20, %s7665_s7 }
 0xa30   : > { %p6816_p10 = scmp.lt.u32.totalorder %s6814_s11, %s6810_s14  ;;  %p6818_p2 = scmp.lt.u32.totalorder %s6810_s14, %s7609_s20 }
 0xa31   : > { %p6812_p1 = pnand %p6811_p0, %p7685_p8 }
 0xa32   : > { %p6817_p11 = por %p6816_p10, %p6815_p4 }
 0xa33   : > { %p6813_p13 = pneg %p6812_p1 }
 0xa34   : > { %p6819_p3 = por %p6818_p2, %p6817_p11 }
 0xa36   : > { %p6820_p5 = pnand %p6819_p3, %p6813_p13 }
 0xa38   : > { %6823 = shalt.err (!%p6820_p5)
}
 0xa39   : > { %5929 = dma.vmem_to_hbm [thread:$0]  (%p7685_p8), %s7611_s18, 16, %s7609_s20, %s5029_s16  }
 0xa3a PF: > { %p5951_p6 = scmp.ge.s32.totalorder %s6886_s10, 2  ;;  %s5072_s24 = sand.u32 1, %s6866_s27  }
 0xa3b   : > { %p7686_p7 = scmp.ne.s32.totalorder %s7678_s17, 0  ;;  %s5073_s22 = scalar_lea.sflag [#allocation6], %s5072_s24 }
 0xa3d   : > { %p5941_p9 = pnand %p5951_p6, %p7686_p7 }
 0xa3f   : > { %6857 = dma.done.wait (!%p5941_p9), %s5073_s22, 16  }
 0xa40   : > { %6859 = vsyncadd (!%p5941_p9), %s5073_s22, 4294967280  ;;  %s5081_s26 = scalar_lea.sflag [#allocation11], %s5072_s24 }
 0xa41   : > { %6861 = dma.done.wait (!%p5941_p9), %s5081_s26, 128  }
 0xa42   : > { %6863 = vsyncadd (!%p5941_p9), %s5081_s26, 4294967168  ;;  %s27_s10 = sadd.s32 1, %s6886_s10   ;;  %s7687_s15 = sld [smem:[#allocation16_spill]] }
 0xa43   : > { %p24_p12 = scmp.ge.s32.totalorder %s27_s10, 4   ;;  %s7688_s29 = sld [smem:[#allocation19_spill]] }
 0xa44   : > { %s7689_s30 = sld [smem:[#allocation17_spill]]  ;;  %s7690_s9 = sld [smem:[#allocation18_spill]] }
 0xa45   : > { %s7691_s27 = smov %s6870_s28  ;;  %26 = sbr.rel (!%p24_p12) target bundleno = 8 (0x8), region = 117 }
 0xa48   : > { %s7692_s28 = smov %s7687_s15 }
 0xa4c   :  { %5086 = vsyncpa [#allocation5], 1 }
 0xa4d   :  { %5088 = vsyncpa [#allocation5 + $0x1], 1 }
 0xa4e   :  { %5089 = vsyncpa [#allocation8], 1 }
 0xa4f   :  { %5090 = vsyncpa [#allocation6], 1 }
 0xa50   :  { %5092 = vsyncpa [#allocation6 + $0x1], 1 }
 0xa51   :  { %5093 = vsyncpa [#allocation11], 1 }
 0xa52   :  { %5095 = vsyncpa [#allocation11 + $0x1], 1 }

// kernel: tpu_custom_call.1
= control target key start
LH: loop header
LB: loop body
LE: loop exit
PB: predicated region body
PF: predicated region fallthrough
CT: control target
= control target key end

     0   :  { %14 = vsyncpa [#allocation5], 0  ;;  %s7658_s0 = inlined_call_operand.vmem [shape: bf16[2,8,1536], index: 0, kind: input, shape index: {}]   ;;  %s7659_s1 = inlined_call_operand.hbm [shape: bf16[1536,256], index: 1, kind: input, shape index: {}]   ;;  %s7660_s2 = inlined_call_operand.vmem [shape: f32[1,256], index: 2, kind: input, shape index: {}]   ;;  %s7661_s3 = inlined_call_operand.hbm [shape: bf16[256,1536], index: 3, kind: input, shape index: {}]   ;;  %s7662_s4 = inlined_call_operand.vmem [shape: f32[1,1536], index: 4, kind: input, shape index: {}]   ;;  %s7663_s5 = inlined_call_operand.vmem [shape: bf16[1536,2], index: 5, kind: input, shape index: {}]   ;;  %s7664_s6 = inlined_call_operand.vmem [shape: f32[1,2], index: 6, kind: input, shape index: {}]   ;;  %s7665_s7 = inlined_call_operand.hbm [shape: f32[2,1,2], index: 7, kind: output, shape index: {0}]   ;;  %s7666_s8 = inlined_call_operand.hbm [shape: f32[2,8,8], index: 8, kind: output, shape index: {1}]  }
   0x1   :  { %15 = vsyncpa [#allocation8], 0 }
   0x2   :  { %16 = vsyncpa [#allocation6], 0 }
   0x3   :  { %18 = vsyncpa [#allocation6 + $0x1], 0 }
   0x4   :  { %19 = vsyncpa [#allocation11], 0 }
   0x5   :  { %21 = vsyncpa [#allocation11 + $0x1], 0  ;;  %s6943_s27 = smov 0   ;;  %s6945_s28 = smov 0  }
   0x6   :  { %s6947_s29 = smov 0   ;;  %s6949_s30 = smov 0  }
   0x7   :  { %s6951_s9 = smov 0   ;;  %s6953_s10 = smov 0  }
   0x8 LB: > { %7674 = sst [smem:[#allocation16_spill]] %s6874_s29  ;;  %s5178_s11 = sadd.s32 4294967295, %s6886_s10   ;;  %s6886_s10 = sphi %s6953_s10, %s27_s10   ;;  %s6882_s9 = sphi %s6951_s9, %s7690_s9   ;;  %s6878_s30 = sphi %s6949_s30, %s7689_s30   ;;  %s6874_s29 = sphi %s6947_s29, %s7688_s29   ;;  %s6870_s28 = sphi %s6945_s28, %s7692_s28   ;;  %s6866_s27 = sphi %s6943_s27, %s7691_s27  }
   0x9   : > { %7675 = sst [smem:[#allocation17_spill]] %s6882_s9  ;;  %s5179_s12 = sadd.s32 4294967294, %s6886_s10  }
   0xa   : > { %s39_s13 = sadd.s32 1, %s6882_s9  ;;  %s198_s14 = sadd.s32 1, %s6874_s29 }
   0xb   : > { %p41_p0 = scmp.ge.s32.totalorder %s39_s13, 2  ;;  %p208_p1 = scmp.ne.s32.totalorder %s6874_s29, %s6870_s28 }
   0xc   : > { %p209_p2 = scmp.eq.s32.totalorder %s5178_s11, 1  ;;  %p214_p3 = scmp.ne.s32.totalorder %s6870_s28, %s6866_s27 }
   0xd   : > { %s7694_s13 = smov (%p41_p0, %s39_s13), 0  ;;  %p215_p5 = scmp.eq.s32.totalorder %s5179_s12, 1 }
   0xe   : > { %7676 = sst [smem:[#allocation18_spill]] %s7694_s13  ;;  %p6983_p4 = por %p209_p2, %p208_p1 }
   0xf   : > { %s195_s16 = ssub.s32 %s6882_s9, %s7694_s13  ;;  %p5180_p6 = scmp.ge.s32.totalorder %s6886_s10, 1 }
  0x10   : > { %s7677_s15 = scalar_select %p6983_p4, 1, 0 }
  0x11   : > { %p196_p7 = scmp.eq.s32.totalorder %s195_s16, 0  ;;  %p6990_p8 = por %p215_p5, %p214_p3 }
  0x12   : > { %p250_p9 = scmp.lt.s32.totalorder %s6886_s10, 3  ;;  %p7002_p11 = scmp.eq.s32.totalorder %s5178_s11, 0 }
  0x13   : > { %s7678_s17 = scalar_select %p6990_p8, 1, 0 }
  0x14   : > { %s6996_s18 = scalar_select %p196_p7, %s6874_s29, %s198_s14  }
  0x15   : > { %p6998_p10 = pnand %p5180_p6, %p250_p9  ;;  %s6888_s21 = smov [#allocation4]  }
  0x16   : > { %7679 = sst [smem:[#allocation19_spill]] %s6996_s18  ;;  %s262_s22 = sshll.u32 %s6888_s21, 4  ;;  %s263_s22 = int_to_ptr.vmem [resolvable:$true] %s262_s22 }
  0x17   : > { %s7680_s19 = scalar_select %p6998_p10, 1, 0 }
  0x18   : > { %s7681_s20 = scalar_select %p7002_p11, 1, 0 }
  0x19   : > { %p5933_p12 = pneg %p6998_p10  ;;  %s6889_s24 = smov [#allocation7]  }
  0x1a   : > { %s278_s25 = sshll.u32 %s6889_s24, 4  ;;  %s6712_s12 = scalar_lea.hbm %s7659_s1, 24576  ;;  %s7014_s25 = int_to_ptr.vmem [resolvable:$true] %s278_s25 }
  0x1b   : > { %p7010_p13 = pnand %p7002_p11, %p5933_p12  ;;  %p6713_p0 = scmp.ne.s32.totalorder %s7659_s1, %s6712_s12 }
  0x1c   : > { %p6719_p5 = scmp.lt.u32.totalorder %s6712_s12, %s7659_s1 }
  0x1d   : > { %p6714_p1 = pneg %p7010_p13 }
  0x1f   : > { %p6715_p2 = pnand %p6714_p1, %p6713_p0 }
  0x21   : > { %p6716_p3 = pneg %p6715_p2 }
  0x23   : > { %p6721_p6 = pnand %p6719_p5, %p6716_p3 }
  0x25   : > { %6724 = shalt.err (!%p6721_p6)
}
  0x26   : > { %s6725_s24 = scalar_lea.vmem %s263_s22, 24576  ;;  %p6733_p8 = scmp.lt.s32.totalorder %s263_s22, %s263_s22 }
  0x27   : > { %p6726_p7 = scmp.ne.s32.totalorder %s263_s22, %s6725_s24  ;;  %p6734_p4 = scmp.lt.s32.totalorder %s6725_s24, %s6725_s24 }
  0x29   : > { %p6728_p9 = pnand %p6726_p7, %p6714_p1  ;;  %p6735_p11 = por %p6734_p4, %p6733_p8 }
  0x2b   : > { %p6729_p12 = pneg %p6728_p9 }
  0x2d   : > { %p6736_p10 = pnand %p6735_p11, %p6729_p12 }
  0x2f   : > { %6739 = shalt.err (!%p6736_p10)
}
  0x30   : > { %s6890_s26 = smov 128   ;;  %s6891_s11 = smov 8  }
  0x31   : > { %5936 = dma.hbm_to_vmem [thread:$0]  (!%p7010_p13), %s7659_s1, 24576, %s263_s22, [#allocation5], %s6890_s26, %s6890_s26, %s6891_s11  }
  0x32   : > { %s6740_s21 = scalar_lea.hbm %s7661_s3, 24576 }
  0x33   : > { %p6741_p0 = scmp.ne.s32.totalorder %s7661_s3, %s6740_s21  ;;  %p6747_p10 = scmp.lt.u32.totalorder %s6740_s21, %s7661_s3 }
  0x35   : > { %p6743_p4 = pnand %p6741_p0, %p6714_p1 }
  0x37   : > { %p6744_p8 = pneg %p6743_p4 }
  0x39   : > { %p6749_p11 = pnand %p6747_p10, %p6744_p8 }
  0x3b   : > { %6752 = shalt.err (!%p6749_p11)
}
  0x3c   : > { %s6753_s22 = scalar_lea.vmem %s7014_s25, 24576  ;;  %p6761_p6 = scmp.lt.s32.totalorder %s7014_s25, %s7014_s25 }
  0x3d   : > { %p6754_p2 = scmp.ne.s32.totalorder %s7014_s25, %s6753_s22  ;;  %p6762_p7 = scmp.lt.s32.totalorder %s6753_s22, %s6753_s22 }
  0x3f   : > { %p6756_p3 = pnand %p6754_p2, %p6714_p1  ;;  %p6763_p9 = por %p6762_p7, %p6761_p6 }
  0x41   : > { %p6757_p5 = pneg %p6756_p3 }
  0x43   : > { %p6764_p12 = pnand %p6763_p9, %p6757_p5 }
  0x45   : > { %6767 = shalt.err (!%p6764_p12)
}
  0x46   : > { %s6892_s29 = smov 768   ;;  %s6893_s9 = smov 48  }
  0x47   : > { %5939 = dma.hbm_to_vmem [thread:$0]  (!%p7010_p13), %s7661_s3, 24576, %s7014_s25, [#allocation8], %s6892_s29, %s6892_s29, %s6893_s9  }
  0x48   : > { %p7683_p0 = scmp.ne.s32.totalorder %s7680_s19, 0 }
  0x49   : > { %p7684_p1 = scmp.ne.s32.totalorder (!%p7683_p0), %s7681_s20, 0 }
  0x4a   : > { %311 = sbr.rel (%p7683_p0) target bundleno = 2618 (0xa3a), region = 48 }
  0x51   : > { %6849 = dma.done.wait (%p7684_p1), [#allocation5], 24576  }
  0x52   : > { %6851 = vsyncadd (%p7684_p1), [#allocation5], 4294942720 }
  0x53   : > { %6853 = dma.done.wait (%p7684_p1), [#allocation8], 24576  }
  0x54   : > { %6855 = vsyncadd (%p7684_p1), [#allocation8], 4294942720  ;;  %v6008_v0 = vld [vmem:[#allocation4 + $0x4] ss:$8 sps:$4 sm:$0xff]   ;;  %v6010_v1 = vld [vmem:[#allocation4] ss:$8 sps:$4 sm:$0xff]  }
  0x55   : > { %1575 = vmatprep.subr.bf16.mxu0 %v6008_v0  ;;  %v6011_v2 = vld [vmem:[#allocation4 + $0x14] ss:$8 sps:$4 sm:$0xff]   ;;  %v6013_v3 = vld [vmem:[#allocation4 + $0x10] ss:$8 sps:$4 sm:$0xff]   ;;  %v6014_v4 = vld [vmem:[#allocation4 + $0x24] ss:$8 sps:$4 sm:$0xff]  }
  0x56   : > { %1576 = vmatpush1.bf16.msra.mxu0 %v6010_v1  ;;  %p353_p13 = scmp.lt.s32.totalorder %s6878_s30, 1  ;;  %v6016_v5 = vld [vmem:[#allocation4 + $0x20] ss:$8 sps:$4 sm:$0xff]   ;;  %v6017_v6 = vld [vmem:[#allocation4 + $0x34] ss:$8 sps:$4 sm:$0xff]   ;;  %vm3711_vm0 = vcmask 1043456  }
  0x57   : > { %1577 = vmatprep.subr.bf16.mxu0 %v6011_v2  ;;  %v6019_v7 = vld [vmem:[#allocation4 + $0x30] ss:$8 sps:$4 sm:$0xff]   ;;  %v6020_v8 = vld [vmem:[#allocation4 + $0x44] ss:$8 sps:$4 sm:$0xff]   ;;  %v6022_v9 = vld [vmem:[#allocation4 + $0x40] ss:$8 sps:$4 sm:$0xff]  }
  0x58   : > { %s354_s19 = scalar_select %p353_p13, %s6878_s30, 1  ;;  %v6023_v10 = vld [vmem:[#allocation4 + $0x54] ss:$8 sps:$4 sm:$0xff]   ;;  %v6025_v11 = vld [vmem:[#allocation4 + $0x50] ss:$8 sps:$4 sm:$0xff]   ;;  %vm3679_vm1 = vcmask 64512  }
  0x59   : > { %v6026_v12 = vld [vmem:[#allocation4 + $0x64] ss:$8 sps:$4 sm:$0xff]   ;;  %v6028_v15 = vld [vmem:[#allocation4 + $0x60] ss:$8 sps:$4 sm:$0xff]   ;;  %v6029_v16 = vld [vmem:[#allocation4 + $0x74] ss:$8 sps:$4 sm:$0xff]  }
  0x5a   : > { %1578 = vmatpush1.bf16.msra.mxu0 %v6013_v3  ;;  %s5920_s20 = smul.u32 48, %s354_s19  ;;  %v6031_v17 = vld [vmem:[#allocation4 + $0x70] ss:$8 sps:$4 sm:$0xff]   ;;  %v6032_v18 = vld [vmem:[#allocation4 + $0x84] ss:$8 sps:$4 sm:$0xff]   ;;  %vm3341_vm2 = vcmask 57344  }
  0x5b   : > { %1579 = vmatprep.subr.bf16.mxu0 %v6014_v4  ;;  %v6034_v19 = vld [vmem:[#allocation4 + $0x80] ss:$8 sps:$4 sm:$0xff]   ;;  %v6035_v20 = vld [vmem:[#allocation4 + $0x94] ss:$8 sps:$4 sm:$0xff]   ;;  %v6037_v21 = vld [vmem:[#allocation4 + $0x90] ss:$8 sps:$4 sm:$0xff]  }
  0x5c   : > { %s7078_s11 = scalar_lea.vmem %s7658_s0, %s5920_s20  ;;  %v6038_v22 = vld [vmem:[#allocation4 + $0xa4] ss:$8 sps:$4 sm:$0xff]   ;;  %v6040_v23 = vld [vmem:[#allocation4 + $0xa0] ss:$8 sps:$4 sm:$0xff]   ;;  %v6041_v24 = vld [vmem:[#allocation4 + $0xb4] ss:$8 sps:$4 sm:$0xff]  }
  0x5d   : > { %v363_v13 = vld [vmem:[%s7078_s11] sm:$0xff]  ;;  %v6043_v25 = vld [vmem:[#allocation4 + $0xb0] ss:$8 sps:$4 sm:$0xff]   ;;  %v7082_v35 = vld [vmem:[%s7078_s11 + $0x8] sm:$0xff]  ;;  %s7282_s14 = sand.u32 1, %s6870_s28   ;;  %vm5015_vm3 = vcmask 8192  }
  0x5e   : > { %1580 = vmatpush1.bf16.msra.mxu0 %v6016_v5  ;;  %v5190_v14 = vcombine.high %v363_v13, %v363_v13  ;;  %v6044_v26 = vld [vmem:[#allocation4 + $0xc4] ss:$8 sps:$4 sm:$0xff]   ;;  %v6046_v27 = vld [vmem:[#allocation4 + $0xc0] ss:$8 sps:$4 sm:$0xff]   ;;  %v6047_v28 = vld [vmem:[#allocation4 + $0xd4] ss:$8 sps:$4 sm:$0xff]   ;;  %v5189_v36 = vcombine.low %v363_v13, %v363_v13  ;;  %v5192_v38 = vcombine.high %v7082_v35, %v7082_v35 }
  0x5f   : > { %1581 = vmatprep.subr.bf16.mxu0 %v6017_v6  ;;  %v6049_v29 = vld [vmem:[#allocation4 + $0xd0] ss:$8 sps:$4 sm:$0xff]   ;;  %v6050_v30 = vld [vmem:[#allocation4 + $0xe4] ss:$8 sps:$4 sm:$0xff]   ;;  %v6052_v31 = vld [vmem:[#allocation4 + $0xe0] ss:$8 sps:$4 sm:$0xff]  }
  0x60   : > { %1607 = vmatprep.mubr.bf16.mxu0 %v5190_v14  ;;  %v6053_v32 = vld [vmem:[#allocation4 + $0xf4] ss:$8 sps:$4 sm:$0xff]   ;;  %v6055_v33 = vld [vmem:[#allocation4 + $0xf0] ss:$8 sps:$4 sm:$0xff]   ;;  %v6060_v34 = vld [vmem:[#allocation4 + $0x104] ss:$8 sps:$4 sm:$0xff]  }
  0x61   : > { %v6058_v37 = vld [vmem:[#allocation4 + $0x100] ss:$8 sps:$4 sm:$0xff]   ;;  %v6063_v39 = vld [vmem:[#allocation4 + $0x114] ss:$8 sps:$4 sm:$0xff]   ;;  %v6061_v40 = vld [vmem:[#allocation4 + $0x110] ss:$8 sps:$4 sm:$0xff]  }
  0x62   : > { %1582 = vmatpush1.bf16.msra.mxu0 %v6019_v7  ;;  %v6066_v41 = vld [vmem:[#allocation4 + $0x124] ss:$8 sps:$4 sm:$0xff]   ;;  %v6064_v42 = vld [vmem:[#allocation4 + $0x120] ss:$8 sps:$4 sm:$0xff]   ;;  %v6069_v43 = vld [vmem:[#allocation4 + $0x134] ss:$8 sps:$4 sm:$0xff]   ;;  %v5191_v7 = vcombine.low %v7082_v35, %v7082_v35 }
  0x63   : > { %1583 = vmatprep.subr.bf16.mxu0 %v6020_v8  ;;  %v6067_v44 = vld [vmem:[#allocation4 + $0x130] ss:$8 sps:$4 sm:$0xff]   ;;  %v6072_v45 = vld [vmem:[#allocation4 + $0x144] ss:$8 sps:$4 sm:$0xff]   ;;  %v6070_v46 = vld [vmem:[#allocation4 + $0x140] ss:$8 sps:$4 sm:$0xff]  }
  0x64   : > { %v6075_v47 = vld [vmem:[#allocation4 + $0x154] ss:$8 sps:$4 sm:$0xff]   ;;  %v6073_v48 = vld [vmem:[#allocation4 + $0x150] ss:$8 sps:$4 sm:$0xff]   ;;  %v6078_v49 = vld [vmem:[#allocation4 + $0x164] ss:$8 sps:$4 sm:$0xff]  }
  0x65   : > { %v6076_v50 = vld [vmem:[#allocation4 + $0x160] ss:$8 sps:$4 sm:$0xff]   ;;  %v6081_v51 = vld [vmem:[#allocation4 + $0x174] ss:$8 sps:$4 sm:$0xff]   ;;  %v6079_v52 = vld [vmem:[#allocation4 + $0x170] ss:$8 sps:$4 sm:$0xff]  }
  0x66   : > { %1584 = vmatpush1.bf16.msra.mxu0 %v6022_v9  ;;  %v6084_v53 = vld [vmem:[#allocation4 + $0x184] ss:$8 sps:$4 sm:$0xff]   ;;  %v6082_v54 = vld [vmem:[#allocation4 + $0x180] ss:$8 sps:$4 sm:$0xff]   ;;  %v6087_v55 = vld [vmem:[#allocation4 + $0x194] ss:$8 sps:$4 sm:$0xff]  }
  0x67   : > { %1585 = vmatprep.subr.bf16.mxu0 %v6023_v10  ;;  %v6085_v56 = vld [vmem:[#allocation4 + $0x190] ss:$8 sps:$4 sm:$0xff]   ;;  %v6090_v57 = vld [vmem:[#allocation4 + $0x1a4] ss:$8 sps:$4 sm:$0xff]   ;;  %v6088_v58 = vld [vmem:[#allocation4 + $0x1a0] ss:$8 sps:$4 sm:$0xff]  }
  0x68   : > { %v6093_v59 = vld [vmem:[#allocation4 + $0x1b4] ss:$8 sps:$4 sm:$0xff]   ;;  %v6091_v60 = vld [vmem:[#allocation4 + $0x1b0] ss:$8 sps:$4 sm:$0xff]   ;;  %v6096_v61 = vld [vmem:[#allocation4 + $0x1c4] ss:$8 sps:$4 sm:$0xff]  }
  0x69   : > { %v6094_v62 = vld [vmem:[#allocation4 + $0x1c0] ss:$8 sps:$4 sm:$0xff]   ;;  %v6099_v63 = vld [vmem:[#allocation4 + $0x1d4] ss:$8 sps:$4 sm:$0xff]   ;;  %v6097_v0 = vld [vmem:[#allocation4 + $0x1d0] ss:$8 sps:$4 sm:$0xff]  }
  0x6a   : > { %1586 = vmatpush1.bf16.msra.mxu0 %v6025_v11  ;;  %v6102_v1 = vld [vmem:[#allocation4 + $0x1e4] ss:$8 sps:$4 sm:$0xff]   ;;  %v6100_v2 = vld [vmem:[#allocation4 + $0x1e0] ss:$8 sps:$4 sm:$0xff]   ;;  %v6105_v3 = vld [vmem:[#allocation4 + $0x1f4] ss:$8 sps:$4 sm:$0xff]  }
  0x6b   : > { %1587 = vmatprep.subr.bf16.mxu0 %v6026_v12  ;;  %v6103_v4 = vld [vmem:[#allocation4 + $0x1f0] ss:$8 sps:$4 sm:$0xff]   ;;  %v6110_v5 = vld [vmem:[#allocation4 + $0x204] ss:$8 sps:$4 sm:$0xff]   ;;  %v6108_v8 = vld [vmem:[#allocation4 + $0x200] ss:$8 sps:$4 sm:$0xff]  }
  0x6c   : > { %v7087_v6 = vld [vmem:[%s7078_s11 + $0x10] sm:$0xff]  ;;  %v6114_v13 = vld [vmem:[#allocation4 + $0x220] ss:$8 sps:$4 sm:$0xff]   ;;  %s5187_s16 = sshll.u32 %s7282_s14, 3  ;;  %s5725_s12 = sshll.u32 %s6878_s30, 7 }
  0x6d   : > { %v6113_v9 = vld [vmem:[#allocation4 + $0x214] ss:$8 sps:$4 sm:$0xff]   ;;  %v5194_v10 = vcombine.high %v7087_v6, %v7087_v6  ;;  %v6111_v11 = vld [vmem:[#allocation4 + $0x210] ss:$8 sps:$4 sm:$0xff]   ;;  %v6116_v12 = vld [vmem:[#allocation4 + $0x224] ss:$8 sps:$4 sm:$0xff]   ;;  %s7584_s29 = scalar_lea.hbm %s7666_s8, %s5725_s12 }
  0x6e   : > { %1588 = vmatpush1.bf16.msra.mxu0 %v6028_v15  ;;  %v6119_v14 = vld [vmem:[#allocation4 + $0x234] ss:$8 sps:$4 sm:$0xff]   ;;  %v6117_v15 = vld [vmem:[#allocation4 + $0x230] ss:$8 sps:$4 sm:$0xff]   ;;  %s7286_s21 = scalar_lea.vmem [#allocation10], %s5187_s16  ;;  %s5033_s9 = scalar_lea.sflag [#allocation11], %s7282_s14 }
  0x6f   : > { %1589 = vmatprep.subr.bf16.mxu0 %v6029_v16  ;;  %v6122_v16 = vld [vmem:[#allocation4 + $0x244] ss:$8 sps:$4 sm:$0xff]   ;;  %v6147_v35 = vld [vmem:[#allocation4 + $0x2d0] ss:$8 sps:$4 sm:$0xff]   ;;  %s5060_s16 = sshll.u32 %s7286_s21, 4  ;;  %p7685_p8 = scmp.ne.s32.totalorder %s7677_s15, 0  ;;  %s5061_s16 = int_to_ptr.vmem [resolvable:$true] %s5060_s16 }
  0x70   : > { %s6768_s18 = scalar_lea.vmem %s5061_s16, 128  ;;  %s6896_s26 = smov [#allocation10]  }
  0x71   : > { %p6769_p4 = scmp.ne.s32.totalorder %s5061_s16, %s6768_s18  ;;  %s6772_s19 = sshll.u32 %s6896_s26, 4  ;;  %s6773_s19 = int_to_ptr.vmem [resolvable:$false] %s6772_s19 }
  0x72   : > { %1590 = vmatpush1.bf16.msra.mxu0 %v6031_v17  ;;  %v6120_v17 = vld [vmem:[#allocation4 + $0x240] ss:$8 sps:$4 sm:$0xff]   ;;  %s6774_s20 = scalar_lea.vmem %s6773_s19, 256  ;;  %p6775_p2 = scmp.lt.s32.totalorder %s5061_s16, %s6773_s19 }
  0x73   : > { %1591 = vmatprep.subr.bf16.mxu0 %v6032_v18  ;;  %v6125_v18 = vld [vmem:[#allocation4 + $0x254] ss:$8 sps:$4 sm:$0xff]   ;;  %p6770_p10 = pnand %p6769_p4, %p7685_p8  ;;  %p6776_p3 = scmp.lt.s32.totalorder %s6774_s20, %s6768_s18 }
  0x75   : > { %p6771_p11 = pneg %p6770_p10  ;;  %p6777_p5 = por %p6776_p3, %p6775_p2 }
  0x76   : > { %1592 = vmatpush1.bf16.msra.mxu0 %v6034_v19  ;;  %v6123_v19 = vld [vmem:[#allocation4 + $0x250] ss:$8 sps:$4 sm:$0xff]  }
  0x77   : > { %1593 = vmatprep.subr.bf16.mxu0 %v6035_v20  ;;  %v6128_v20 = vld [vmem:[#allocation4 + $0x264] ss:$8 sps:$4 sm:$0xff]   ;;  %p6778_p6 = pnand %p6777_p5, %p6771_p11 }
  0x7a   : > { %1594 = vmatpush1.bf16.msra.mxu0 %v6037_v21  ;;  %v6126_v21 = vld [vmem:[#allocation4 + $0x260] ss:$8 sps:$4 sm:$0xff]  }
  0x7b   : > { %1595 = vmatprep.subr.bf16.mxu0 %v6038_v22  ;;  %v6131_v22 = vld [vmem:[#allocation4 + $0x274] ss:$8 sps:$4 sm:$0xff]  }
  0x7e   : > { %1596 = vmatpush1.bf16.msra.mxu0 %v6040_v23  ;;  %v6129_v23 = vld [vmem:[#allocation4 + $0x270] ss:$8 sps:$4 sm:$0xff]  }
  0x7f   : > { %1597 = vmatprep.subr.bf16.mxu0 %v6041_v24  ;;  %v6134_v24 = vld [vmem:[#allocation4 + $0x284] ss:$8 sps:$4 sm:$0xff]  }
  0x82   : > { %1598 = vmatpush1.bf16.msra.mxu0 %v6043_v25  ;;  %v6132_v25 = vld [vmem:[#allocation4 + $0x280] ss:$8 sps:$4 sm:$0xff]  }
  0x83   : > { %1599 = vmatprep.subr.bf16.mxu0 %v6044_v26  ;;  %v6137_v26 = vld [vmem:[#allocation4 + $0x294] ss:$8 sps:$4 sm:$0xff]  }
  0x86   : > { %1600 = vmatpush1.bf16.msra.mxu0 %v6046_v27  ;;  %v6135_v27 = vld [vmem:[#allocation4 + $0x290] ss:$8 sps:$4 sm:$0xff]  }
  0x87   : > { %1601 = vmatprep.subr.bf16.mxu0 %v6047_v28  ;;  %v6140_v28 = vld [vmem:[#allocation4 + $0x2a4] ss:$8 sps:$4 sm:$0xff]  }
  0x8a   : > { %1602 = vmatpush1.bf16.msra.mxu0 %v6049_v29  ;;  %v6138_v29 = vld [vmem:[#allocation4 + $0x2a0] ss:$8 sps:$4 sm:$0xff]  }
  0x8b   : > { %1603 = vmatprep.subr.bf16.mxu0 %v6050_v30  ;;  %v6143_v30 = vld [vmem:[#allocation4 + $0x2b4] ss:$8 sps:$4 sm:$0xff]  }
  0x8e   : > { %1604 = vmatpush1.bf16.msra.mxu0 %v6052_v31  ;;  %v6141_v31 = vld [vmem:[#allocation4 + $0x2b0] ss:$8 sps:$4 sm:$0xff]  }
  0x8f   : > { %1605 = vmatprep.subr.bf16.mxu0 %v6053_v32  ;;  %v6146_v32 = vld [vmem:[#allocation4 + $0x2c4] ss:$8 sps:$4 sm:$0xff]  }
  0x92   : > { %1606 = vmatpush1.bf16.msra.mxu0 %v6055_v33  ;;  %v6144_v33 = vld [vmem:[#allocation4 + $0x2c0] ss:$8 sps:$4 sm:$0xff]  }
  0x93   : > { %1616 = vmatprep.subr.bf16.mxu0 %v6060_v34  ;;  %v6149_v34 = vld [vmem:[#allocation4 + $0x2d4] ss:$8 sps:$4 sm:$0xff]  }
  0x95   : > { %1608 = vmatmul.mubr.bf16.vlgmr.msra.gmra.mrb[0].mxu0 %v5189_v36  ;;  %v6152_v36 = vld [vmem:[#allocation4 + $0x2e4] ss:$8 sps:$4 sm:$0xff]  }
  0x96   : > { %1617 = vmatpush1.bf16.msra.mxu0 %v6058_v37  ;;  %1648 = vmatprep.mubr.bf16.mxu0 %v5192_v38  ;;  %v6150_v37 = vld [vmem:[#allocation4 + $0x2e0] ss:$8 sps:$4 sm:$0xff]   ;;  %v6155_v38 = vld [vmem:[#allocation4 + $0x2f4] ss:$8 sps:$4 sm:$0xff]  }
  0x97   : > { %1618 = vmatprep.subr.bf16.mxu0 %v6063_v39  ;;  %v6153_v39 = vld [vmem:[#allocation4 + $0x2f0] ss:$8 sps:$4 sm:$0xff]  }
  0x9a   : > { %1619 = vmatpush1.bf16.msra.mxu0 %v6061_v40  ;;  %v6160_v40 = vld [vmem:[#allocation4 + $0x304] ss:$8 sps:$4 sm:$0xff]  }
  0x9b   : > { %1620 = vmatprep.subr.bf16.mxu0 %v6066_v41  ;;  %v7094_v41 = vld [vmem:[%s7078_s11 + $0x18] sm:$0xff] }
  0x9e   : > { %1621 = vmatpush1.bf16.msra.mxu0 %v6064_v42  ;;  %v5193_v42 = vcombine.low %v7087_v6, %v7087_v6  ;;  %v6197_v6 = vld [vmem:[#allocation4 + $0x3d0] ss:$8 sps:$4 sm:$0xff]  }
  0x9f   : > { %1622 = vmatprep.subr.bf16.mxu0 %v6069_v43  ;;  %v6158_v43 = vld [vmem:[#allocation4 + $0x300] ss:$8 sps:$4 sm:$0xff]  }
  0xa2   : > { %1623 = vmatpush1.bf16.msra.mxu0 %v6067_v44  ;;  %v6163_v44 = vld [vmem:[#allocation4 + $0x314] ss:$8 sps:$4 sm:$0xff]  }
  0xa3   : > { %1624 = vmatprep.subr.bf16.mxu0 %v6072_v45  ;;  %v5196_v45 = vcombine.high %v7094_v41, %v7094_v41 }
  0xa6   : > { %1625 = vmatpush1.bf16.msra.mxu0 %v6070_v46  ;;  %v6161_v46 = vld [vmem:[#allocation4 + $0x310] ss:$8 sps:$4 sm:$0xff]  }
  0xa7   : > { %1626 = vmatprep.subr.bf16.mxu0 %v6075_v47  ;;  %v6166_v47 = vld [vmem:[#allocation4 + $0x324] ss:$8 sps:$4 sm:$0xff]  }
  0xaa   : > { %1627 = vmatpush1.bf16.msra.mxu0 %v6073_v48  ;;  %v6164_v48 = vld [vmem:[#allocation4 + $0x320] ss:$8 sps:$4 sm:$0xff]  }
  0xab   : > { %1628 = vmatprep.subr.bf16.mxu0 %v6078_v49  ;;  %v6169_v49 = vld [vmem:[#allocation4 + $0x334] ss:$8 sps:$4 sm:$0xff]  }
  0xae   : > { %1629 = vmatpush1.bf16.msra.mxu0 %v6076_v50  ;;  %v6167_v50 = vld [vmem:[#allocation4 + $0x330] ss:$8 sps:$4 sm:$0xff]  }
  0xaf   : > { %1630 = vmatprep.subr.bf16.mxu0 %v6081_v51  ;;  %v6172_v51 = vld [vmem:[#allocation4 + $0x344] ss:$8 sps:$4 sm:$0xff]  }
  0xb2   : > { %1631 = vmatpush1.bf16.msra.mxu0 %v6079_v52  ;;  %v6170_v52 = vld [vmem:[#allocation4 + $0x340] ss:$8 sps:$4 sm:$0xff]  }
  0xb3   : > { %1632 = vmatprep.subr.bf16.mxu0 %v6084_v53  ;;  %v6175_v53 = vld [vmem:[#allocation4 + $0x354] ss:$8 sps:$4 sm:$0xff]  }
  0xb6   : > { %1633 = vmatpush1.bf16.msra.mxu0 %v6082_v54  ;;  %v6173_v54 = vld [vmem:[#allocation4 + $0x350] ss:$8 sps:$4 sm:$0xff]  }
  0xb7   : > { %1634 = vmatprep.subr.bf16.mxu0 %v6087_v55  ;;  %v6178_v55 = vld [vmem:[#allocation4 + $0x364] ss:$8 sps:$4 sm:$0xff]  }
  0xba   : > { %1635 = vmatpush1.bf16.msra.mxu0 %v6085_v56  ;;  %v6176_v56 = vld [vmem:[#allocation4 + $0x360] ss:$8 sps:$4 sm:$0xff]  }
  0xbb   : > { %1636 = vmatprep.subr.bf16.mxu0 %v6090_v57  ;;  %v6181_v57 = vld [vmem:[#allocation4 + $0x374] ss:$8 sps:$4 sm:$0xff]  }
  0xbe   : > { %1637 = vmatpush1.bf16.msra.mxu0 %v6088_v58  ;;  %v6179_v58 = vld [vmem:[#allocation4 + $0x370] ss:$8 sps:$4 sm:$0xff]  }
  0xbf   : > { %1638 = vmatprep.subr.bf16.mxu0 %v6093_v59  ;;  %v6184_v59 = vld [vmem:[#allocation4 + $0x384] ss:$8 sps:$4 sm:$0xff]  }
  0xc2   : > { %1639 = vmatpush1.bf16.msra.mxu0 %v6091_v60  ;;  %v6182_v60 = vld [vmem:[#allocation4 + $0x380] ss:$8 sps:$4 sm:$0xff]  }
  0xc3   : > { %1640 = vmatprep.subr.bf16.mxu0 %v6096_v61  ;;  %v6187_v61 = vld [vmem:[#allocation4 + $0x394] ss:$8 sps:$4 sm:$0xff]  }
  0xc6   : > { %1641 = vmatpush1.bf16.msra.mxu0 %v6094_v62  ;;  %v6185_v62 = vld [vmem:[#allocation4 + $0x390] ss:$8 sps:$4 sm:$0xff]  }
  0xc7   : > { %1642 = vmatprep.subr.bf16.mxu0 %v6099_v63  ;;  %v6190_v63 = vld [vmem:[#allocation4 + $0x3a4] ss:$8 sps:$4 sm:$0xff]  }
  0xca   : > { %1643 = vmatpush1.bf16.msra.mxu0 %v6097_v0  ;;  %v6188_v0 = vld [vmem:[#allocation4 + $0x3a0] ss:$8 sps:$4 sm:$0xff]  }
  0xcb   : > { %1644 = vmatprep.subr.bf16.mxu0 %v6102_v1  ;;  %v6193_v1 = vld [vmem:[#allocation4 + $0x3b4] ss:$8 sps:$4 sm:$0xff]  }
  0xce   : > { %1645 = vmatpush1.bf16.msra.mxu0 %v6100_v2  ;;  %v6191_v2 = vld [vmem:[#allocation4 + $0x3b0] ss:$8 sps:$4 sm:$0xff]  }
  0xcf   : > { %1646 = vmatprep.subr.bf16.mxu0 %v6105_v3  ;;  %v6196_v3 = vld [vmem:[#allocation4 + $0x3c4] ss:$8 sps:$4 sm:$0xff]  }
  0xd2   : > { %1647 = vmatpush1.bf16.msra.mxu0 %v6103_v4  ;;  %v6194_v4 = vld [vmem:[#allocation4 + $0x3c0] ss:$8 sps:$4 sm:$0xff]  }
  0xd3   : > { %1657 = vmatprep.subr.bf16.mxu0 %v6110_v5  ;;  %v6199_v5 = vld [vmem:[#allocation4 + $0x3d4] ss:$8 sps:$4 sm:$0xff]  }
  0xd5   : > { %1649 = vmatmul.mubr.bf16.vlgmr.msra.gmra.mrb[0].mxu0 %v5191_v7  ;;  %v6202_v7 = vld [vmem:[#allocation4 + $0x3e4] ss:$8 sps:$4 sm:$0xff]  }
  0xd6   : > { %1658 = vmatpush1.bf16.msra.mxu0 %v6108_v8  ;;  %1689 = vmatprep.mubr.bf16.mxu0 %v5194_v10  ;;  %v6200_v8 = vld [vmem:[#allocation4 + $0x3e0] ss:$8 sps:$4 sm:$0xff]   ;;  %v6203_v10 = vld [vmem:[#allocation4 + $0x3f0] ss:$8 sps:$4 sm:$0xff]  }
  0xd7   : > { %1659 = vmatprep.subr.bf16.mxu0 %v6113_v9  ;;  %v6205_v9 = vld [vmem:[#allocation4 + $0x3f4] ss:$8 sps:$4 sm:$0xff]  }
  0xda   : > { %1660 = vmatpush1.bf16.msra.mxu0 %v6111_v11  ;;  %v6210_v11 = vld [vmem:[#allocation4 + $0x404] ss:$8 sps:$4 sm:$0xff]  }
  0xdb   : > { %1661 = vmatprep.subr.bf16.mxu0 %v6116_v12  ;;  %v7101_v12 = vld [vmem:[%s7078_s11 + $0x20] sm:$0xff] }
  0xde   : > { %1662 = vmatpush1.bf16.msra.mxu0 %v6114_v13  ;;  %v6208_v13 = vld [vmem:[#allocation4 + $0x400] ss:$8 sps:$4 sm:$0xff]  }
  0xdf   : > { %1663 = vmatprep.subr.bf16.mxu0 %v6119_v14  ;;  %v5195_v14 = vcombine.low %v7094_v41, %v7094_v41  ;;  %v6231_v41 = vld [vmem:[#allocation4 + $0x474] ss:$8 sps:$4 sm:$0xff]  }
  0xe2   : > { %1664 = vmatpush1.bf16.msra.mxu0 %v6117_v15  ;;  %v6213_v15 = vld [vmem:[#allocation4 + $0x414] ss:$8 sps:$4 sm:$0xff]  }
  0xe3   : > { %1665 = vmatprep.subr.bf16.mxu0 %v6122_v16  ;;  %v5198_v16 = vcombine.high %v7101_v12, %v7101_v12 }
  0xe6   : > { %1666 = vmatpush1.bf16.msra.mxu0 %v6120_v17  ;;  %v6308_v17 = vld [vmem:[#allocation7 + $0x4] ss:$48 sps:$4 sm:$0xff]  }
  0xe7   : > { %1667 = vmatprep.subr.bf16.mxu0 %v6125_v18  ;;  %v6310_v18 = vld [vmem:[#allocation7] ss:$48 sps:$4 sm:$0xff]   ;;  %3041 = vmatprep.subr.bf16.mxu1 %v6308_v17 }
  0xe8   : > { %3042 = vmatpush1.bf16.msra.mxu1 %v6310_v18  ;;  %v6261_v17 = vld [vmem:[#allocation4 + $0x510] ss:$8 sps:$4 sm:$0xff]   ;;  %v6266_v18 = vld [vmem:[#allocation4 + $0x524] ss:$8 sps:$4 sm:$0xff]  }
  0xea   : > { %1668 = vmatpush1.bf16.msra.mxu0 %v6123_v19  ;;  %v6311_v19 = vld [vmem:[#allocation7 + $0x64] ss:$48 sps:$4 sm:$0xff]  }
  0xeb   : > { %1669 = vmatprep.subr.bf16.mxu0 %v6128_v20  ;;  %v6211_v20 = vld [vmem:[#allocation4 + $0x410] ss:$8 sps:$4 sm:$0xff]   ;;  %3043 = vmatprep.subr.bf16.mxu1 %v6311_v19  ;;  %v6264_v19 = vld [vmem:[#allocation4 + $0x520] ss:$8 sps:$4 sm:$0xff]  }
  0xee   : > { %1670 = vmatpush1.bf16.msra.mxu0 %v6126_v21  ;;  %v6216_v21 = vld [vmem:[#allocation4 + $0x424] ss:$8 sps:$4 sm:$0xff]  }
  0xef   : > { %1671 = vmatprep.subr.bf16.mxu0 %v6131_v22  ;;  %v6313_v22 = vld [vmem:[#allocation7 + $0x60] ss:$48 sps:$4 sm:$0xff]  }
  0xf0   : > { %3044 = vmatpush1.bf16.msra.mxu1 %v6313_v22  ;;  %v6270_v22 = vld [vmem:[#allocation4 + $0x540] ss:$8 sps:$4 sm:$0xff]  }
  0xf2   : > { %1672 = vmatpush1.bf16.msra.mxu0 %v6129_v23  ;;  %v6314_v23 = vld [vmem:[#allocation7 + $0xc4] ss:$48 sps:$4 sm:$0xff]  }
  0xf3   : > { %1673 = vmatprep.subr.bf16.mxu0 %v6134_v24  ;;  %v6214_v24 = vld [vmem:[#allocation4 + $0x420] ss:$8 sps:$4 sm:$0xff]   ;;  %3045 = vmatprep.subr.bf16.mxu1 %v6314_v23  ;;  %v6275_v23 = vld [vmem:[#allocation4 + $0x554] ss:$8 sps:$4 sm:$0xff]  }
  0xf6   : > { %1674 = vmatpush1.bf16.msra.mxu0 %v6132_v25  ;;  %v6219_v25 = vld [vmem:[#allocation4 + $0x434] ss:$8 sps:$4 sm:$0xff]  }
  0xf7   : > { %1675 = vmatprep.subr.bf16.mxu0 %v6137_v26  ;;  %v6316_v26 = vld [vmem:[#allocation7 + $0xc0] ss:$48 sps:$4 sm:$0xff]  }
  0xf8   : > { %3046 = vmatpush1.bf16.msra.mxu1 %v6316_v26  ;;  %v6276_v26 = vld [vmem:[#allocation4 + $0x560] ss:$8 sps:$4 sm:$0xff]  }
  0xfa   : > { %1676 = vmatpush1.bf16.msra.mxu0 %v6135_v27  ;;  %v6317_v27 = vld [vmem:[#allocation7 + $0x124] ss:$48 sps:$4 sm:$0xff]  }
  0xfb   : > { %1677 = vmatprep.subr.bf16.mxu0 %v6140_v28  ;;  %v6217_v28 = vld [vmem:[#allocation4 + $0x430] ss:$8 sps:$4 sm:$0xff]   ;;  %3047 = vmatprep.subr.bf16.mxu1 %v6317_v27  ;;  %v6281_v27 = vld [vmem:[#allocation4 + $0x574] ss:$8 sps:$4 sm:$0xff]  }
  0xfe   : > { %1678 = vmatpush1.bf16.msra.mxu0 %v6138_v29  ;;  %v6222_v29 = vld [vmem:[#allocation4 + $0x444] ss:$8 sps:$4 sm:$0xff]  }
  0xff   : > { %1679 = vmatprep.subr.bf16.mxu0 %v6143_v30  ;;  %v6319_v30 = vld [vmem:[#allocation7 + $0x120] ss:$48 sps:$4 sm:$0xff]  }
 0x100   : > { %3048 = vmatpush1.bf16.msra.mxu1 %v6319_v30  ;;  %v6282_v30 = vld [vmem:[#allocation4 + $0x580] ss:$8 sps:$4 sm:$0xff]  }
 0x102   : > { %1680 = vmatpush1.bf16.msra.mxu0 %v6141_v31  ;;  %v6320_v31 = vld [vmem:[#allocation7 + $0x184] ss:$48 sps:$4 sm:$0xff]  }
 0x103   : > { %1681 = vmatprep.subr.bf16.mxu0 %v6146_v32  ;;  %v6220_v32 = vld [vmem:[#allocation4 + $0x440] ss:$8 sps:$4 sm:$0xff]   ;;  %3049 = vmatprep.subr.bf16.mxu1 %v6320_v31  ;;  %v6287_v31 = vld [vmem:[#allocation4 + $0x594] ss:$8 sps:$4 sm:$0xff]  }
 0x106   : > { %1682 = vmatpush1.bf16.msra.mxu0 %v6144_v33  ;;  %v6225_v33 = vld [vmem:[#allocation4 + $0x454] ss:$8 sps:$4 sm:$0xff]  }
 0x107   : > { %1683 = vmatprep.subr.bf16.mxu0 %v6149_v34  ;;  %v6322_v34 = vld [vmem:[#allocation7 + $0x180] ss:$48 sps:$4 sm:$0xff]  }
 0x108   : > { %3050 = vmatpush1.bf16.msra.mxu1 %v6322_v34  ;;  %v6288_v34 = vld [vmem:[#allocation4 + $0x5a0] ss:$8 sps:$4 sm:$0xff]  }
 0x10a   : > { %1684 = vmatpush1.bf16.msra.mxu0 %v6147_v35  ;;  %v6323_v35 = vld [vmem:[#allocation7 + $0x1e4] ss:$48 sps:$4 sm:$0xff]  }
 0x10b   : > { %1685 = vmatprep.subr.bf16.mxu0 %v6152_v36  ;;  %v6223_v36 = vld [vmem:[#allocation4 + $0x450] ss:$8 sps:$4 sm:$0xff]   ;;  %3051 = vmatprep.subr.bf16.mxu1 %v6323_v35  ;;  %v6293_v35 = vld [vmem:[#allocation4 + $0x5b4] ss:$8 sps:$4 sm:$0xff]  }
 0x10e   : > { %1686 = vmatpush1.bf16.msra.mxu0 %v6150_v37  ;;  %v6228_v37 = vld [vmem:[#allocation4 + $0x464] ss:$8 sps:$4 sm:$0xff]  }
 0x10f   : > { %1687 = vmatprep.subr.bf16.mxu0 %v6155_v38  ;;  %v6325_v38 = vld [vmem:[#allocation7 + $0x1e0] ss:$48 sps:$4 sm:$0xff]  }
 0x110   : > { %3052 = vmatpush1.bf16.msra.mxu1 %v6325_v38  ;;  %v6294_v38 = vld [vmem:[#allocation4 + $0x5c0] ss:$8 sps:$4 sm:$0xff]  }
 0x112   : > { %1688 = vmatpush1.bf16.msra.mxu0 %v6153_v39  ;;  %v6326_v39 = vld [vmem:[#allocation7 + $0x244] ss:$48 sps:$4 sm:$0xff]  }
 0x113   : > { %1698 = vmatprep.subr.bf16.mxu0 %v6160_v40  ;;  %v6226_v40 = vld [vmem:[#allocation4 + $0x460] ss:$8 sps:$4 sm:$0xff]   ;;  %3053 = vmatprep.subr.bf16.mxu1 %v6326_v39  ;;  %v6299_v39 = vld [vmem:[#allocation4 + $0x5d4] ss:$8 sps:$4 sm:$0xff]  }
 0x115   : > { %1690 = vmatmul.mubr.bf16.vlgmr.msra.gmra.mrb[0].mxu0 %v5193_v42  ;;  %v6328_v42 = vld [vmem:[#allocation7 + $0x240] ss:$48 sps:$4 sm:$0xff]  }
 0x116   : > { %1699 = vmatpush1.bf16.msra.mxu0 %v6158_v43  ;;  %1730 = vmatprep.mubr.bf16.mxu0 %v5196_v45  ;;  %v6329_v43 = vld [vmem:[#allocation7 + $0x2a4] ss:$48 sps:$4 sm:$0xff]  }
 0x117   : > { %1700 = vmatprep.subr.bf16.mxu0 %v6163_v44  ;;  %v6229_v44 = vld [vmem:[#allocation4 + $0x470] ss:$8 sps:$4 sm:$0xff]   ;;  %v6234_v45 = vld [vmem:[#allocation4 + $0x484] ss:$8 sps:$4 sm:$0xff]   ;;  %3054 = vmatpush1.bf16.msra.mxu1 %v6328_v42  ;;  %v6300_v42 = vld [vmem:[#allocation4 + $0x5e0] ss:$8 sps:$4 sm:$0xff]  }
 0x118   : > { %3055 = vmatprep.subr.bf16.mxu1 %v6329_v43  ;;  %v6305_v43 = vld [vmem:[#allocation4 + $0x5f4] ss:$8 sps:$4 sm:$0xff]  }
 0x11a   : > { %1701 = vmatpush1.bf16.msra.mxu0 %v6161_v46  ;;  %v6331_v46 = vld [vmem:[#allocation7 + $0x2a0] ss:$48 sps:$4 sm:$0xff]  }
 0x11b   : > { %1702 = vmatprep.subr.bf16.mxu0 %v6166_v47  ;;  %v6332_v47 = vld [vmem:[#allocation7 + $0x304] ss:$48 sps:$4 sm:$0xff]   ;;  %3056 = vmatpush1.bf16.msra.mxu1 %v6331_v46 }
 0x11c   : > { %3057 = vmatprep.subr.bf16.mxu1 %v6332_v47  ;;  %v6350_v46 = vld [vmem:[#allocation7 + $0x544] ss:$48 sps:$4 sm:$0xff]   ;;  %v6352_v47 = vld [vmem:[#allocation7 + $0x540] ss:$48 sps:$4 sm:$0xff]  }
 0x11e   : > { %1703 = vmatpush1.bf16.msra.mxu0 %v6164_v48  ;;  %v6232_v48 = vld [vmem:[#allocation4 + $0x480] ss:$8 sps:$4 sm:$0xff]  }
 0x11f   : > { %1704 = vmatprep.subr.bf16.mxu0 %v6169_v49  ;;  %v6237_v49 = vld [vmem:[#allocation4 + $0x494] ss:$8 sps:$4 sm:$0xff]  }
 0x122   : > { %1705 = vmatpush1.bf16.msra.mxu0 %v6167_v50  ;;  %v6334_v50 = vld [vmem:[#allocation7 + $0x300] ss:$48 sps:$4 sm:$0xff]  }
 0x123   : > { %1706 = vmatprep.subr.bf16.mxu0 %v6172_v51  ;;  %v6335_v51 = vld [vmem:[#allocation7 + $0x364] ss:$48 sps:$4 sm:$0xff]   ;;  %3058 = vmatpush1.bf16.msra.mxu1 %v6334_v50  ;;  %v6358_v50 = vld [vmem:[#allocation7 + $0xc] ss:$48 sps:$4 sm:$0xff]  }
 0x124   : > { %3059 = vmatprep.subr.bf16.mxu1 %v6335_v51  ;;  %v563_v51 = vlaneseq }
 0x126   : > { %1707 = vmatpush1.bf16.msra.mxu0 %v6170_v52  ;;  %v6235_v52 = vld [vmem:[#allocation4 + $0x490] ss:$8 sps:$4 sm:$0xff]  }
 0x127   : > { %1708 = vmatprep.subr.bf16.mxu0 %v6175_v53  ;;  %v6240_v53 = vld [vmem:[#allocation4 + $0x4a4] ss:$8 sps:$4 sm:$0xff]  }
 0x12a   : > { %1709 = vmatpush1.bf16.msra.mxu0 %v6173_v54  ;;  %v6337_v54 = vld [vmem:[#allocation7 + $0x360] ss:$48 sps:$4 sm:$0xff]  }
 0x12b   : > { %1710 = vmatprep.subr.bf16.mxu0 %v6178_v55  ;;  %v6338_v55 = vld [vmem:[#allocation7 + $0x3c4] ss:$48 sps:$4 sm:$0xff]   ;;  %3060 = vmatpush1.bf16.msra.mxu1 %v6337_v54  ;;  %v561_v54 = vld [vmem:[%s7660_s2] sm:$0x3] }
 0x12c   : > { %3061 = vmatprep.subr.bf16.mxu1 %v6338_v55 }
 0x12e   : > { %1711 = vmatpush1.bf16.msra.mxu0 %v6176_v56  ;;  %v6238_v56 = vld [vmem:[#allocation4 + $0x4a0] ss:$8 sps:$4 sm:$0xff]  }
 0x12f   : > { %1712 = vmatprep.subr.bf16.mxu0 %v6181_v57  ;;  %v6243_v57 = vld [vmem:[#allocation4 + $0x4b4] ss:$8 sps:$4 sm:$0xff]  }
 0x132   : > { %1713 = vmatpush1.bf16.msra.mxu0 %v6179_v58  ;;  %v6340_v58 = vld [vmem:[#allocation7 + $0x3c0] ss:$48 sps:$4 sm:$0xff]  }
 0x133   : > { %1714 = vmatprep.subr.bf16.mxu0 %v6184_v59  ;;  %v6341_v59 = vld [vmem:[#allocation7 + $0x424] ss:$48 sps:$4 sm:$0xff]   ;;  %3062 = vmatpush1.bf16.msra.mxu1 %v6340_v58 }
 0x134   : > { %3063 = vmatprep.subr.bf16.mxu1 %v6341_v59 }
 0x136   : > { %1715 = vmatpush1.bf16.msra.mxu0 %v6182_v60  ;;  %v6241_v60 = vld [vmem:[#allocation4 + $0x4b0] ss:$8 sps:$4 sm:$0xff]  }
 0x137   : > { %1716 = vmatprep.subr.bf16.mxu0 %v6187_v61  ;;  %v6246_v61 = vld [vmem:[#allocation4 + $0x4c4] ss:$8 sps:$4 sm:$0xff]  }
 0x13a   : > { %1717 = vmatpush1.bf16.msra.mxu0 %v6185_v62  ;;  %v6343_v62 = vld [vmem:[#allocation7 + $0x420] ss:$48 sps:$4 sm:$0xff]  }
 0x13b   : > { %1718 = vmatprep.subr.bf16.mxu0 %v6190_v63  ;;  %v6344_v63 = vld [vmem:[#allocation7 + $0x484] ss:$48 sps:$4 sm:$0xff]   ;;  %3064 = vmatpush1.bf16.msra.mxu1 %v6343_v62 }
 0x13c   : > { %3065 = vmatprep.subr.bf16.mxu1 %v6344_v63 }
 0x13e   : > { %1719 = vmatpush1.bf16.msra.mxu0 %v6188_v0  ;;  %v6244_v0 = vld [vmem:[#allocation4 + $0x4c0] ss:$8 sps:$4 sm:$0xff]  }
 0x13f   : > { %1720 = vmatprep.subr.bf16.mxu0 %v6193_v1  ;;  %v6249_v1 = vld [vmem:[#allocation4 + $0x4d4] ss:$8 sps:$4 sm:$0xff]  }
 0x142   : > { %1721 = vmatpush1.bf16.msra.mxu0 %v6191_v2  ;;  %v6346_v2 = vld [vmem:[#allocation7 + $0x480] ss:$48 sps:$4 sm:$0xff]  }
 0x143   : > { %1722 = vmatprep.subr.bf16.mxu0 %v6196_v3  ;;  %v6347_v3 = vld [vmem:[#allocation7 + $0x4e4] ss:$48 sps:$4 sm:$0xff]   ;;  %3066 = vmatpush1.bf16.msra.mxu1 %v6346_v2 }
 0x144   : > { %3067 = vmatprep.subr.bf16.mxu1 %v6347_v3  ;;  %v6356_v3 = vld [vmem:[#allocation7 + $0x8] ss:$48 sps:$4 sm:$0xff]  }
 0x146   : > { %1723 = vmatpush1.bf16.msra.mxu0 %v6194_v4  ;;  %v6247_v4 = vld [vmem:[#allocation4 + $0x4d0] ss:$8 sps:$4 sm:$0xff]  }
 0x147   : > { %1724 = vmatprep.subr.bf16.mxu0 %v6199_v5  ;;  %v6252_v5 = vld [vmem:[#allocation4 + $0x4e4] ss:$8 sps:$4 sm:$0xff]  }
 0x14a   : > { %1725 = vmatpush1.bf16.msra.mxu0 %v6197_v6  ;;  %v6349_v6 = vld [vmem:[#allocation7 + $0x4e0] ss:$48 sps:$4 sm:$0xff]  }
 0x14b   : > { %1726 = vmatprep.subr.bf16.mxu0 %v6202_v7  ;;  %v6250_v7 = vld [vmem:[#allocation4 + $0x4e0] ss:$8 sps:$4 sm:$0xff]   ;;  %3068 = vmatpush1.bf16.msra.mxu1 %v6349_v6 }
 0x14c   : > { %3069 = vmatprep.subr.bf16.mxu1 %v6350_v46  ;;  %v6359_v6 = vld [vmem:[#allocation7 + $0x68] ss:$48 sps:$4 sm:$0xff]   ;;  %v6419_v46 = vld [vmem:[#allocation7 + $0x1f0] ss:$48 sps:$4 sm:$0xff]  }
 0x14e   : > { %1727 = vmatpush1.bf16.msra.mxu0 %v6200_v8  ;;  %v6255_v8 = vld [vmem:[#allocation4 + $0x4f4] ss:$8 sps:$4 sm:$0xff]  }
 0x14f   : > { %1728 = vmatprep.subr.bf16.mxu0 %v6205_v9  ;;  %v6253_v9 = vld [vmem:[#allocation4 + $0x4f0] ss:$8 sps:$4 sm:$0xff]   ;;  %3070 = vmatpush1.bf16.msra.mxu1 %v6352_v47  ;;  %v6424_v47 = vld [vmem:[#allocation7 + $0x254] ss:$48 sps:$4 sm:$0xff]  }
 0x152   : > { %1729 = vmatpush1.bf16.msra.mxu0 %v6203_v10  ;;  %v6260_v10 = vld [vmem:[#allocation4 + $0x504] ss:$8 sps:$4 sm:$0xff]  }
 0x153   : > { %1739 = vmatprep.subr.bf16.mxu0 %v6210_v11  ;;  %v7108_v11 = vld [vmem:[%s7078_s11 + $0x28] sm:$0xff] }
 0x155   : > { %1731 = vmatmul.mubr.bf16.vlgmr.msra.gmra.mrb[0].mxu0 %v5195_v14  ;;  %v6258_v14 = vld [vmem:[#allocation4 + $0x500] ss:$8 sps:$4 sm:$0xff]  }
 0x156   : > { %1740 = vmatpush1.bf16.msra.mxu0 %v6208_v13  ;;  %1771 = vmatprep.mubr.bf16.mxu0 %v5198_v16  ;;  %v5197_v13 = vcombine.low %v7101_v12, %v7101_v12  ;;  %v6263_v16 = vld [vmem:[#allocation4 + $0x514] ss:$8 sps:$4 sm:$0xff]   ;;  %v6272_v12 = vld [vmem:[#allocation4 + $0x544] ss:$8 sps:$4 sm:$0xff]  }
 0x157   : > { %1741 = vmatprep.subr.bf16.mxu0 %v6213_v15  ;;  %v5200_v15 = vcombine.high %v7108_v11, %v7108_v11 }
 0x15a   : > { %1742 = vmatpush1.bf16.msra.mxu0 %v6211_v20  ;;  %v6269_v20 = vld [vmem:[#allocation4 + $0x534] ss:$8 sps:$4 sm:$0xff]  }
 0x15b   : > { %1743 = vmatprep.subr.bf16.mxu0 %v6216_v21  ;;  %v6267_v21 = vld [vmem:[#allocation4 + $0x530] ss:$8 sps:$4 sm:$0xff]  }
 0x15e   : > { %1744 = vmatpush1.bf16.msra.mxu0 %v6214_v24  ;;  %v6273_v24 = vld [vmem:[#allocation4 + $0x550] ss:$8 sps:$4 sm:$0xff]  }
 0x15f   : > { %1745 = vmatprep.subr.bf16.mxu0 %v6219_v25  ;;  %v6278_v25 = vld [vmem:[#allocation4 + $0x564] ss:$8 sps:$4 sm:$0xff]  }
 0x162   : > { %1746 = vmatpush1.bf16.msra.mxu0 %v6217_v28  ;;  %v6279_v28 = vld [vmem:[#allocation4 + $0x570] ss:$8 sps:$4 sm:$0xff]  }
 0x163   : > { %1747 = vmatprep.subr.bf16.mxu0 %v6222_v29  ;;  %v6284_v29 = vld [vmem:[#allocation4 + $0x584] ss:$8 sps:$4 sm:$0xff]  }
 0x166   : > { %1748 = vmatpush1.bf16.msra.mxu0 %v6220_v32  ;;  %v6285_v32 = vld [vmem:[#allocation4 + $0x590] ss:$8 sps:$4 sm:$0xff]  }
 0x167   : > { %1749 = vmatprep.subr.bf16.mxu0 %v6225_v33  ;;  %v6290_v33 = vld [vmem:[#allocation4 + $0x5a4] ss:$8 sps:$4 sm:$0xff]  }
 0x16a   : > { %1750 = vmatpush1.bf16.msra.mxu0 %v6223_v36  ;;  %v6291_v36 = vld [vmem:[#allocation4 + $0x5b0] ss:$8 sps:$4 sm:$0xff]  }
 0x16b   : > { %1751 = vmatprep.subr.bf16.mxu0 %v6228_v37  ;;  %v6296_v37 = vld [vmem:[#allocation4 + $0x5c4] ss:$8 sps:$4 sm:$0xff]  }
 0x16e   : > { %1752 = vmatpush1.bf16.msra.mxu0 %v6226_v40  ;;  %v6297_v40 = vld [vmem:[#allocation4 + $0x5d0] ss:$8 sps:$4 sm:$0xff]  }
 0x16f   : > { %1753 = vmatprep.subr.bf16.mxu0 %v6231_v41  ;;  %v6302_v41 = vld [vmem:[#allocation4 + $0x5e4] ss:$8 sps:$4 sm:$0xff]  }
 0x172   : > { %1754 = vmatpush1.bf16.msra.mxu0 %v6229_v44  ;;  %v6303_v44 = vld [vmem:[#allocation4 + $0x5f0] ss:$8 sps:$4 sm:$0xff]  }
 0x173   : > { %1755 = vmatprep.subr.bf16.mxu0 %v6234_v45  ;;  %v5199_v45 = vcombine.low %v7108_v11, %v7108_v11  ;;  %v6370_v11 = vld [vmem:[#allocation7 + $0x18c] ss:$48 sps:$4 sm:$0xff]  }
 0x176   : > { %1756 = vmatpush1.bf16.msra.mxu0 %v6232_v48  ;;  %v6353_v48 = vld [vmem:[#allocation7 + $0x5a4] ss:$48 sps:$4 sm:$0xff]  }
 0x177   : > { %1757 = vmatprep.subr.bf16.mxu0 %v6237_v49  ;;  %v6355_v49 = vld [vmem:[#allocation7 + $0x5a0] ss:$48 sps:$4 sm:$0xff]   ;;  %3071 = vmatprep.subr.bf16.mxu1 %v6353_v48 }
 0x178   : > { %3072 = vmatpush1.bf16.msra.mxu1 %v6355_v49  ;;  %v6422_v48 = vld [vmem:[#allocation7 + $0x250] ss:$48 sps:$4 sm:$0xff]   ;;  %v6427_v49 = vld [vmem:[#allocation7 + $0x2b4] ss:$48 sps:$4 sm:$0xff]  }
 0x179   : > { %3082 = vmatprep.subr.bf16.mxu1 %v6358_v50  ;;  %v6425_v50 = vld [vmem:[#allocation7 + $0x2b0] ss:$48 sps:$4 sm:$0xff]  }
 0x17a   : > { %1758 = vmatpush1.bf16.msra.mxu0 %v6235_v52  ;;  %v7116_v52 = vshrl.u32 %v563_v51, 7  ;;  %v6430_v51 = vld [vmem:[#allocation7 + $0x314] ss:$48 sps:$4 sm:$0xff]  }
 0x17b   : > { %1759 = vmatprep.subr.bf16.mxu0 %v6240_v53 }
 0x17c   : > { %v7119_v53 = vsub.s32 0, %v7116_v52  ;;  %v7125_v55 = vsub.s32 1, %v7116_v52 }
 0x17e   : > { %1760 = vmatpush1.bf16.msra.mxu0 %v6238_v56  ;;  %v566_v56 = vrot.slane %v561_v54, %v7119_v53 }
 0x17f   : > { %1761 = vmatprep.subr.bf16.mxu0 %v6243_v57  ;;  %v570_v57 = vrot.slane %v561_v54, %v7125_v55  ;;  %v6428_v54 = vld [vmem:[#allocation7 + $0x310] ss:$48 sps:$4 sm:$0xff]  }
 0x182   : > { %1762 = vmatpush1.bf16.msra.mxu0 %v6241_v60 }
 0x183   : > { %1763 = vmatprep.subr.bf16.mxu0 %v6246_v61 }
 0x186   : > { %1764 = vmatpush1.bf16.msra.mxu0 %v6244_v0 }
 0x187   : > { %1765 = vmatprep.subr.bf16.mxu0 %v6249_v1 }
 0x18a   : > { %1766 = vmatpush1.bf16.msra.mxu0 %v6247_v4 }
 0x18b   : > { %1767 = vmatprep.subr.bf16.mxu0 %v6252_v5  ;;  %v6361_v5 = vld [vmem:[#allocation7 + $0x6c] ss:$48 sps:$4 sm:$0xff]  }
 0x18e   : > { %1768 = vmatpush1.bf16.msra.mxu0 %v6250_v7  ;;  %v6364_v7 = vld [vmem:[#allocation7 + $0xcc] ss:$48 sps:$4 sm:$0xff]  }
 0x18f   : > { %1769 = vmatprep.subr.bf16.mxu0 %v6255_v8  ;;  %v6362_v8 = vld [vmem:[#allocation7 + $0xc8] ss:$48 sps:$4 sm:$0xff]  }
 0x192   : > { %1770 = vmatpush1.bf16.msra.mxu0 %v6253_v9  ;;  %v6367_v9 = vld [vmem:[#allocation7 + $0x12c] ss:$48 sps:$4 sm:$0xff]  }
 0x193   : > { %1780 = vmatprep.subr.bf16.mxu0 %v6260_v10  ;;  %v6365_v10 = vld [vmem:[#allocation7 + $0x128] ss:$48 sps:$4 sm:$0xff]  }
 0x195   : > { %1772 = vmatmul.mubr.bf16.vlgmr.msra.gmra.mrb[0].mxu0 %v5197_v13  ;;  %v6368_v13 = vld [vmem:[#allocation7 + $0x188] ss:$48 sps:$4 sm:$0xff]  }
 0x196   : > { %1781 = vmatpush1.bf16.msra.mxu0 %v6258_v14  ;;  %1812 = vmatprep.mubr.bf16.mxu0 %v5200_v15  ;;  %v6373_v14 = vld [vmem:[#allocation7 + $0x1ec] ss:$48 sps:$4 sm:$0xff]   ;;  %v6371_v15 = vld [vmem:[#allocation7 + $0x1e8] ss:$48 sps:$4 sm:$0xff]  }
 0x197   : > { %1782 = vmatprep.subr.bf16.mxu0 %v6263_v16  ;;  %v6376_v16 = vld [vmem:[#allocation7 + $0x24c] ss:$48 sps:$4 sm:$0xff]  }
 0x19a   : > { %1783 = vmatpush1.bf16.msra.mxu0 %v6261_v17  ;;  %v6374_v17 = vld [vmem:[#allocation7 + $0x248] ss:$48 sps:$4 sm:$0xff]  }
 0x19b   : > { %1784 = vmatprep.subr.bf16.mxu0 %v6266_v18  ;;  %v6379_v18 = vld [vmem:[#allocation7 + $0x2ac] ss:$48 sps:$4 sm:$0xff]  }
 0x19e   : > { %1785 = vmatpush1.bf16.msra.mxu0 %v6264_v19  ;;  %v6377_v19 = vld [vmem:[#allocation7 + $0x2a8] ss:$48 sps:$4 sm:$0xff]  }
 0x19f   : > { %1786 = vmatprep.subr.bf16.mxu0 %v6269_v20  ;;  %v6382_v20 = vld [vmem:[#allocation7 + $0x30c] ss:$48 sps:$4 sm:$0xff]  }
 0x1a2   : > { %1787 = vmatpush1.bf16.msra.mxu0 %v6267_v21  ;;  %v6380_v21 = vld [vmem:[#allocation7 + $0x308] ss:$48 sps:$4 sm:$0xff]  }
 0x1a3   : > { %1788 = vmatprep.subr.bf16.mxu0 %v6272_v12  ;;  %v6385_v12 = vld [vmem:[#allocation7 + $0x36c] ss:$48 sps:$4 sm:$0xff]  }
 0x1a6   : > { %1789 = vmatpush1.bf16.msra.mxu0 %v6270_v22  ;;  %v6383_v22 = vld [vmem:[#allocation7 + $0x368] ss:$48 sps:$4 sm:$0xff]  }
 0x1a7   : > { %1790 = vmatprep.subr.bf16.mxu0 %v6275_v23  ;;  %v6388_v23 = vld [vmem:[#allocation7 + $0x3cc] ss:$48 sps:$4 sm:$0xff]  }
 0x1aa   : > { %1791 = vmatpush1.bf16.msra.mxu0 %v6273_v24  ;;  %v6386_v24 = vld [vmem:[#allocation7 + $0x3c8] ss:$48 sps:$4 sm:$0xff]  }
 0x1ab   : > { %1792 = vmatprep.subr.bf16.mxu0 %v6278_v25  ;;  %v6391_v25 = vld [vmem:[#allocation7 + $0x42c] ss:$48 sps:$4 sm:$0xff]  }
 0x1ae   : > { %1793 = vmatpush1.bf16.msra.mxu0 %v6276_v26  ;;  %v6389_v26 = vld [vmem:[#allocation7 + $0x428] ss:$48 sps:$4 sm:$0xff]  }
 0x1af   : > { %1794 = vmatprep.subr.bf16.mxu0 %v6281_v27  ;;  %v6394_v27 = vld [vmem:[#allocation7 + $0x48c] ss:$48 sps:$4 sm:$0xff]  }
 0x1b2   : > { %1795 = vmatpush1.bf16.msra.mxu0 %v6279_v28  ;;  %v6392_v28 = vld [vmem:[#allocation7 + $0x488] ss:$48 sps:$4 sm:$0xff]  }
 0x1b3   : > { %1796 = vmatprep.subr.bf16.mxu0 %v6284_v29  ;;  %v6397_v29 = vld [vmem:[#allocation7 + $0x4ec] ss:$48 sps:$4 sm:$0xff]  }
 0x1b6   : > { %1797 = vmatpush1.bf16.msra.mxu0 %v6282_v30  ;;  %v6395_v30 = vld [vmem:[#allocation7 + $0x4e8] ss:$48 sps:$4 sm:$0xff]  }
 0x1b7   : > { %1798 = vmatprep.subr.bf16.mxu0 %v6287_v31  ;;  %v6400_v31 = vld [vmem:[#allocation7 + $0x54c] ss:$48 sps:$4 sm:$0xff]  }
 0x1ba   : > { %1799 = vmatpush1.bf16.msra.mxu0 %v6285_v32  ;;  %v6398_v32 = vld [vmem:[#allocation7 + $0x548] ss:$48 sps:$4 sm:$0xff]  }
 0x1bb   : > { %1800 = vmatprep.subr.bf16.mxu0 %v6290_v33  ;;  %v6403_v33 = vld [vmem:[#allocation7 + $0x5ac] ss:$48 sps:$4 sm:$0xff]  }
 0x1be   : > { %1801 = vmatpush1.bf16.msra.mxu0 %v6288_v34  ;;  %v6401_v34 = vld [vmem:[#allocation7 + $0x5a8] ss:$48 sps:$4 sm:$0xff]  }
 0x1bf   : > { %1802 = vmatprep.subr.bf16.mxu0 %v6293_v35  ;;  %v6406_v35 = vld [vmem:[#allocation7 + $0x14] ss:$48 sps:$4 sm:$0xff]  }
 0x1c2   : > { %1803 = vmatpush1.bf16.msra.mxu0 %v6291_v36  ;;  %v6404_v36 = vld [vmem:[#allocation7 + $0x10] ss:$48 sps:$4 sm:$0xff]  }
 0x1c3   : > { %1804 = vmatprep.subr.bf16.mxu0 %v6296_v37  ;;  %v6409_v37 = vld [vmem:[#allocation7 + $0x74] ss:$48 sps:$4 sm:$0xff]  }
 0x1c6   : > { %1805 = vmatpush1.bf16.msra.mxu0 %v6294_v38  ;;  %v6407_v38 = vld [vmem:[#allocation7 + $0x70] ss:$48 sps:$4 sm:$0xff]  }
 0x1c7   : > { %1806 = vmatprep.subr.bf16.mxu0 %v6299_v39  ;;  %v6412_v39 = vld [vmem:[#allocation7 + $0xd4] ss:$48 sps:$4 sm:$0xff]  }
 0x1ca   : > { %1807 = vmatpush1.bf16.msra.mxu0 %v6297_v40  ;;  %v6410_v40 = vld [vmem:[#allocation7 + $0xd0] ss:$48 sps:$4 sm:$0xff]  }
 0x1cb   : > { %1808 = vmatprep.subr.bf16.mxu0 %v6302_v41  ;;  %v6415_v41 = vld [vmem:[#allocation7 + $0x134] ss:$48 sps:$4 sm:$0xff]  }
 0x1ce   : > { %1809 = vmatpush1.bf16.msra.mxu0 %v6300_v42  ;;  %v6413_v42 = vld [vmem:[#allocation7 + $0x130] ss:$48 sps:$4 sm:$0xff]  }
 0x1cf   : > { %1810 = vmatprep.subr.bf16.mxu0 %v6305_v43  ;;  %v6418_v43 = vld [vmem:[#allocation7 + $0x194] ss:$48 sps:$4 sm:$0xff]  }
 0x1d2   : > { %1811 = vmatpush1.bf16.msra.mxu0 %v6303_v44  ;;  %v6416_v44 = vld [vmem:[#allocation7 + $0x190] ss:$48 sps:$4 sm:$0xff]  }
 0x1d5   : > { %1813 = vmatmul.mubr.bf16.vlgmr.msra.gmra.mrb[0].mxu0 %v5199_v45  ;;  %v6421_v45 = vld [vmem:[#allocation7 + $0x1f4] ss:$48 sps:$4 sm:$0xff]  }
 0x2a8   : > { %v1814_v58 = vpop.f32.mrb[0].mxu0 }
 0x2a9   : > { %v5878_v59 = vadd.f32 %v1814_v58, %v566_v56  ;;  %v1816_v60 = vpop.f32.mrb[1].mxu0  ;;  %v6433_v56 = vld [vmem:[#allocation7 + $0x374] ss:$48 sps:$4 sm:$0xff]  }
 0x2aa   : > { %v5879_v61 = vadd.f32 %v1816_v60, %v570_v57  ;;  %v1818_v62 = vpop.f32.mrb[2].mxu0  ;;  %v6431_v57 = vld [vmem:[#allocation7 + $0x370] ss:$48 sps:$4 sm:$0xff]   ;;  %v6436_v58 = vld [vmem:[#allocation7 + $0x3d4] ss:$48 sps:$4 sm:$0xff]  }
 0x2ab   : > { %v1821_v63 = vmax.f32 %v5878_v59, 0.0  ;;  %v1819_v0 = vpop.f32.mrb[3].mxu0  ;;  %v6434_v59 = vld [vmem:[#allocation7 + $0x3d0] ss:$48 sps:$4 sm:$0xff]   ;;  %v6439_v60 = vld [vmem:[#allocation7 + $0x434] ss:$48 sps:$4 sm:$0xff]  }
 0x2ac   : > { %v1822_v1 = vmax.f32 %v5879_v61, 0.0  ;;  %v6437_v61 = vld [vmem:[#allocation7 + $0x430] ss:$48 sps:$4 sm:$0xff]   ;;  %v6442_v62 = vld [vmem:[#allocation7 + $0x494] ss:$48 sps:$4 sm:$0xff]  }
 0x2ad   : > { %v7131_v4 = vpack.c.bf16 %v1821_v63, %v1821_v63  ;;  %v6440_v63 = vld [vmem:[#allocation7 + $0x490] ss:$48 sps:$4 sm:$0xff]   ;;  %v6445_v0 = vld [vmem:[#allocation7 + $0x4f4] ss:$48 sps:$4 sm:$0xff]  }
 0x2ae   : > { %v7129_v2 = vpack.c.bf16 %v1822_v1, %v1822_v1  ;;  %v6443_v1 = vld [vmem:[#allocation7 + $0x4f0] ss:$48 sps:$4 sm:$0xff]  }
 0x2b0   : > { %3073 = vmatprep.mubr.bf16.mxu1 %v7129_v2 }
 0x2b1   : > { %3074 = vmatmul.mubr.bf16.vlgmr.msra.gmra.mrb[0].mxu1 %v7131_v4 }
 0x2b2   : > { %3083 = vmatpush1.bf16.msra.mxu1 %v6356_v3  ;;  %3114 = vmatprep.mubr.bf16.mxu1 %v7129_v2  ;;  %v6448_v3 = vld [vmem:[#allocation7 + $0x554] ss:$48 sps:$4 sm:$0xff]  }
 0x2b3   : > { %3084 = vmatprep.subr.bf16.mxu1 %v6361_v5  ;;  %v6446_v5 = vld [vmem:[#allocation7 + $0x550] ss:$48 sps:$4 sm:$0xff]  }
 0x2b6   : > { %3085 = vmatpush1.bf16.msra.mxu1 %v6359_v6  ;;  %v6451_v6 = vld [vmem:[#allocation7 + $0x5b4] ss:$48 sps:$4 sm:$0xff]  }
 0x2b7   : > { %3086 = vmatprep.subr.bf16.mxu1 %v6364_v7  ;;  %v6449_v7 = vld [vmem:[#allocation7 + $0x5b0] ss:$48 sps:$4 sm:$0xff]  }
 0x2ba   : > { %3087 = vmatpush1.bf16.msra.mxu1 %v6362_v8  ;;  %v6454_v8 = vld [vmem:[#allocation7 + $0x1c] ss:$48 sps:$4 sm:$0xff]  }
 0x2bb   : > { %3088 = vmatprep.subr.bf16.mxu1 %v6367_v9  ;;  %v6452_v9 = vld [vmem:[#allocation7 + $0x18] ss:$48 sps:$4 sm:$0xff]  }
 0x2be   : > { %3089 = vmatpush1.bf16.msra.mxu1 %v6365_v10  ;;  %v6457_v10 = vld [vmem:[#allocation7 + $0x7c] ss:$48 sps:$4 sm:$0xff]  }
 0x2bf   : > { %3090 = vmatprep.subr.bf16.mxu1 %v6370_v11  ;;  %v6455_v11 = vld [vmem:[#allocation7 + $0x78] ss:$48 sps:$4 sm:$0xff]  }
 0x2c2   : > { %3091 = vmatpush1.bf16.msra.mxu1 %v6368_v13  ;;  %v6460_v13 = vld [vmem:[#allocation7 + $0xdc] ss:$48 sps:$4 sm:$0xff]  }
 0x2c3   : > { %3092 = vmatprep.subr.bf16.mxu1 %v6373_v14  ;;  %v6458_v14 = vld [vmem:[#allocation7 + $0xd8] ss:$48 sps:$4 sm:$0xff]  }
 0x2c6   : > { %3093 = vmatpush1.bf16.msra.mxu1 %v6371_v15  ;;  %v6463_v15 = vld [vmem:[#allocation7 + $0x13c] ss:$48 sps:$4 sm:$0xff]  }
 0x2c7   : > { %3094 = vmatprep.subr.bf16.mxu1 %v6376_v16  ;;  %v6461_v16 = vld [vmem:[#allocation7 + $0x138] ss:$48 sps:$4 sm:$0xff]  }
 0x2ca   : > { %3095 = vmatpush1.bf16.msra.mxu1 %v6374_v17  ;;  %v6466_v17 = vld [vmem:[#allocation7 + $0x19c] ss:$48 sps:$4 sm:$0xff]  }
 0x2cb   : > { %3096 = vmatprep.subr.bf16.mxu1 %v6379_v18  ;;  %v6464_v18 = vld [vmem:[#allocation7 + $0x198] ss:$48 sps:$4 sm:$0xff]  }
 0x2ce   : > { %3097 = vmatpush1.bf16.msra.mxu1 %v6377_v19  ;;  %v6469_v19 = vld [vmem:[#allocation7 + $0x1fc] ss:$48 sps:$4 sm:$0xff]  }
 0x2cf   : > { %3098 = vmatprep.subr.bf16.mxu1 %v6382_v20  ;;  %v6467_v20 = vld [vmem:[#allocation7 + $0x1f8] ss:$48 sps:$4 sm:$0xff]  }
 0x2d2   : > { %3099 = vmatpush1.bf16.msra.mxu1 %v6380_v21  ;;  %v6472_v21 = vld [vmem:[#allocation7 + $0x25c] ss:$48 sps:$4 sm:$0xff]  }
 0x2d3   : > { %3100 = vmatprep.subr.bf16.mxu1 %v6385_v12  ;;  %v6470_v12 = vld [vmem:[#allocation7 + $0x258] ss:$48 sps:$4 sm:$0xff]  }
 0x2d6   : > { %3101 = vmatpush1.bf16.msra.mxu1 %v6383_v22  ;;  %v6475_v22 = vld [vmem:[#allocation7 + $0x2bc] ss:$48 sps:$4 sm:$0xff]  }
 0x2d7   : > { %3102 = vmatprep.subr.bf16.mxu1 %v6388_v23  ;;  %v7141_v23 = vld [vmem:[%s7078_s11] sm:$0xff] }
 0x2da   : > { %3103 = vmatpush1.bf16.msra.mxu1 %v6386_v24  ;;  %v5592_v24 = vcombine.high %v7141_v23, %v7141_v23 }
 0x2db   : > { %3104 = vmatprep.subr.bf16.mxu1 %v6391_v25  ;;  %v6473_v25 = vld [vmem:[#allocation7 + $0x2b8] ss:$48 sps:$4 sm:$0xff]  }
 0x2dc   : > { %3471 = vmatprep.mubr.bf16.mxu0 %v5592_v24  ;;  %v6539_v24 = vld [vmem:[#allocation7 + $0x500] ss:$48 sps:$4 sm:$0xff]  }
 0x2de   : > { %3105 = vmatpush1.bf16.msra.mxu1 %v6389_v26  ;;  %v6478_v26 = vld [vmem:[#allocation7 + $0x31c] ss:$48 sps:$4 sm:$0xff]  }
 0x2df   : > { %3106 = vmatprep.subr.bf16.mxu1 %v6394_v27  ;;  %v6476_v27 = vld [vmem:[#allocation7 + $0x318] ss:$48 sps:$4 sm:$0xff]  }
 0x2e2   : > { %3107 = vmatpush1.bf16.msra.mxu1 %v6392_v28  ;;  %v6481_v28 = vld [vmem:[#allocation7 + $0x37c] ss:$48 sps:$4 sm:$0xff]  }
 0x2e3   : > { %3108 = vmatprep.subr.bf16.mxu1 %v6397_v29  ;;  %v6479_v29 = vld [vmem:[#allocation7 + $0x378] ss:$48 sps:$4 sm:$0xff]  }
 0x2e6   : > { %3109 = vmatpush1.bf16.msra.mxu1 %v6395_v30  ;;  %v6484_v30 = vld [vmem:[#allocation7 + $0x3dc] ss:$48 sps:$4 sm:$0xff]  }
 0x2e7   : > { %3110 = vmatprep.subr.bf16.mxu1 %v6400_v31  ;;  %v6482_v31 = vld [vmem:[#allocation7 + $0x3d8] ss:$48 sps:$4 sm:$0xff]  }
 0x2ea   : > { %3111 = vmatpush1.bf16.msra.mxu1 %v6398_v32  ;;  %v6487_v32 = vld [vmem:[#allocation7 + $0x43c] ss:$48 sps:$4 sm:$0xff]  }
 0x2eb   : > { %3112 = vmatprep.subr.bf16.mxu1 %v6403_v33  ;;  %v6485_v33 = vld [vmem:[#allocation7 + $0x438] ss:$48 sps:$4 sm:$0xff]  }
 0x2ee   : > { %3113 = vmatpush1.bf16.msra.mxu1 %v6401_v34  ;;  %v6490_v34 = vld [vmem:[#allocation7 + $0x49c] ss:$48 sps:$4 sm:$0xff]  }
 0x2ef   : > { %3123 = vmatprep.subr.bf16.mxu1 %v6406_v35  ;;  %v6488_v35 = vld [vmem:[#allocation7 + $0x498] ss:$48 sps:$4 sm:$0xff]  }
 0x2f1   : > { %3115 = vmatmul.mubr.bf16.vlgmr.msra.gmra.mrb[4].mxu1 %v7131_v4 }
 0x2f2   : > { %3124 = vmatpush1.bf16.msra.mxu1 %v6404_v36  ;;  %3155 = vmatprep.mubr.bf16.mxu1 %v7129_v2  ;;  %v6493_v36 = vld [vmem:[#allocation7 + $0x4fc] ss:$48 sps:$4 sm:$0xff]  }
 0x2f3   : > { %3125 = vmatprep.subr.bf16.mxu1 %v6409_v37  ;;  %v6491_v37 = vld [vmem:[#allocation7 + $0x4f8] ss:$48 sps:$4 sm:$0xff]  }
 0x2f6   : > { %3126 = vmatpush1.bf16.msra.mxu1 %v6407_v38  ;;  %v6496_v38 = vld [vmem:[#allocation7 + $0x55c] ss:$48 sps:$4 sm:$0xff]  }
 0x2f7   : > { %3127 = vmatprep.subr.bf16.mxu1 %v6412_v39  ;;  %v6494_v39 = vld [vmem:[#allocation7 + $0x558] ss:$48 sps:$4 sm:$0xff]  }
 0x2fa   : > { %3128 = vmatpush1.bf16.msra.mxu1 %v6410_v40  ;;  %v6499_v40 = vld [vmem:[#allocation7 + $0x5bc] ss:$48 sps:$4 sm:$0xff]  }
 0x2fb   : > { %3129 = vmatprep.subr.bf16.mxu1 %v6415_v41  ;;  %v6497_v41 = vld [vmem:[#allocation7 + $0x5b8] ss:$48 sps:$4 sm:$0xff]  }
 0x2fe   : > { %3130 = vmatpush1.bf16.msra.mxu1 %v6413_v42  ;;  %v6502_v42 = vld [vmem:[#allocation7 + $0x24] ss:$48 sps:$4 sm:$0xff]  }
 0x2ff   : > { %3131 = vmatprep.subr.bf16.mxu1 %v6418_v43  ;;  %v6500_v43 = vld [vmem:[#allocation7 + $0x20] ss:$48 sps:$4 sm:$0xff]  }
 0x302   : > { %3132 = vmatpush1.bf16.msra.mxu1 %v6416_v44  ;;  %v6505_v44 = vld [vmem:[#allocation7 + $0x84] ss:$48 sps:$4 sm:$0xff]  }
 0x303   : > { %3133 = vmatprep.subr.bf16.mxu1 %v6421_v45  ;;  %v6503_v45 = vld [vmem:[#allocation7 + $0x80] ss:$48 sps:$4 sm:$0xff]  }
 0x306   : > { %3134 = vmatpush1.bf16.msra.mxu1 %v6419_v46  ;;  %v6508_v46 = vld [vmem:[#allocation7 + $0xe4] ss:$48 sps:$4 sm:$0xff]  }
 0x307   : > { %3135 = vmatprep.subr.bf16.mxu1 %v6424_v47  ;;  %v6506_v47 = vld [vmem:[#allocation7 + $0xe0] ss:$48 sps:$4 sm:$0xff]  }
 0x30a   : > { %3136 = vmatpush1.bf16.msra.mxu1 %v6422_v48  ;;  %v6511_v48 = vld [vmem:[#allocation7 + $0x144] ss:$48 sps:$4 sm:$0xff]  }
 0x30b   : > { %3137 = vmatprep.subr.bf16.mxu1 %v6427_v49  ;;  %v6509_v49 = vld [vmem:[#allocation7 + $0x140] ss:$48 sps:$4 sm:$0xff]  }
 0x30e   : > { %3138 = vmatpush1.bf16.msra.mxu1 %v6425_v50  ;;  %v6514_v50 = vld [vmem:[#allocation7 + $0x1a4] ss:$48 sps:$4 sm:$0xff]  }
 0x30f   : > { %3139 = vmatprep.subr.bf16.mxu1 %v6430_v51  ;;  %v6512_v51 = vld [vmem:[#allocation7 + $0x1a0] ss:$48 sps:$4 sm:$0xff]  }
 0x312   : > { %3140 = vmatpush1.bf16.msra.mxu1 %v6428_v54  ;;  %v7150_v54 = vld [vmem:[%s7662_s4] sm:$0xff] }
 0x313   : > { %3141 = vmatprep.subr.bf16.mxu1 %v6433_v56  ;;  %v6517_v56 = vld [vmem:[#allocation7 + $0x204] ss:$48 sps:$4 sm:$0xff]  }
 0x316   : > { %3142 = vmatpush1.bf16.msra.mxu1 %v6431_v57  ;;  %v2024_v57 = vrot.slane %v7150_v54, %v7119_v53 }
 0x317   : > { %3143 = vmatprep.subr.bf16.mxu1 %v6436_v58  ;;  %v6515_v58 = vld [vmem:[#allocation7 + $0x200] ss:$48 sps:$4 sm:$0xff]  }
 0x31a   : > { %3144 = vmatpush1.bf16.msra.mxu1 %v6434_v59  ;;  %v2028_v59 = vrot.slane %v7150_v54, %v7125_v55 }
 0x31b   : > { %3145 = vmatprep.subr.bf16.mxu1 %v6439_v60  ;;  %v6520_v60 = vld [vmem:[#allocation7 + $0x264] ss:$48 sps:$4 sm:$0xff]  }
 0x31e   : > { %3146 = vmatpush1.bf16.msra.mxu1 %v6437_v61 }
 0x31f   : > { %3147 = vmatprep.subr.bf16.mxu1 %v6442_v62 }
 0x322   : > { %3148 = vmatpush1.bf16.msra.mxu1 %v6440_v63 }
 0x323   : > { %3149 = vmatprep.subr.bf16.mxu1 %v6445_v0 }
 0x326   : > { %3150 = vmatpush1.bf16.msra.mxu1 %v6443_v1 }
 0x327   : > { %3151 = vmatprep.subr.bf16.mxu1 %v6448_v3  ;;  %v6518_v3 = vld [vmem:[#allocation7 + $0x260] ss:$48 sps:$4 sm:$0xff]  }
 0x32a   : > { %3152 = vmatpush1.bf16.msra.mxu1 %v6446_v5 }
 0x32b   : > { %3153 = vmatprep.subr.bf16.mxu1 %v6451_v6  ;;  %v6523_v6 = vld [vmem:[#allocation7 + $0x2c4] ss:$48 sps:$4 sm:$0xff]  }
 0x32e   : > { %3154 = vmatpush1.bf16.msra.mxu1 %v6449_v7 }
 0x32f   : > { %3164 = vmatprep.subr.bf16.mxu1 %v6454_v8 }
 0x331   : > { %3156 = vmatmul.mubr.bf16.vlgmr.msra.gmra.mrb[8].mxu1 %v7131_v4 }
 0x332   : > { %3165 = vmatpush1.bf16.msra.mxu1 %v6452_v9  ;;  %3196 = vmatprep.mubr.bf16.mxu1 %v7129_v2  ;;  %v6521_v9 = vld [vmem:[#allocation7 + $0x2c0] ss:$48 sps:$4 sm:$0xff]  }
 0x333   : > { %3166 = vmatprep.subr.bf16.mxu1 %v6457_v10  ;;  %v6526_v10 = vld [vmem:[#allocation7 + $0x324] ss:$48 sps:$4 sm:$0xff]  }
 0x336   : > { %3167 = vmatpush1.bf16.msra.mxu1 %v6455_v11  ;;  %v7163_v11 = vld [vmem:[%s7078_s11 + $0x8] sm:$0xff] }
 0x337   : > { %3168 = vmatprep.subr.bf16.mxu1 %v6460_v13  ;;  %v6524_v13 = vld [vmem:[#allocation7 + $0x320] ss:$48 sps:$4 sm:$0xff]  }
 0x33a   : > { %3169 = vmatpush1.bf16.msra.mxu1 %v6458_v14  ;;  %v5591_v14 = vcombine.low %v7141_v23, %v7141_v23  ;;  %v6541_v23 = vld [vmem:[#allocation7 + $0x504] ss:$48 sps:$4 sm:$0xff]  }
 0x33b   : > { %3170 = vmatprep.subr.bf16.mxu1 %v6463_v15  ;;  %v6529_v15 = vld [vmem:[#allocation7 + $0x384] ss:$48 sps:$4 sm:$0xff]  }
 0x33e   : > { %3171 = vmatpush1.bf16.msra.mxu1 %v6461_v16  ;;  %v5594_v16 = vcombine.high %v7163_v11, %v7163_v11 }
 0x33f   : > { %3172 = vmatprep.subr.bf16.mxu1 %v6466_v17  ;;  %v6527_v17 = vld [vmem:[#allocation7 + $0x380] ss:$48 sps:$4 sm:$0xff]  }
 0x342   : > { %3173 = vmatpush1.bf16.msra.mxu1 %v6464_v18  ;;  %v6532_v18 = vld [vmem:[#allocation7 + $0x3e4] ss:$48 sps:$4 sm:$0xff]  }
 0x343   : > { %3174 = vmatprep.subr.bf16.mxu1 %v6469_v19  ;;  %v6530_v19 = vld [vmem:[#allocation7 + $0x3e0] ss:$48 sps:$4 sm:$0xff]  }
 0x346   : > { %3175 = vmatpush1.bf16.msra.mxu1 %v6467_v20  ;;  %v6535_v20 = vld [vmem:[#allocation7 + $0x444] ss:$48 sps:$4 sm:$0xff]  }
 0x347   : > { %3176 = vmatprep.subr.bf16.mxu1 %v6472_v21  ;;  %v6533_v21 = vld [vmem:[#allocation7 + $0x440] ss:$48 sps:$4 sm:$0xff]  }
 0x34a   : > { %3177 = vmatpush1.bf16.msra.mxu1 %v6470_v12  ;;  %v6538_v12 = vld [vmem:[#allocation7 + $0x4a4] ss:$48 sps:$4 sm:$0xff]  }
 0x34b   : > { %3178 = vmatprep.subr.bf16.mxu1 %v6475_v22  ;;  %v6536_v22 = vld [vmem:[#allocation7 + $0x4a0] ss:$48 sps:$4 sm:$0xff]  }
 0x34e   : > { %3179 = vmatpush1.bf16.msra.mxu1 %v6473_v25  ;;  %v6544_v25 = vld [vmem:[#allocation7 + $0x564] ss:$48 sps:$4 sm:$0xff]  }
 0x34f   : > { %3180 = vmatprep.subr.bf16.mxu1 %v6478_v26  ;;  %v6542_v26 = vld [vmem:[#allocation7 + $0x560] ss:$48 sps:$4 sm:$0xff]  }
 0x352   : > { %3181 = vmatpush1.bf16.msra.mxu1 %v6476_v27  ;;  %v6547_v27 = vld [vmem:[#allocation7 + $0x5c4] ss:$48 sps:$4 sm:$0xff]  }
 0x353   : > { %3182 = vmatprep.subr.bf16.mxu1 %v6481_v28  ;;  %v6545_v28 = vld [vmem:[#allocation7 + $0x5c0] ss:$48 sps:$4 sm:$0xff]  }
 0x356   : > { %3183 = vmatpush1.bf16.msra.mxu1 %v6479_v29  ;;  %v6550_v29 = vld [vmem:[#allocation7 + $0x2c] ss:$48 sps:$4 sm:$0xff]  }
 0x357   : > { %3184 = vmatprep.subr.bf16.mxu1 %v6484_v30  ;;  %v6548_v30 = vld [vmem:[#allocation7 + $0x28] ss:$48 sps:$4 sm:$0xff]  }
 0x35a   : > { %3185 = vmatpush1.bf16.msra.mxu1 %v6482_v31  ;;  %v6553_v31 = vld [vmem:[#allocation7 + $0x8c] ss:$48 sps:$4 sm:$0xff]  }
 0x35b   : > { %3186 = vmatprep.subr.bf16.mxu1 %v6487_v32  ;;  %v6551_v32 = vld [vmem:[#allocation7 + $0x88] ss:$48 sps:$4 sm:$0xff]  }
 0x35e   : > { %3187 = vmatpush1.bf16.msra.mxu1 %v6485_v33  ;;  %v6556_v33 = vld [vmem:[#allocation7 + $0xec] ss:$48 sps:$4 sm:$0xff]  }
 0x35f   : > { %3188 = vmatprep.subr.bf16.mxu1 %v6490_v34  ;;  %v6554_v34 = vld [vmem:[#allocation7 + $0xe8] ss:$48 sps:$4 sm:$0xff]  }
 0x362   : > { %3189 = vmatpush1.bf16.msra.mxu1 %v6488_v35  ;;  %v6559_v35 = vld [vmem:[#allocation7 + $0x14c] ss:$48 sps:$4 sm:$0xff]  }
 0x363   : > { %3190 = vmatprep.subr.bf16.mxu1 %v6493_v36  ;;  %v6557_v36 = vld [vmem:[#allocation7 + $0x148] ss:$48 sps:$4 sm:$0xff]  }
 0x366   : > { %3191 = vmatpush1.bf16.msra.mxu1 %v6491_v37  ;;  %v6562_v37 = vld [vmem:[#allocation7 + $0x1ac] ss:$48 sps:$4 sm:$0xff]  }
 0x367   : > { %3192 = vmatprep.subr.bf16.mxu1 %v6496_v38  ;;  %v2031_v38 = vsub.s32 2, %v7116_v52 }
 0x36a   : > { %3193 = vmatpush1.bf16.msra.mxu1 %v6494_v39  ;;  %v6560_v39 = vld [vmem:[#allocation7 + $0x1a8] ss:$48 sps:$4 sm:$0xff]  }
 0x36b   : > { %3194 = vmatprep.subr.bf16.mxu1 %v6499_v40  ;;  %v2035_v40 = vsub.s32 3, %v7116_v52 }
 0x36e   : > { %3195 = vmatpush1.bf16.msra.mxu1 %v6497_v41  ;;  %v6565_v41 = vld [vmem:[#allocation7 + $0x20c] ss:$48 sps:$4 sm:$0xff]  }
 0x36f   : > { %3205 = vmatprep.subr.bf16.mxu1 %v6502_v42  ;;  %v2036_v42 = vrot.slane %v7150_v54, %v2035_v40 }
 0x371   : > { %3197 = vmatmul.mubr.bf16.vlgmr.msra.gmra.mrb[12].mxu1 %v7131_v4 }
 0x372   : > { %3206 = vmatpush1.bf16.msra.mxu1 %v6500_v43  ;;  %3237 = vmatprep.mubr.bf16.mxu1 %v7129_v2  ;;  %v6563_v43 = vld [vmem:[#allocation7 + $0x208] ss:$48 sps:$4 sm:$0xff]  }
 0x373   : > { %3207 = vmatprep.subr.bf16.mxu1 %v6505_v44  ;;  %v6568_v44 = vld [vmem:[#allocation7 + $0x26c] ss:$48 sps:$4 sm:$0xff]  }
 0x376   : > { %3208 = vmatpush1.bf16.msra.mxu1 %v6503_v45 }
 0x377   : > { %3209 = vmatprep.subr.bf16.mxu1 %v6508_v46 }
 0x37a   : > { %3210 = vmatpush1.bf16.msra.mxu1 %v6506_v47 }
 0x37b   : > { %3211 = vmatprep.subr.bf16.mxu1 %v6511_v48 }
 0x37e   : > { %3212 = vmatpush1.bf16.msra.mxu1 %v6509_v49 }
 0x37f   : > { %3213 = vmatprep.subr.bf16.mxu1 %v6514_v50  ;;  %v6566_v50 = vld [vmem:[#allocation7 + $0x268] ss:$48 sps:$4 sm:$0xff]  }
 0x382   : > { %3214 = vmatpush1.bf16.msra.mxu1 %v6512_v51 }
 0x383   : > { %3215 = vmatprep.subr.bf16.mxu1 %v6517_v56  ;;  %v6573_v56 = vld [vmem:[#allocation7 + $0x2cc] ss:$48 sps:$4 sm:$0xff]  }
 0x384   : > { %v3075_v61 = vpop.f32.mrb[0].mxu1 }
 0x385   : > { %v3076_v62 = vadd.f32 %v3075_v61, %v2024_v57  ;;  %v3077_v63 = vpop.f32.mrb[1].mxu1  ;;  %v3345_v61 = vld [vmem:[%s7078_s11 + $0x10] sm:$0xff] }
 0x386   : > { %v3078_v0 = vadd.f32 %v3077_v63, %v2028_v59  ;;  %3216 = vmatpush1.bf16.msra.mxu1 %v6515_v58  ;;  %v3079_v1 = vpop.f32.mrb[2].mxu1  ;;  %v6571_v59 = vld [vmem:[#allocation7 + $0x2c8] ss:$48 sps:$4 sm:$0xff]   ;;  %v5593_v63 = vcombine.low %v7163_v11, %v7163_v11  ;;  %v6591_v11 = vld [vmem:[#allocation7 + $0x50c] ss:$48 sps:$4 sm:$0xff]  }
 0x387   : > { %v3080_v5 = vpop.f32.mrb[3].mxu1  ;;  %3217 = vmatprep.subr.bf16.mxu1 %v6520_v60  ;;  %v7158_v8 = vpack.c.bf16 %v3076_v62, %v3076_v62  ;;  %v6576_v60 = vld [vmem:[#allocation7 + $0x32c] ss:$48 sps:$4 sm:$0xff]   ;;  %v6574_v62 = vld [vmem:[#allocation7 + $0x328] ss:$48 sps:$4 sm:$0xff]   ;;  %v5596_v1 = vcombine.high %v3345_v61, %v3345_v61 }
 0x388   : > { %v7156_v7 = vpack.c.bf16 %v3078_v0, %v3078_v0  ;;  %v6579_v0 = vld [vmem:[#allocation7 + $0x38c] ss:$48 sps:$4 sm:$0xff]  }
 0x389   : > { %v6582_v5 = vld [vmem:[#allocation7 + $0x3ec] ss:$48 sps:$4 sm:$0xff]  }
 0x38a   : > { %3218 = vmatpush1.bf16.msra.mxu1 %v6518_v3  ;;  %3439 = vmatprep.subr.bf16.mxu0 %v7156_v7  ;;  %v6577_v3 = vld [vmem:[#allocation7 + $0x388] ss:$48 sps:$4 sm:$0xff]  }
 0x38b   : > { %3440 = vmatpush1.bf16.xpose.msra.mxu0 %v7158_v8  ;;  %3219 = vmatprep.subr.bf16.mxu1 %v6523_v6  ;;  %v6580_v6 = vld [vmem:[#allocation7 + $0x3e8] ss:$48 sps:$4 sm:$0xff]  }
 0x38e   : > { %3220 = vmatpush1.bf16.msra.mxu1 %v6521_v9  ;;  %v6585_v9 = vld [vmem:[#allocation7 + $0x44c] ss:$48 sps:$4 sm:$0xff]  }
 0x38f   : > { %3221 = vmatprep.subr.bf16.mxu1 %v6526_v10  ;;  %v6583_v10 = vld [vmem:[#allocation7 + $0x448] ss:$48 sps:$4 sm:$0xff]  }
 0x392   : > { %3222 = vmatpush1.bf16.msra.mxu1 %v6524_v13  ;;  %3472 = vmatmul.mubr.bf16.vlgmr.msra.gmra.mrb[4].mxu0 %v5591_v14  ;;  %v6588_v13 = vld [vmem:[#allocation7 + $0x4ac] ss:$48 sps:$4 sm:$0xff]   ;;  %v6586_v14 = vld [vmem:[#allocation7 + $0x4a8] ss:$48 sps:$4 sm:$0xff]  }
 0x393   : > { %3223 = vmatprep.subr.bf16.mxu1 %v6529_v15  ;;  %3511 = vmatprep.mubr.bf16.mxu0 %v5594_v16  ;;  %v6589_v15 = vld [vmem:[#allocation7 + $0x508] ss:$48 sps:$4 sm:$0xff]   ;;  %v6594_v16 = vld [vmem:[#allocation7 + $0x56c] ss:$48 sps:$4 sm:$0xff]  }
 0x396   : > { %3224 = vmatpush1.bf16.msra.mxu1 %v6527_v17  ;;  %v6592_v17 = vld [vmem:[#allocation7 + $0x568] ss:$48 sps:$4 sm:$0xff]  }
 0x397   : > { %3225 = vmatprep.subr.bf16.mxu1 %v6532_v18  ;;  %v6597_v18 = vld [vmem:[#allocation7 + $0x5cc] ss:$48 sps:$4 sm:$0xff]  }
 0x39a   : > { %3226 = vmatpush1.bf16.msra.mxu1 %v6530_v19  ;;  %v6595_v19 = vld [vmem:[#allocation7 + $0x5c8] ss:$48 sps:$4 sm:$0xff]  }
 0x39b   : > { %3227 = vmatprep.subr.bf16.mxu1 %v6535_v20  ;;  %v3713_v20 = vsel %vm3711_vm0, %v7158_v8, 0 }
 0x39e   : > { %3228 = vmatpush1.bf16.msra.mxu1 %v6533_v21  ;;  %v2039_v21 = vsub.s32 4, %v7116_v52 }
 0x39f   : > { %3229 = vmatprep.subr.bf16.mxu1 %v6538_v12  ;;  %v2043_v12 = vsub.s32 5, %v7116_v52 }
 0x3a2   : > { %3230 = vmatpush1.bf16.msra.mxu1 %v6536_v22  ;;  %v2040_v22 = vrot.slane %v7150_v54, %v2039_v21 }
 0x3a3   : > { %3231 = vmatprep.subr.bf16.mxu1 %v6541_v23  ;;  %v2044_v23 = vrot.slane %v7150_v54, %v2043_v12 }
 0x3a6   : > { %3232 = vmatpush1.bf16.msra.mxu1 %v6539_v24 }
 0x3a7   : > { %3233 = vmatprep.subr.bf16.mxu1 %v6544_v25 }
 0x3aa   : > { %3234 = vmatpush1.bf16.msra.mxu1 %v6542_v26 }
 0x3ab   : > { %3235 = vmatprep.subr.bf16.mxu1 %v6547_v27 }
 0x3ae   : > { %3236 = vmatpush1.bf16.msra.mxu1 %v6545_v28 }
 0x3af   : > { %3246 = vmatprep.subr.bf16.mxu1 %v6550_v29  ;;  %v3346_v29 = vld [vmem:[%s7078_s11 + $0x18] sm:$0xff] }
 0x3b1   : > { %3238 = vmatmul.mubr.bf16.vlgmr.msra.gmra.mrb[16].mxu1 %v7131_v4 }
 0x3b2   : > { %3247 = vmatpush1.bf16.msra.mxu1 %v6548_v30  ;;  %3278 = vmatprep.mubr.bf16.mxu1 %v7129_v2  ;;  %v2032_v2 = vrot.slane %v7150_v54, %v2031_v38  ;;  %v5595_v30 = vcombine.low %v3345_v61, %v3345_v61 }
 0x3b3   : > { %3248 = vmatprep.subr.bf16.mxu1 %v6553_v31  ;;  %v5598_v31 = vcombine.high %v3346_v29, %v3346_v29 }
 0x3b6   : > { %3249 = vmatpush1.bf16.msra.mxu1 %v6551_v32  ;;  %v2047_v32 = vsub.s32 6, %v7116_v52 }
 0x3b7   : > { %3250 = vmatprep.subr.bf16.mxu1 %v6556_v33  ;;  %v2051_v33 = vsub.s32 7, %v7116_v52 }
 0x3ba   : > { %3251 = vmatpush1.bf16.msra.mxu1 %v6554_v34  ;;  %v2048_v34 = vrot.slane %v7150_v54, %v2047_v32  ;;  %v6622_v32 = vld [vmem:[%s7663_s5 + $0x20] sm:$0xff]  }
 0x3bb   : > { %3252 = vmatprep.subr.bf16.mxu1 %v6559_v35  ;;  %v2052_v35 = vrot.slane %v7150_v54, %v2051_v33  ;;  %v2018_v54 = vld [vmem:[%s7662_s4 + $0x8] sm:$0xf] }
 0x3bc   : > { %v6624_v33 = vld [vmem:[%s7663_s5 + $0x68] sm:$0xff]  }
 0x3be   : > { %3253 = vmatpush1.bf16.msra.mxu1 %v6557_v36 }
 0x3bf   : > { %3254 = vmatprep.subr.bf16.mxu1 %v6562_v37 }
 0x3c2   : > { %3255 = vmatpush1.bf16.msra.mxu1 %v6560_v39 }
 0x3c3   : > { %3256 = vmatprep.subr.bf16.mxu1 %v6565_v41 }
 0x3c4   : > { %v3116_v45 = vpop.f32.mrb[4].mxu1 }
 0x3c5   : > { %v3117_v46 = vadd.f32 %v3116_v45, %v2032_v2  ;;  %v3118_v47 = vpop.f32.mrb[5].mxu1  ;;  %v3347_v45 = vld [vmem:[%s7078_s11 + $0x20] sm:$0xff] }
 0x3c6   : > { %v3119_v48 = vadd.f32 %v3118_v47, %v2036_v42  ;;  %v3120_v49 = vpop.f32.mrb[6].mxu1  ;;  %3257 = vmatpush1.bf16.msra.mxu1 %v6563_v43  ;;  %v5600_v47 = vcombine.high %v3347_v45, %v3347_v45 }
 0x3c7   : > { %v3121_v51 = vpop.f32.mrb[7].mxu1  ;;  %3258 = vmatprep.subr.bf16.mxu1 %v6568_v44  ;;  %v7179_v58 = vpack.c.bf16 %v3117_v46, %v3117_v46  ;;  %v5597_v46 = vcombine.low %v3346_v29, %v3346_v29  ;;  %v2060_v49 = vrot.slane %v2018_v54, %v7125_v55  ;;  %v2068_v55 = vrot.slane %v2018_v54, %v2035_v40  ;;  %v6616_v29 = vld [vmem:[%s7663_s5 + $0x58] sm:$0xff]  }
 0x3c8   : > { %v5737_v57 = vpack.c.bf16 %v3119_v48, %v3119_v48  ;;  %v2056_v48 = vrot.slane %v2018_v54, %v7119_v53  ;;  %v2064_v53 = vrot.slane %v2018_v54, %v2031_v38 }
 0x3ca   : > { %3259 = vmatpush1.bf16.msra.mxu1 %v6566_v50  ;;  %3479 = vmatprep.subr.bf16.mxu0 %v5737_v57 }
 0x3cb   : > { %3480 = vmatpush1.bf16.xpose.msra.mxu0 %v7179_v58  ;;  %3260 = vmatprep.subr.bf16.mxu1 %v6573_v56 }
 0x3ce   : > { %3261 = vmatpush1.bf16.msra.mxu1 %v6571_v59 }
 0x3cf   : > { %3262 = vmatprep.subr.bf16.mxu1 %v6576_v60 }
 0x3d2   : > { %3263 = vmatpush1.bf16.msra.mxu1 %v6574_v62  ;;  %3512 = vmatmul.mubr.bf16.vlgmr.msra.gmra.mrb[4].mxu0 %v5593_v63  ;;  %v3348_v63 = vld [vmem:[%s7078_s11 + $0x28] sm:$0xff] }
 0x3d3   : > { %3264 = vmatprep.subr.bf16.mxu1 %v6579_v0  ;;  %3551 = vmatprep.mubr.bf16.mxu0 %v5596_v1  ;;  %v5599_v0 = vcombine.low %v3347_v45, %v3347_v45  ;;  %v5602_v1 = vcombine.high %v3348_v63, %v3348_v63 }
 0x3d6   : > { %3265 = vmatpush1.bf16.msra.mxu1 %v6577_v3 }
 0x3d7   : > { %3266 = vmatprep.subr.bf16.mxu1 %v6582_v5 }
 0x3da   : > { %3267 = vmatpush1.bf16.msra.mxu1 %v6580_v6 }
 0x3db   : > { %3268 = vmatprep.subr.bf16.mxu1 %v6585_v9 }
 0x3de   : > { %3269 = vmatpush1.bf16.msra.mxu1 %v6583_v10 }
 0x3df   : > { %3270 = vmatprep.subr.bf16.mxu1 %v6588_v13 }
 0x3e2   : > { %3271 = vmatpush1.bf16.msra.mxu1 %v6586_v14 }
 0x3e3   : > { %3272 = vmatprep.subr.bf16.mxu1 %v6591_v11 }
 0x3e6   : > { %3273 = vmatpush1.bf16.msra.mxu1 %v6589_v15  ;;  %v5601_v15 = vcombine.low %v3348_v63, %v3348_v63  ;;  %v6623_v63 = vld [vmem:[%s7663_s5 + $0x90] sm:$0xff]  }
 0x3e7   : > { %3274 = vmatprep.subr.bf16.mxu1 %v6594_v16 }
 0x3ea   : > { %3275 = vmatpush1.bf16.msra.mxu1 %v6592_v17 }
 0x3eb   : > { %3276 = vmatprep.subr.bf16.mxu1 %v6597_v18  ;;  %v6894_v18 = vmov 0.0  }
 0x3ec   : > { %3342 = vst.msk [vmem:[#allocation3] sm:$0x1] %vm3341_vm2, %v6894_v18  ;;  %v6639_v18 = vld [vmem:[%s7663_s5 + $0x100] sm:$0xff]  }
 0x3ee   : > { %3277 = vmatpush1.bf16.msra.mxu1 %v6595_v19 }
 0x3ef   : > { %5615 = vmatprep.subr.msk.bf16.mxu1 %vm3711_vm0, %v7156_v7 }
 0x3f1   : > { %3279 = vmatmul.mubr.bf16.vlgmr.msra.gmra.mrb[20].mxu1 %v7131_v4 }
 0x3f2   : > { %3749 = vmatpush1.bf16.msra.mxu1 %v3713_v20 }
 0x3f3   : > { %5617 = vmatprep.subr.msk.bf16.mxu1 %vm3711_vm0, %v5737_v57 }
 0x404   : > { %v3157_v24 = vpop.f32.mrb[8].mxu1 }
 0x405   : > { %v3158_v25 = vadd.f32 %v3157_v24, %v2040_v22  ;;  %v3159_v7 = vpop.f32.mrb[9].mxu1  ;;  %v6608_v24 = vld [vmem:[%s7663_s5 + $0x40] sm:$0xff]  }
 0x406   : > { %v3160_v26 = vadd.f32 %v3159_v7, %v2044_v23  ;;  %v3161_v27 = vpop.f32.mrb[10].mxu1  ;;  %v6895_v23 = vmov 0   ;;  %v6610_v7 = vld [vmem:[%s7663_s5 + $0x48] sm:$0xff]  }
 0x407   : > { %v3162_v8 = vpop.f32.mrb[11].mxu1  ;;  %v7197_v4 = vpack.c.bf16 %v3158_v25, %v3158_v25  ;;  %3780 = vmatprep.mubr.bf16.mxu1 %v6895_v23  ;;  %v6609_v25 = vld [vmem:[%s7663_s5] sm:$0xff]   ;;  %v6612_v27 = vld [vmem:[%s7663_s5 + $0x50] sm:$0xff]  }
 0x408   : > { %v7195_v28 = vpack.c.bf16 %v3160_v26, %v3160_v26  ;;  %v6611_v26 = vld [vmem:[%s7663_s5 + $0x8] sm:$0xff]   ;;  %v6614_v8 = vld [vmem:[%s7663_s5 + $0x10] sm:$0xff]  }
 0x40a   : > { %3519 = vmatprep.subr.bf16.mxu0 %v7195_v28 }
 0x40b   : > { %3520 = vmatpush1.bf16.xpose.msra.mxu0 %v7197_v4 }
 0x412   : > { %3552 = vmatmul.mubr.bf16.vlgmr.msra.gmra.mrb[4].mxu0 %v5595_v30  ;;  %v6618_v30 = vld [vmem:[%s7663_s5 + $0x18] sm:$0xff]  }
 0x413   : > { %3591 = vmatprep.mubr.bf16.mxu0 %v5598_v31  ;;  %v6620_v31 = vld [vmem:[%s7663_s5 + $0x60] sm:$0xff]  }
 0x444   : > { %v3198_v36 = vpop.f32.mrb[12].mxu1 }
 0x445   : > { %v3199_v37 = vadd.f32 %v3198_v36, %v2048_v34  ;;  %v3200_v39 = vpop.f32.mrb[13].mxu1  ;;  %v6626_v34 = vld [vmem:[%s7663_s5 + $0x28] sm:$0xff]   ;;  %v6630_v36 = vld [vmem:[%s7663_s5 + $0x30] sm:$0xff]  }
 0x446   : > { %v3201_v41 = vadd.f32 %v3200_v39, %v2052_v35  ;;  %v3202_v2 = vpop.f32.mrb[14].mxu1  ;;  %v6628_v35 = vld [vmem:[%s7663_s5 + $0x70] sm:$0xff]  }
 0x447   : > { %v3203_v42 = vpop.f32.mrb[15].mxu1  ;;  %v7208_v44 = vpack.c.bf16 %v3199_v37, %v3199_v37 }
 0x448   : > { %v7206_v43 = vpack.c.bf16 %v3201_v41, %v3201_v41 }
 0x44a   : > { %3559 = vmatprep.subr.bf16.mxu0 %v7206_v43 }
 0x44b   : > { %3560 = vmatpush1.bf16.xpose.msra.mxu0 %v7208_v44 }
 0x452   : > { %3592 = vmatmul.mubr.bf16.vlgmr.msra.gmra.mrb[4].mxu0 %v5597_v46 }
 0x453   : > { %3631 = vmatprep.mubr.bf16.mxu0 %v5600_v47 }
 0x484   : > { %v3239_v50 = vpop.f32.mrb[16].mxu1 }
 0x485   : > { %v3240_v51 = vadd.f32 %v3239_v50, %v2056_v48  ;;  %v3241_v56 = vpop.f32.mrb[17].mxu1  ;;  %v3692_v48 = vld [vmem:[#allocation3] sm:$0x1] }
 0x486   : > { %v3242_v57 = vadd.f32 %v3241_v56, %v2060_v49  ;;  %v3243_v59 = vpop.f32.mrb[18].mxu1 }
 0x487   : > { %v3244_v60 = vpop.f32.mrb[19].mxu1  ;;  %v7220_v62 = vpack.c.bf16 %v3240_v51, %v3240_v51  ;;  %v3725_v59 = vsel %vm3711_vm0, %v7197_v4, 0  ;;  %v6613_v4 = vld [vmem:[%s7663_s5 + $0xc0] sm:$0xff]  }
 0x488   : > { %v7218_v61 = vpack.c.bf16 %v3242_v57, %v3242_v57  ;;  %v3719_v57 = vsel %vm3711_vm0, %v7179_v58, 0  ;;  %v3731_v58 = vsel %vm3711_vm0, %v7208_v44, 0  ;;  %v6615_v44 = vld [vmem:[%s7663_s5 + $0x80] sm:$0xff]   ;;  %v6617_v60 = vld [vmem:[%s7663_s5 + $0xc8] sm:$0xff]  }
 0x48a   : > { %3599 = vmatprep.subr.bf16.mxu0 %v7218_v61 }
 0x48b   : > { %3600 = vmatpush1.bf16.xpose.msra.mxu0 %v7220_v62 }
 0x492   : > { %3632 = vmatmul.mubr.bf16.vlgmr.msra.gmra.mrb[4].mxu0 %v5599_v0  ;;  %v6625_v0 = vld [vmem:[%s7663_s5 + $0xd8] sm:$0xff]  }
 0x493   : > { %3671 = vmatprep.mubr.bf16.mxu0 %v5602_v1  ;;  %v6627_v1 = vld [vmem:[%s7663_s5 + $0x98] sm:$0xff]  }
 0x4c4   : > { %v3280_v3 = vpop.f32.mrb[20].mxu1 }
 0x4c5   : > { %v3281_v5 = vadd.f32 %v3280_v3, %v2064_v53  ;;  %v3282_v6 = vpop.f32.mrb[21].mxu1  ;;  %v6629_v53 = vld [vmem:[%s7663_s5 + $0xe0] sm:$0xff]   ;;  %v6632_v3 = vld [vmem:[%s7663_s5 + $0x78] sm:$0xff]  }
 0x4c6   : > { %v3283_v9 = vadd.f32 %v3282_v6, %v2068_v55  ;;  %v3284_v10 = vpop.f32.mrb[22].mxu1  ;;  %v6631_v55 = vld [vmem:[%s7663_s5 + $0xa0] sm:$0xff]   ;;  %v6634_v6 = vld [vmem:[%s7663_s5 + $0x38] sm:$0xff]  }
 0x4c7   : > { %v3285_v13 = vpop.f32.mrb[23].mxu1  ;;  %v7231_v11 = vpack.c.bf16 %v3281_v5, %v3281_v5  ;;  %v6633_v5 = vld [vmem:[%s7663_s5 + $0xe8] sm:$0xff]   ;;  %v6636_v10 = vld [vmem:[%s7663_s5 + $0xf0] sm:$0xff]  }
 0x4c8   : > { %v7229_v14 = vpack.c.bf16 %v3283_v9, %v3283_v9  ;;  %v6635_v9 = vld [vmem:[%s7663_s5 + $0xa8] sm:$0xff]   ;;  %v6637_v13 = vld [vmem:[%s7663_s5 + $0x140] sm:$0xff]  }
 0x4ca   : > { %3639 = vmatprep.subr.bf16.mxu0 %v7229_v14 }
 0x4cb   : > { %3640 = vmatpush1.bf16.xpose.msra.mxu0 %v7231_v11 }
 0x4cc   : > { %5746 = vmatprep.subr.bf16.mxu0 %v6608_v24 }
 0x4d2   : > { %3672 = vmatmul.mubr.bf16.vlgmr.msra.gmra.mrb[4].mxu0 %v5601_v15  ;;  %v6642_v15 = vld [vmem:[%s7663_s5 + $0xb8] sm:$0xff]  }
 0x4d3   : > { %5747 = vmatpush3.bf16.msra.mxu0 %v6609_v25 }
 0x4d4   : > { %5748 = vmatprep.subr.bf16.mxu0 %v6610_v7 }
 0x4d7   : > { %5749 = vmatpush3.bf16.msra.mxu0 %v6611_v26  ;;  %v6646_v26 = vld [vmem:[%s7663_s5 + $0x110] sm:$0xff]  }
 0x4d8   : > { %5750 = vmatprep.subr.bf16.mxu0 %v6612_v27  ;;  %v6647_v27 = vld [vmem:[%s7663_s5 + $0x180] sm:$0xff]  }
 0x4db   : > { %5751 = vmatpush3.bf16.msra.mxu0 %v6614_v8 }
 0x4dc   : > { %5752 = vmatprep.subr.bf16.mxu0 %v6616_v29 }
 0x4df   : > { %5753 = vmatpush3.bf16.msra.mxu0 %v6618_v30  ;;  %v6648_v30 = vld [vmem:[%s7663_s5 + $0x158] sm:$0xff]  }
 0x4e0   : > { %5754 = vmatprep.subr.bf16.mxu0 %v6620_v31  ;;  %v6649_v31 = vld [vmem:[%s7663_s5 + $0x1c8] sm:$0xff]  }
 0x4e3   : > { %5755 = vmatpush3.bf16.msra.mxu0 %v6622_v32  ;;  %v6650_v32 = vld [vmem:[%s7663_s5 + $0x118] sm:$0xff]  }
 0x4e4   : > { %5756 = vmatprep.subr.bf16.mxu0 %v6624_v33  ;;  %v6651_v33 = vld [vmem:[%s7663_s5 + $0x188] sm:$0xff]  }
 0x4e7   : > { %5757 = vmatpush3.bf16.msra.mxu0 %v6626_v34  ;;  %v6652_v34 = vld [vmem:[%s7663_s5 + $0x160] sm:$0xff]  }
 0x4e8   : > { %5758 = vmatprep.subr.bf16.mxu0 %v6628_v35  ;;  %v6653_v35 = vld [vmem:[%s7663_s5 + $0x1d0] sm:$0xff]  }
 0x4eb   : > { %5759 = vmatpush3.bf16.msra.mxu0 %v6630_v36 }
 0x4ec   : > { %5760 = vmatprep.subr.bf16.mxu0 %v6632_v3  ;;  %v6671_v3 = vld [vmem:[%s7663_s5 + $0x200] sm:$0xff]  }
 0x4ef   : > { %5761 = vmatpush3.bf16.msra.mxu0 %v6634_v6 }
 0x4f0   : > { %5790 = vmatprep.subr.bf16.mxu0 %v6637_v13  ;;  %v6673_v13 = vld [vmem:[%s7663_s5 + $0x248] sm:$0xff]  }
 0x5a5   : > { %v3673_v38 = vpop.f32.mrb[4].mxu0 }
 0x5a6   : > { %v3675_v52 = vpop.f32.mrb[5].mxu0  ;;  %v3680_v40 = vsel %vm3679_vm1, %v3673_v38, -inf }
 0x5a7   : > { %3681 = vmax.xlane.f32.xlu0 %v3680_v40  ;;  %v3676_v16 = vpop.f32.mrb[6].mxu0 }
 0x5a8   : > { %v3677_v17 = vpop.f32.mrb[7].mxu0 }
 0x634   : > { %v3682_v19 = vpop.xlane.xlu0 %3681 }
 0x635   : > { %v3683_v20 = vsub.f32 %v3673_v38, %v3682_v19  ;;  %v6645_v38 = vld [vmem:[%s7663_s5 + $0x1c0] sm:$0xff]  }
 0x637   : > { %v3684_v21 = vmul.f32 1.442695, %v3683_v20 }
 0x639   : > { %6704 = vpow2.f32 %v3684_v21  ;;  %v6641_v21 = vld [vmem:[%s7663_s5 + $0x148] sm:$0xff]  }
 0x643   : > { %v6705_v12 = vpop.eup %6704 }
 0x644   : > { %v3686_v22 = vsel %vm3679_vm1, %v6705_v12, 0.0 }
 0x645   : > { %3687 = vadd.xlane.f32.xlu0 %v3686_v22  ;;  %v6644_v22 = vld [vmem:[%s7663_s5 + $0x150] sm:$0xff]  }
 0x6d2   : > { %v3688_v37 = vpop.xlane.xlu0 %3687 }
 0x6d3   : > { %6706 = vrcp.f32 %v3688_v37 }
 0x6dd   : > { %v6707_v39 = vpop.eup %6706 }
 0x6de   : > { %v3690_v41 = vmul.f32 %v6707_v39, %v6705_v12  ;;  %v6643_v12 = vld [vmem:[%s7663_s5 + $0x108] sm:$0xff]  }
 0x6e0   : > { %v3693_v2 = vsel %vm3679_vm1, %v3690_v41, 0.0  ;;  %3691 = vst.msk [vmem:[%s7286_s21] sm:$0xff] %vm3679_vm1, %v3690_v41 }
 0x6e1   : > { %v3694_v42 = vrot.slane %v3693_v2, 4 }
 0x6e3   : > { %v3695_v45 = vadd.f32 %v3694_v42, %v3693_v2  ;;  %v6654_v2 = vld [vmem:[%s7663_s5 + $0x120] sm:$0xff]   ;;  %v6655_v42 = vld [vmem:[%s7663_s5 + $0x190] sm:$0xff]  }
 0x6e5   : > { %v3696_v46 = vrot.slane %v3695_v45, 2 }
 0x6e7   : > { %v3697_v47 = vadd.f32 %v3696_v46, %v3695_v45  ;;  %v6656_v46 = vld [vmem:[%s7663_s5 + $0x168] sm:$0xff]  }
 0x6e9   : > { %v3698_v54 = vrot.slane %v3697_v47, 1 }
 0x6eb   : > { %v3699_v49 = vadd.f32 %v3698_v54, %v3697_v47  ;;  %v6657_v47 = vld [vmem:[%s7663_s5 + $0x1d8] sm:$0xff]   ;;  %v6658_v54 = vld [vmem:[%s7663_s5 + $0x128] sm:$0xff]  }
 0x6ed   : > { %v3700_v50 = vadd.f32 %v3699_v49, %v3692_v48  ;;  %v6659_v48 = vld [vmem:[%s7663_s5 + $0x198] sm:$0xff]   ;;  %v6660_v49 = vld [vmem:[%s7663_s5 + $0x170] sm:$0xff]  }
 0x6ef   : > { %3702 = vst.msk [vmem:[#allocation3] sm:$0x1] %vm3341_vm2, %v3700_v50  ;;  %v6661_v50 = vld [vmem:[%s7663_s5 + $0x1e0] sm:$0xff]  }
 0x6f6   : > { %v3706_v51 = vld [vmem:[#allocation3] sm:$0x1] }
 0x6f7   : > { %v3707_v56 = vpack.c.bf16 %v3706_v51, %v3706_v51 }
 0x6f9   : > { %5616 = vmatmul.mubr.msk.bf16.vlgmr.msra.gmra.mrb[24].mxu1 %vm3679_vm1, %v3707_v56 }
 0x6fa   : > { %3790 = vmatpush1.bf16.msra.mxu1 %v3719_v57  ;;  %3821 = vmatprep.mubr.bf16.mxu1 %v6895_v23 }
 0x6fb   : > { %5619 = vmatprep.subr.msk.bf16.mxu1 %vm3711_vm0, %v7195_v28  ;;  %v3737_v28 = vsel %vm3711_vm0, %v7220_v62, 0  ;;  %v6621_v62 = vld [vmem:[%s7663_s5 + $0xd0] sm:$0xff]  }
 0x701   : > { %5618 = vmatmul.mubr.msk.bf16.vlgmr.msra.gmra.mrb[28].mxu1 %vm3679_vm1, %v3707_v56 }
 0x702   : > { %3831 = vmatpush1.bf16.msra.mxu1 %v3725_v59  ;;  %3862 = vmatprep.mubr.bf16.mxu1 %v6895_v23 }
 0x703   : > { %5621 = vmatprep.subr.msk.bf16.mxu1 %vm3711_vm0, %v7206_v43  ;;  %v3743_v43 = vsel %vm3711_vm0, %v7231_v11, 0  ;;  %v6640_v11 = vld [vmem:[%s7663_s5 + $0xf8] sm:$0xff]  }
 0x709   : > { %5620 = vmatmul.mubr.msk.bf16.vlgmr.msra.gmra.mrb[32].mxu1 %vm3679_vm1, %v3707_v56 }
 0x70a   : > { %3872 = vmatpush1.bf16.msra.mxu1 %v3731_v58  ;;  %3903 = vmatprep.mubr.bf16.mxu1 %v6895_v23  ;;  %v6662_v58 = vld [vmem:[%s7663_s5 + $0x130] sm:$0xff]  }
 0x70b   : > { %5623 = vmatprep.subr.msk.bf16.mxu1 %vm3711_vm0, %v7218_v61  ;;  %v6619_v61 = vld [vmem:[%s7663_s5 + $0x88] sm:$0xff]  }
 0x711   : > { %5622 = vmatmul.mubr.msk.bf16.vlgmr.msra.gmra.mrb[36].mxu1 %vm3679_vm1, %v3707_v56 }
 0x712   : > { %3913 = vmatpush1.bf16.msra.mxu1 %v3737_v28  ;;  %3944 = vmatprep.mubr.bf16.mxu1 %v6895_v23  ;;  %v6663_v28 = vld [vmem:[%s7663_s5 + $0x1a0] sm:$0xff]  }
 0x713   : > { %5625 = vmatprep.subr.msk.bf16.mxu1 %vm3711_vm0, %v7229_v14  ;;  %v6638_v14 = vld [vmem:[%s7663_s5 + $0xb0] sm:$0xff]  }
 0x719   : > { %5624 = vmatmul.mubr.msk.bf16.vlgmr.msra.gmra.mrb[40].mxu1 %vm3679_vm1, %v3707_v56 }
 0x71a   : > { %3954 = vmatpush1.bf16.msra.mxu1 %v3743_v43  ;;  %3985 = vmatprep.mubr.bf16.mxu1 %v6895_v23  ;;  %v6664_v43 = vld [vmem:[%s7663_s5 + $0x178] sm:$0xff]  }
 0x71b   : > { %5768 = vmatprep.subr.bf16.mxu1 %v6613_v4 }
 0x721   : > { %5626 = vmatmul.mubr.msk.bf16.vlgmr.msra.gmra.mrb[44].mxu1 %vm3679_vm1, %v3707_v56 }
 0x722   : > { %5769 = vmatpush3.bf16.msra.mxu1 %v6615_v44  ;;  %v6665_v44 = vld [vmem:[%s7663_s5 + $0x1e8] sm:$0xff]  }
 0x723   : > { %5770 = vmatprep.subr.bf16.mxu1 %v6617_v60  ;;  %v6666_v60 = vld [vmem:[%s7663_s5 + $0x138] sm:$0xff]  }
 0x726   : > { %5771 = vmatpush3.bf16.msra.mxu1 %v6619_v61  ;;  %v6667_v61 = vld [vmem:[%s7663_s5 + $0x1a8] sm:$0xff]  }
 0x727   : > { %5772 = vmatprep.subr.bf16.mxu1 %v6621_v62  ;;  %v6668_v62 = vld [vmem:[%s7663_s5 + $0x1f0] sm:$0xff]  }
 0x72a   : > { %5773 = vmatpush3.bf16.msra.mxu1 %v6623_v63  ;;  %v6669_v63 = vld [vmem:[%s7663_s5 + $0x240] sm:$0xff]  }
 0x72b   : > { %5774 = vmatprep.subr.bf16.mxu1 %v6625_v0 }
 0x72e   : > { %5775 = vmatpush3.bf16.msra.mxu1 %v6627_v1 }
 0x72f   : > { %5776 = vmatprep.subr.bf16.mxu1 %v6629_v53 }
 0x732   : > { %5777 = vmatpush3.bf16.msra.mxu1 %v6631_v55  ;;  %v6670_v55 = vld [vmem:[%s7663_s5 + $0x1b0] sm:$0xff]  }
 0x733   : > { %5778 = vmatprep.subr.bf16.mxu1 %v6633_v5 }
 0x736   : > { %5779 = vmatpush3.bf16.msra.mxu1 %v6635_v9 }
 0x737   : > { %5780 = vmatprep.subr.bf16.mxu1 %v6636_v10  ;;  %v6672_v10 = vld [vmem:[%s7663_s5 + $0x1f8] sm:$0xff]  }
 0x73a   : > { %5781 = vmatpush3.bf16.msra.mxu1 %v6638_v14  ;;  %v6674_v14 = vld [vmem:[%s7663_s5 + $0x1b8] sm:$0xff]  }
 0x73b   : > { %5782 = vmatprep.subr.bf16.mxu1 %v6640_v11  ;;  %v6675_v11 = vld [vmem:[%s7663_s5 + $0x208] sm:$0xff]  }
 0x73e   : > { %5783 = vmatpush3.bf16.msra.mxu1 %v6642_v15  ;;  %v6676_v15 = vld [vmem:[%s7663_s5 + $0x250] sm:$0xff]  }
 0x73f   : > { %5812 = vmatprep.subr.bf16.mxu1 %v6645_v38  ;;  %v6677_v38 = vld [vmem:[%s7663_s5 + $0x2c0] sm:$0xff]  }
 0x7cc   : > { %v3782_v52 = vpop.f32.mrb[24].mxu1 }
 0x7cd   : > { %v3784_v40 = vpop.f32.mrb[25].mxu1  ;;  %v3994_v19 = vpack.c.bf16 %v3782_v52, %v3782_v52 }
 0x7ce   : > { %v3995_v16 = vpack.c.bf16 %v3784_v40, %v3784_v40  ;;  %v3786_v17 = vpop.f32.mrb[26].mxu1 }
 0x7cf   : > { %v3787_v20 = vpop.f32.mrb[27].mxu1  ;;  %v6678_v17 = vld [vmem:[%s7663_s5 + $0x210] sm:$0xff]  }
 0x7d0   : > { %4807 = vmatprep.mubr.bf16.mxu0 %v3995_v16 }
 0x7d1   : > { %4808 = vmatmul.mubr.bf16.vlgmr.msra.gmra.mrb[8].mxu0 %v3994_v19 }
 0x7d2   : > { %5791 = vmatpush3.bf16.msra.mxu0 %v6639_v18  ;;  %v6679_v18 = vld [vmem:[%s7663_s5 + $0x280] sm:$0xff]  }
 0x7d3   : > { %5792 = vmatprep.subr.bf16.mxu0 %v6641_v21 }
 0x7d4   : > { %v3823_v23 = vpop.f32.mrb[28].mxu1 }
 0x7d5   : > { %v3825_v24 = vpop.f32.mrb[29].mxu1  ;;  %v3996_v8 = vpack.c.bf16 %v3823_v23, %v3823_v23  ;;  %v6682_v23 = vld [vmem:[%s7663_s5 + $0x218] sm:$0xff]  }
 0x7d6   : > { %v3997_v25 = vpack.c.bf16 %v3825_v24, %v3825_v24  ;;  %5793 = vmatpush3.bf16.msra.mxu0 %v6643_v12  ;;  %v3827_v7 = vpop.f32.mrb[30].mxu1  ;;  %v6680_v12 = vld [vmem:[%s7663_s5 + $0x258] sm:$0xff]   ;;  %v6683_v24 = vld [vmem:[%s7663_s5 + $0x288] sm:$0xff]  }
 0x7d7   : > { %v3828_v29 = vpop.f32.mrb[31].mxu1  ;;  %5794 = vmatprep.subr.bf16.mxu0 %v6644_v22  ;;  %v6681_v22 = vld [vmem:[%s7663_s5 + $0x2c8] sm:$0xff]   ;;  %v6685_v7 = vld [vmem:[%s7663_s5 + $0x2d0] sm:$0xff]  }
 0x7d8   : > { %4847 = vmatprep.mubr.bf16.mxu1 %v3997_v25  ;;  %v6684_v25 = vld [vmem:[%s7663_s5 + $0x260] sm:$0xff]   ;;  %v6689_v29 = vld [vmem:[%s7663_s5 + $0x2d8] sm:$0xff]  }
 0x7d9   : > { %4848 = vmatmul.mubr.bf16.vlgmr.msra.gmra.mrb[48].mxu1 %v3996_v8  ;;  %v6688_v8 = vld [vmem:[%s7663_s5 + $0x268] sm:$0xff]  }
 0x7da   : > { %5795 = vmatpush3.bf16.msra.mxu0 %v6646_v26  ;;  %5813 = vmatpush3.bf16.msra.mxu1 %v6647_v27  ;;  %v6686_v26 = vld [vmem:[%s7663_s5 + $0x220] sm:$0xff]   ;;  %v6687_v27 = vld [vmem:[%s7663_s5 + $0x290] sm:$0xff]  }
 0x7db   : > { %5796 = vmatprep.subr.bf16.mxu0 %v6648_v30  ;;  %5814 = vmatprep.subr.bf16.mxu1 %v6649_v31  ;;  %v6690_v30 = vld [vmem:[%s7663_s5 + $0x228] sm:$0xff]   ;;  %v6691_v31 = vld [vmem:[%s7663_s5 + $0x298] sm:$0xff]  }
 0x7dc   : > { %v3864_v36 = vpop.f32.mrb[32].mxu1 }
 0x7dd   : > { %v3866_v37 = vpop.f32.mrb[33].mxu1  ;;  %v3998_v5 = vpack.c.bf16 %v3864_v36, %v3864_v36  ;;  %v6696_v36 = vld [vmem:[%s7663_s5 + $0x278] sm:$0xff]  }
 0x7de   : > { %v3999_v39 = vpack.c.bf16 %v3866_v37, %v3866_v37  ;;  %5797 = vmatpush3.bf16.msra.mxu0 %v6650_v32  ;;  %5815 = vmatpush3.bf16.msra.mxu1 %v6651_v33  ;;  %v3868_v41 = vpop.f32.mrb[34].mxu1  ;;  %v6692_v32 = vld [vmem:[%s7663_s5 + $0x270] sm:$0xff]   ;;  %v6693_v33 = vld [vmem:[%s7663_s5 + $0x2e0] sm:$0xff]   ;;  %v6697_v37 = vld [vmem:[%s7663_s5 + $0x2e8] sm:$0xff]  }
 0x7df   : > { %v3869_v45 = vpop.f32.mrb[35].mxu1  ;;  %5798 = vmatprep.subr.bf16.mxu0 %v6652_v34  ;;  %5816 = vmatprep.subr.bf16.mxu1 %v6653_v35  ;;  %v6694_v34 = vld [vmem:[%s7663_s5 + $0x230] sm:$0xff]   ;;  %v6695_v35 = vld [vmem:[%s7663_s5 + $0x2a0] sm:$0xff]   ;;  %v6699_v41 = vld [vmem:[%s7663_s5 + $0x2a8] sm:$0xff]  }
 0x7e0   : > { %4887 = vmatprep.mubr.bf16.mxu0 %v3999_v39  ;;  %v6698_v39 = vld [vmem:[%s7663_s5 + $0x238] sm:$0xff]  }
 0x7e2   : > { %5799 = vmatpush3.bf16.msra.mxu0 %v6654_v2  ;;  %5817 = vmatpush3.bf16.msra.mxu1 %v6655_v42  ;;  %v6700_v2 = vld [vmem:[%s7663_s5 + $0x2f0] sm:$0xff]  }
 0x7e3   : > { %5800 = vmatprep.subr.bf16.mxu0 %v6656_v46  ;;  %5818 = vmatprep.subr.bf16.mxu1 %v6657_v47  ;;  %v6701_v42 = vld [vmem:[%s7663_s5 + $0x2b0] sm:$0xff]   ;;  %v6702_v46 = vld [vmem:[%s7663_s5 + $0x2f8] sm:$0xff]  }
 0x7e4   : > { %v3905_v51 = vpop.f32.mrb[36].mxu1  ;;  %v6703_v47 = vld [vmem:[%s7663_s5 + $0x2b8] sm:$0xff]  }
 0x7e5   : > { %v3907_v56 = vpop.f32.mrb[37].mxu1  ;;  %v4000_v19 = vpack.c.bf16 %v3905_v51, %v3905_v51 }
 0x7e6   : > { %v4001_v57 = vpack.c.bf16 %v3907_v56, %v3907_v56  ;;  %5801 = vmatpush3.bf16.msra.mxu0 %v6658_v54  ;;  %5819 = vmatpush3.bf16.msra.mxu1 %v6659_v48  ;;  %v3909_v59 = vpop.f32.mrb[38].mxu1 }
 0x7e7   : > { %v3910_v4 = vpop.f32.mrb[39].mxu1  ;;  %5802 = vmatprep.subr.bf16.mxu0 %v6660_v49  ;;  %5820 = vmatprep.subr.bf16.mxu1 %v6661_v50 }
 0x7e8   : > { %4927 = vmatprep.mubr.bf16.mxu1 %v4001_v57  ;;  %v4198_v57 = vld [vmem:[%s7664_s6] sm:$0x1] }
 0x7ea   : > { %5803 = vmatpush3.bf16.msra.mxu0 %v6662_v58  ;;  %5821 = vmatpush3.bf16.msra.mxu1 %v6663_v28 }
 0x7eb   : > { %5804 = vmatprep.subr.bf16.mxu0 %v6664_v43  ;;  %5822 = vmatprep.subr.bf16.mxu1 %v6665_v44 }
 0x7ec   : > { %v7464_v0 = vpop.f32.mrb[40].mxu1 }
 0x7ed   : > { %v3948_v1 = vpop.f32.mrb[41].mxu1  ;;  %v4002_v45 = vpack.c.bf16 %v7464_v0, %v7464_v0 }
 0x7ee   : > { %5805 = vmatpush3.bf16.msra.mxu0 %v6666_v60  ;;  %5823 = vmatpush3.bf16.msra.mxu1 %v6667_v61  ;;  %v3950_v53 = vpop.f32.mrb[42].mxu1  ;;  %v4003_v6 = vpack.c.bf16 %v3948_v1, %v3948_v1 }
 0x7ef   : > { %v3951_v9 = vpop.f32.mrb[43].mxu1  ;;  %5824 = vmatprep.subr.bf16.mxu1 %v6668_v62  ;;  %5834 = vmatprep.subr.bf16.mxu0 %v6669_v63 }
 0x7f1   : > { %4888 = vmatmul.mubr.bf16.vlgmr.msra.gmra.mrb[12].mxu0 %v3998_v5 }
 0x7f2   : > { %5825 = vmatpush3.bf16.msra.mxu1 %v6670_v55  ;;  %5835 = vmatpush3.bf16.msra.mxu0 %v6671_v3 }
 0x7f3   : > { %4967 = vmatprep.mubr.bf16.mxu0 %v4003_v6  ;;  %5826 = vmatprep.subr.bf16.mxu1 %v6672_v10 }
 0x7f4   : > { %v7490_v52 = vpop.f32.mrb[44].mxu1  ;;  %5836 = vmatprep.subr.bf16.mxu0 %v6673_v13 }
 0x7f5   : > { %v3989_v40 = vpop.f32.mrb[45].mxu1  ;;  %v4004_v54 = vpack.c.bf16 %v7490_v52, %v7490_v52 }
 0x7f6   : > { %5827 = vmatpush3.bf16.msra.mxu1 %v6674_v14  ;;  %5837 = vmatpush3.bf16.msra.mxu0 %v6675_v11  ;;  %v3991_v16 = vpop.f32.mrb[46].mxu1  ;;  %v4005_v20 = vpack.c.bf16 %v3989_v40, %v3989_v40 }
 0x7f7   : > { %v3992_v21 = vpop.f32.mrb[47].mxu1  ;;  %5838 = vmatprep.subr.bf16.mxu0 %v6676_v15  ;;  %5856 = vmatprep.subr.bf16.mxu1 %v6677_v38 }
 0x7f9   : > { %4928 = vmatmul.mubr.bf16.vlgmr.msra.gmra.mrb[52].mxu1 %v4000_v19 }
 0x7fa   : > { %5839 = vmatpush3.bf16.msra.mxu0 %v6678_v17  ;;  %5857 = vmatpush3.bf16.msra.mxu1 %v6679_v18 }
 0x7fb   : > { %5007 = vmatprep.mubr.bf16.mxu1 %v4005_v20  ;;  %5840 = vmatprep.subr.bf16.mxu0 %v6680_v12 }
 0x7fc   : > { %5858 = vmatprep.subr.bf16.mxu1 %v6681_v22 }
 0x7fe   : > { %5841 = vmatpush3.bf16.msra.mxu0 %v6682_v23  ;;  %5859 = vmatpush3.bf16.msra.mxu1 %v6683_v24 }
 0x7ff   : > { %5842 = vmatprep.subr.bf16.mxu0 %v6684_v25  ;;  %5860 = vmatprep.subr.bf16.mxu1 %v6685_v7 }
 0x802   : > { %5843 = vmatpush3.bf16.msra.mxu0 %v6686_v26  ;;  %5861 = vmatpush3.bf16.msra.mxu1 %v6687_v27 }
 0x803   : > { %5844 = vmatprep.subr.bf16.mxu0 %v6688_v8  ;;  %5862 = vmatprep.subr.bf16.mxu1 %v6689_v29 }
 0x806   : > { %5845 = vmatpush3.bf16.msra.mxu0 %v6690_v30  ;;  %5863 = vmatpush3.bf16.msra.mxu1 %v6691_v31 }
 0x807   : > { %5846 = vmatprep.subr.bf16.mxu0 %v6692_v32  ;;  %5864 = vmatprep.subr.bf16.mxu1 %v6693_v33 }
 0x80a   : > { %5847 = vmatpush3.bf16.msra.mxu0 %v6694_v34  ;;  %5865 = vmatpush3.bf16.msra.mxu1 %v6695_v35 }
 0x80b   : > { %5848 = vmatprep.subr.bf16.mxu0 %v6696_v36  ;;  %5866 = vmatprep.subr.bf16.mxu1 %v6697_v37 }
 0x80e   : > { %5849 = vmatpush3.bf16.msra.mxu0 %v6698_v39  ;;  %5867 = vmatpush3.bf16.msra.mxu1 %v6699_v41 }
 0x80f   : > { %5868 = vmatprep.subr.bf16.mxu1 %v6700_v2 }
 0x811   : > { %4968 = vmatmul.mubr.bf16.vlgmr.msra.gmra.mrb[16].mxu0 %v4002_v45 }
 0x812   : > { %5869 = vmatpush3.bf16.msra.mxu1 %v6701_v42 }
 0x813   : > { %5870 = vmatprep.subr.bf16.mxu1 %v6702_v46 }
 0x816   : > { %5871 = vmatpush3.bf16.msra.mxu1 %v6703_v47 }
 0x819   : > { %5008 = vmatmul.mubr.bf16.vlgmr.msra.gmra.mrb[56].mxu1 %v4004_v54 }
 0x8a4   : > { %v5762_v48 = vpop.f32.mrb[8].mxu0 }
 0x8a5   : > { %v5763_v49 = vpop.f32.mrb[9].mxu0 }
 0x8a6   : > { %v5764_v50 = vadd.f32 %v5763_v49, %v5762_v48  ;;  %v5765_v51 = vpop.f32.mrb[10].mxu0 }
 0x8a7   : > { %v5766_v56 = vpop.f32.mrb[11].mxu0 }
 0x8a8   : > { %v4810_v28 = vadd.f32 %v5764_v50, %v4198_v57 }
 0x8ac   : > { %v5784_v59 = vpop.f32.mrb[48].mxu1 }
 0x8ad   : > { %v5785_v58 = vpop.f32.mrb[49].mxu1 }
 0x8ae   : > { %v5786_v4 = vadd.f32 %v5785_v58, %v5784_v59  ;;  %v5787_v43 = vpop.f32.mrb[50].mxu1 }
 0x8af   : > { %v5788_v44 = vpop.f32.mrb[51].mxu1 }
 0x8b0   : > { %v4850_v60 = vadd.f32 %v5786_v4, %v4810_v28 }
 0x8c4   : > { %v5806_v61 = vpop.f32.mrb[12].mxu0 }
 0x8c5   : > { %v5807_v62 = vpop.f32.mrb[13].mxu0 }
 0x8c6   : > { %v5808_v63 = vadd.f32 %v5807_v62, %v5806_v61  ;;  %v5809_v0 = vpop.f32.mrb[14].mxu0 }
 0x8c7   : > { %v5810_v1 = vpop.f32.mrb[15].mxu0 }
 0x8c8   : > { %v4890_v53 = vadd.f32 %v5808_v63, %v4850_v60 }
 0x8cc   : > { %v5828_v55 = vpop.f32.mrb[52].mxu1 }
 0x8cd   : > { %v5829_v3 = vpop.f32.mrb[53].mxu1 }
 0x8ce   : > { %v5830_v5 = vadd.f32 %v5829_v3, %v5828_v55  ;;  %v5831_v6 = vpop.f32.mrb[54].mxu1 }
 0x8cf   : > { %v5832_v9 = vpop.f32.mrb[55].mxu1 }
 0x8d0   : > { %v4930_v10 = vadd.f32 %v5830_v5, %v4890_v53 }
 0x8e4   : > { %v5850_v13 = vpop.f32.mrb[16].mxu0 }
 0x8e5   : > { %v5851_v14 = vpop.f32.mrb[17].mxu0 }
 0x8e6   : > { %v5852_v11 = vadd.f32 %v5851_v14, %v5850_v13  ;;  %v5853_v15 = vpop.f32.mrb[18].mxu0 }
 0x8e7   : > { %v5854_v38 = vpop.f32.mrb[19].mxu0 }
 0x8e8   : > { %v4970_v52 = vadd.f32 %v5852_v11, %v4930_v10 }
 0x8ec   : > { %v5872_v40 = vpop.f32.mrb[56].mxu1 }
 0x8ed   : > { %v5873_v16 = vpop.f32.mrb[57].mxu1 }
 0x8ee   : > { %v5874_v17 = vadd.f32 %v5873_v16, %v5872_v40  ;;  %v5875_v18 = vpop.f32.mrb[58].mxu1 }
 0x8ef   : > { %v5876_v19 = vpop.f32.mrb[59].mxu1 }
 0x8f0   : > { %v5010_v20 = vadd.f32 %v5874_v17, %v4970_v52 }
 0x8f2   : > { %v5016_v21 = vsel %vm5015_vm3, %v5010_v20, -inf }
 0x8f3   : > { %5017 = vmax.xlane.f32.xlu1 %v5016_v21 }
 0x980   : > { %v5018_v12 = vpop.xlane.xlu1 %5017 }
 0x981   : > { %v5019_v22 = vsub.f32 %v5010_v20, %v5018_v12 }
 0x983   : > { %v5020_v23 = vmul.f32 1.442695, %v5019_v22 }
 0x985   : > { %6708 = vpow2.f32 %v5020_v23 }
 0x98f   : > { %v6709_v24 = vpop.eup %6708 }
 0x990   : > { %v5022_v25 = vsel %vm5015_vm3, %v6709_v24, 0.0 }
 0x991   : > { %5023 = vadd.xlane.f32.xlu1 %v5022_v25 }
 0x992   : > { %6781 = shalt.err (!%p6778_p6)
}
 0x993   : > { %s6782_s21 = scalar_lea.hbm %s7584_s29, 128  ;;  %s6786_s11 = scalar_lea.hbm %s7666_s8, 256 }
 0x994   : > { %p6783_p7 = scmp.ne.s32.totalorder %s7584_s29, %s6782_s21  ;;  %p6787_p0 = scmp.lt.u32.totalorder %s7584_s29, %s7666_s8 }
 0x995   : > { %p6788_p1 = scmp.lt.u32.totalorder %s6786_s11, %s6782_s21  ;;  %p6790_p4 = scmp.lt.u32.totalorder %s6782_s21, %s7584_s29 }
 0x996   : > { %p6784_p9 = pnand %p6783_p7, %p7685_p8 }
 0x997   : > { %p6789_p13 = por %p6788_p1, %p6787_p0 }
 0x998   : > { %p6785_p12 = pneg %p6784_p9 }
 0x999   : > { %p6791_p10 = por %p6790_p4, %p6789_p13 }
 0x99b   : > { %p6792_p11 = pnand %p6791_p10, %p6785_p12 }
 0x99d   : > { %6795 = shalt.err (!%p6792_p11)
}
 0x99e   : > { %5930 = dma.vmem_to_hbm [thread:$0]  (%p7685_p8), %s5061_s16, 128, %s7584_s29, %s5033_s9  }
 0x99f   : > { %s5724_s24 = sshll.u32 %s6878_s30, 4  ;;  %s345_s22 = scalar_lea.vmem [#allocation9], %s7282_s14 }
 0x9a0   : > { %s5046_s18 = sshll.u32 %s345_s22, 4  ;;  %s7609_s20 = scalar_lea.hbm %s7665_s7, %s5724_s24  ;;  %s7611_s18 = int_to_ptr.vmem [resolvable:$true] %s5046_s18 }
 0x9a1   : > { %s5029_s16 = scalar_lea.sflag [#allocation6], %s7282_s14  ;;  %s6796_s29 = scalar_lea.vmem %s7611_s18, 16 }
 0x9a2   : > { %p6797_p2 = scmp.ne.s32.totalorder %s7611_s18, %s6796_s29  ;;  %s6897_s30 = smov [#allocation9]  }
 0x9a3   : > { %s6800_s9 = sshll.u32 %s6897_s30, 4  ;;  %s6801_s9 = int_to_ptr.vmem [resolvable:$false] %s6800_s9 }
 0x9a4   : > { %p6798_p3 = pnand %p6797_p2, %p7685_p8  ;;  %s6802_s21 = scalar_lea.vmem %s6801_s9, 32 }
 0x9a5   : > { %p6803_p6 = scmp.lt.s32.totalorder %s7611_s18, %s6801_s9  ;;  %p6804_p7 = scmp.lt.s32.totalorder %s6802_s21, %s6796_s29 }
 0x9a6   : > { %p6799_p5 = pneg %p6798_p3 }
 0x9a7   : > { %p6805_p9 = por %p6804_p7, %p6803_p6 }
 0x9a9   : > { %p6806_p12 = pnand %p6805_p9, %p6799_p5 }
 0xa1e   : > { %v5024_v7 = vpop.xlane.xlu1 %5023 }
 0xa1f   : > { %6710 = vrcp.f32 %v5024_v7 }
 0xa29   : > { %v6711_v26 = vpop.eup %6710 }
 0xa2a   : > { %v5026_v27 = vmul.f32 %v6711_v26, %v6709_v24 }
 0xa2c   : > { %5027 = vst.msk [vmem:[%s345_s22] sm:$0x1] %vm5015_vm3, %v5026_v27 }
 0xa2d   : > { %6809 = shalt.err (!%p6806_p12)
}
 0xa2e   : > { %s6810_s14 = scalar_lea.hbm %s7609_s20, 16  ;;  %s6814_s11 = scalar_lea.hbm %s7665_s7, 32 }
 0xa2f   : > { %p6811_p0 = scmp.ne.s32.totalorder %s7609_s20, %s6810_s14  ;;  %p6815_p4 = scmp.lt.u32.totalorder %s7609_s20, %s7665_s7 }
 0xa30   : > { %p6816_p10 = scmp.lt.u32.totalorder %s6814_s11, %s6810_s14  ;;  %p6818_p2 = scmp.lt.u32.totalorder %s6810_s14, %s7609_s20 }
 0xa31   : > { %p6812_p1 = pnand %p6811_p0, %p7685_p8 }
 0xa32   : > { %p6817_p11 = por %p6816_p10, %p6815_p4 }
 0xa33   : > { %p6813_p13 = pneg %p6812_p1 }
 0xa34   : > { %p6819_p3 = por %p6818_p2, %p6817_p11 }
 0xa36   : > { %p6820_p5 = pnand %p6819_p3, %p6813_p13 }
 0xa38   : > { %6823 = shalt.err (!%p6820_p5)
}
 0xa39   : > { %5929 = dma.vmem_to_hbm [thread:$0]  (%p7685_p8), %s7611_s18, 16, %s7609_s20, %s5029_s16  }
 0xa3a PF: > { %p5951_p6 = scmp.ge.s32.totalorder %s6886_s10, 2  ;;  %s5072_s24 = sand.u32 1, %s6866_s27  }
 0xa3b   : > { %p7686_p7 = scmp.ne.s32.totalorder %s7678_s17, 0  ;;  %s5073_s22 = scalar_lea.sflag [#allocation6], %s5072_s24 }
 0xa3d   : > { %p5941_p9 = pnand %p5951_p6, %p7686_p7 }
 0xa3f   : > { %6857 = dma.done.wait (!%p5941_p9), %s5073_s22, 16  }
 0xa40   : > { %6859 = vsyncadd (!%p5941_p9), %s5073_s22, 4294967280  ;;  %s5081_s26 = scalar_lea.sflag [#allocation11], %s5072_s24 }
 0xa41   : > { %6861 = dma.done.wait (!%p5941_p9), %s5081_s26, 128  }
 0xa42   : > { %6863 = vsyncadd (!%p5941_p9), %s5081_s26, 4294967168  ;;  %s27_s10 = sadd.s32 1, %s6886_s10   ;;  %s7687_s15 = sld [smem:[#allocation16_spill]] }
 0xa43   : > { %p24_p12 = scmp.ge.s32.totalorder %s27_s10, 4   ;;  %s7688_s29 = sld [smem:[#allocation19_spill]] }
 0xa44   : > { %s7689_s30 = sld [smem:[#allocation17_spill]]  ;;  %s7690_s9 = sld [smem:[#allocation18_spill]] }
 0xa45   : > { %s7691_s27 = smov %s6870_s28  ;;  %26 = sbr.rel (!%p24_p12) target bundleno = 8 (0x8), region = 117 }
 0xa48   : > { %s7692_s28 = smov %s7687_s15 }
 0xa4c   :  { %5086 = vsyncpa [#allocation5], 1 }
 0xa4d   :  { %5088 = vsyncpa [#allocation5 + $0x1], 1 }
 0xa4e   :  { %5089 = vsyncpa [#allocation8], 1 }
 0xa4f   :  { %5090 = vsyncpa [#allocation6], 1 }
 0xa50   :  { %5092 = vsyncpa [#allocation6 + $0x1], 1 }
 0xa51   :  { %5093 = vsyncpa [#allocation11], 1 }
 0xa52   :  { %5095 = vsyncpa [#allocation11 + $0x1], 1 }

</bundles_post_ra>
